<compile_context>
chip_gen: v7x
topology: tpu7x:2x2x1
jax: 0.10.0
libtpu: 0.0.40
codegen_flags: <defaults>
</compile_context>

<pallas_src>
import functools

import numpy as np
import jax
import jax.numpy as jnp
from jax.experimental import pallas as pl
from jax.experimental.pallas import tpu as pltpu


# ----------------------------- configuration -------------------------------
EMB_DIM = 8                      # embedding_dim
CONV_CH = 16                     # conv_channels
HIDDEN = [32, 16]                # hidden_units
SPARSE_VOCABS = [7, 11, 5]       # three sparse features
NUM_DENSE = 2                    # two dense features
NUM_FIELDS = len(SPARSE_VOCABS) + NUM_DENSE
BATCH = 500                      # exercises tail padding / multi-tile paths

D0 = EMB_DIM * NUM_FIELDS        # flattened conv-layer-1 input dim (40)
D0P = 48                         # conv-1 K padded to the bf16 sublane tile
D1 = CONV_CH * NUM_FIELDS        # flattened conv output / gate dim   (80)
PAD = 128                        # lane-aligned padded feature width
LANE = 128


def _round_up(x, m):
    return ((x + m - 1) // m) * m


# --------------------------- parameter helpers ------------------------------
def conv_to_dense(w, b, F):
    """Lower Conv1d(Cin->Cout, k=3, pad=1) over length F to a dense matmul.

    Returns M (Cin*F, Cout*F) and bias (Cout*F,) such that
      y_flat = x_flat @ M + bias
    reproduces y[b, co, l] = b[co] + sum_{ci,k} w[co,ci,k] * x[b, ci, l+k-1].
    """
    w = np.asarray(w)
    b = np.asarray(b)
    Cout, Cin, K = w.shape
    M = np.zeros((Cin * F, Cout * F), dtype=np.float32)
    for co in range(Cout):
        for ci in range(Cin):
            for l in range(F):
                for k in range(K):
                    m = l + k - 1
                    if 0 <= m < F:
                        M[ci * F + m, co * F + l] = w[co, ci, k]
    b_full = np.repeat(b, F).astype(np.float32)      # index co*F + l -> b[co]
    return M, b_full


def pack_params(c1w, c1b, c2w, c2b, gw, gb, m1w, m1b, m2w, m2b, m3w, m3b):
    """Pack weights into bf16 slabs (w0, W, w5) + one f32 bias slab."""
    assert D0 <= D0P and D1 <= PAD and max(HIDDEN) <= PAD
    M1, B1 = conv_to_dense(c1w, c1b, NUM_FIELDS)     # (40, 80), (80,)
    M2, B2 = conv_to_dense(c2w, c2b, NUM_FIELDS)     # (80, 80), (80,)

    w0 = np.zeros((D0P, PAD), np.float32)            # conv1 banded matmul
    w0[:D0, :D1] = M1

    W = np.zeros((4, PAD, PAD), np.float32)
    W[0, :D1, :D1] = M2                              # conv2 banded matmul
    W[1, :D1, :D1] = np.asarray(gw).T                # gate Linear
    W[2, :D1, :HIDDEN[0]] = np.asarray(m1w).T        # MLP layer 1
    W[3, :HIDDEN[0], :HIDDEN[1]] = np.asarray(m2w).T  # MLP layer 2

    w5 = np.zeros((1, PAD), np.float32)              # final 16->1 weight row
    w5[0, :HIDDEN[1]] = np.asarray(m3w)[0]

    Bm = np.zeros((8, PAD), np.float32)
    Bm[0, :D1] = B1
    Bm[1, :D1] = B2
    Bm[2, :D1] = np.asarray(gb)
    Bm[3, :HIDDEN[0]] = np.asarray(m1b)
    Bm[4, :HIDDEN[1]] = np.asarray(m2b)
    Bm[5, 0] = float(np.asarray(m3b)[0])             # final bias (exact add)

    return (jnp.asarray(w0, jnp.bfloat16), jnp.asarray(W, jnp.bfloat16),
            jnp.asarray(w5, jnp.bfloat16), jnp.asarray(Bm, jnp.float32))


# --------------------------- device-aware choices ----------------------------
def _tpu_flavor():
    """Returns (num_tensorcores_per_chip, use_bf16_elementwise)."""
    try:
        kind = jax.devices()[0].device_kind.lower()
    except Exception:
        kind = ""
    two_tc = ("v7" in kind) or ("7x" in kind)          # v7x: 2 TCs / chip
    bf16_ew = two_tc or ("v6" in kind)                 # bf16 VPU/EUP on v6e/v7x
    return (2 if two_tc else 1), bf16_ew


def _pick_tiling(B, n_cores):
    """Batch tile size / tile count (lane-dense output => 128-row multiples)."""
    if n_cores <= 1:
        # single TensorCore: one grid step for small/medium batches
        tb = _round_up(B, LANE) if B <= 1024 else 512
        n_tiles = pl.cdiv(B, tb)
    else:
        # 2 TensorCores: balanced tiles, even tile count, 128..1024 rows each
        tb = min(max(_round_up(pl.cdiv(B, n_cores), LANE), LANE), 1024)
        n_tiles = _round_up(pl.cdiv(B, tb), n_cores)
    return tb, n_tiles


# ------------------------------ Pallas kernel -------------------------------
def ctnet_kernel(x_ref, w0_ref, w_ref, w5_ref, b_ref, o_ref, *, bf16_ew):
    f32, bf16 = jnp.float32, jnp.bfloat16
    act_dt = bf16 if bf16_ew else f32                # elementwise dtype

    def mxu_op(a):                                   # MXU operands are bf16
        return a if a.dtype == bf16 else a.astype(bf16)

    def layer(x_op, w, bias_row, relu=True):
        y = jnp.dot(x_op, w, preferred_element_type=f32)
        y = y.astype(act_dt) + b_ref[bias_row:bias_row + 1, :].astype(act_dt)
        return jnp.maximum(y, 0.0) if relu else y

    x = x_ref[...]                                   # (TB, 48) bf16

    # conv layer 1 (banded dense matmul) + bias + ReLU
    h1 = layer(x, w0_ref[...], 0)                    # (TB, 128)
    # conv layer 2 + bias + ReLU  -> this is `flat` in the PyTorch module
    h2 = layer(mxu_op(h1), w_ref[0], 1)
    # gate: flat * sigmoid(Linear(flat))
    g = jax.nn.sigmoid(layer(mxu_op(h2), w_ref[1], 2, relu=False))
    gated = h2 * g
    # MLP hidden layers: Linear -> ReLU -> Linear -> ReLU
    a1 = layer(mxu_op(gated), w_ref[2], 3)
    a2 = layer(mxu_op(a1), w_ref[3], 4)

    # Final Linear(16 -> 1): transposed MXU matmul -> lane-dense (1, TB) row.
    # w5 lanes >= 16 are zero-packed, so the 128-lane contraction is exact.
    logit = jax.lax.dot_general(
        w5_ref[...], mxu_op(a2), (((1,), (1,)), ((), ())),
        preferred_element_type=f32)                  # (1, TB) f32
    logit = logit + b_ref[5:6, 0:1]                  # exact scalar bias add
    o_ref[...] = jax.nn.sigmoid(logit)               # lane-dense store


def ctnet_pallas(x_flat, params, *, n_cores=None, bf16_ew=None):
    """x_flat: (B, D0) float32 flattened channel-major features."""
    w0, W, w5, Bm = params
    det_cores, det_bf16 = _tpu_flavor()
    n_cores = det_cores if n_cores is None else n_cores
    bf16_ew = det_bf16 if bf16_ew is None else bf16_ew

    B = x_flat.shape[0]
    tb, n_tiles = _pick_tiling(B, n_cores)
    b_pad = tb * n_tiles

    # Pad batch to the tile grid and features to the bf16 sublane tile (48),
    # casting the MXU operand to bf16 (weights were cast at pack time).
    x_pad = jnp.pad(x_flat.astype(jnp.bfloat16),
                    ((0, b_pad - B), (0, D0P - x_flat.shape[1])))

    flops = 2 * b_pad * (D0P * PAD + 4 * PAD * PAD + PAD)
    transcendentals = b_pad * (PAD + 1)               # gate + final sigmoids
    bytes_accessed = (x_pad.size * 2 + w0.size * 2 + W.size * 2
                      + w5.size * 2 + Bm.size * 4 + b_pad * 4)

    out = pl.pallas_call(
        functools.partial(ctnet_kernel, bf16_ew=bf16_ew),
        grid=(n_tiles,),
        in_specs=[
            pl.BlockSpec((tb, D0P), lambda i: (i, 0)),          # batch tile
            pl.BlockSpec((D0P, PAD), lambda i: (0, 0)),         # conv1 matrix
            pl.BlockSpec((4, PAD, PAD), lambda i: (0, 0, 0)),   # weight slab
            pl.BlockSpec((1, PAD), lambda i: (0, 0)),           # final weight row
            pl.BlockSpec((8, PAD), lambda i: (0, 0)),           # bias slab
        ],
        out_specs=pl.BlockSpec((1, tb), lambda i: (0, i)),      # lane-dense logits
        out_shape=jax.ShapeDtypeStruct((1, b_pad), jnp.float32),
        compiler_params=pltpu.CompilerParams(
            dimension_semantics=("parallel",)),                 # 2 TCs on v7x
        cost_estimate=pl.CostEstimate(
            flops=int(flops), transcendentals=int(transcendentals),
            bytes_accessed=int(bytes_accessed)),
    )(x_pad, w0, W, w5, Bm)
    return out[0, :B]                                           # squeeze(-1)


# ------------------------------ pure-JAX refs --------------------------------
def _q(a, on):
    """Optionally round through bf16 (models the kernel's bf16 MXU operands)."""
    return a.astype(jnp.bfloat16).astype(jnp.float32) if on else a


def conv1d_pre(x, w, quantize):
    """Pre-bias Conv1d(k=3, pad=1): x (B,Cin,F), w (Cout,Cin,3) -> (B,Cout,F) f32."""
    F = x.shape[-1]
    xq, wq = _q(x, quantize), _q(w, quantize)
    xp = jnp.pad(xq, ((0, 0), (0, 0), (1, 1)))
    out = jnp.zeros((x.shape[0], w.shape[0], F), jnp.float32)
    for k in range(3):
        out = out + jnp.einsum("bif,oi->bof", xp[:, :, k:k + F], wq[:, :, k],
                               preferred_element_type=jnp.float32)
    return out


def ctnet_ref(sparse_idx, dense_vals, p, *, quantize=False, bf16_ew=False):
    """quantize: mirror kernel's bf16 MXU operands; bf16_ew: bf16 elementwise."""
    f32 = jnp.float32
    ew = jnp.bfloat16 if (quantize and bf16_ew) else f32

    def post(pre, b, relu=True):
        y = pre.astype(ew) + jnp.asarray(b, f32).astype(ew)
        return jnp.maximum(y, 0.0) if relu else y

    embeds = []
    for tbl, idx in zip(p["emb_tables"], sparse_idx):
        embeds.append(tbl[idx][:, None, :])                          # (B,1,E)
    for (w, b), v in zip(p["dense_params"], dense_vals):
        embeds.append(v[:, None, None] * w[None, None, :] + b[None, None, :])
    stack = jnp.concatenate(embeds, axis=1)                          # (B,F,E)
    conv_in = jnp.transpose(stack, (0, 2, 1)).astype(f32)            # (B,E,F)

    h1 = post(conv1d_pre(conv_in, p["c1w"], quantize), p["c1b"][None, :, None])
    h2 = post(conv1d_pre(h1.astype(f32), p["c2w"], quantize), p["c2b"][None, :, None])
    flat = h2.reshape(h2.shape[0], -1)                               # (B, C*F)

    gz = post(_q(flat.astype(f32), quantize) @ _q(p["gw"].T, quantize),
              p["gb"], relu=False)
    gated = flat * jax.nn.sigmoid(gz)
    a1 = post(_q(gated.astype(f32), quantize) @ _q(p["m1w"].T, quantize), p["m1b"])
    a2 = post(_q(a1.astype(f32), quantize) @ _q(p["m2w"].T, quantize), p["m2b"])
    logit = (_q(a2.astype(f32), quantize) @ _q(p["m3w"].T, quantize)
             + p["m3b"]).astype(f32)
    return jax.nn.sigmoid(logit)[:, 0]


# ----------------------------------- main ------------------------------------
if __name__ == "__main__":
    key = jax.random.PRNGKey(0)
    ks = iter(jax.random.split(key, 32))
    rnd = lambda shape, s=0.1: s * jax.random.normal(next(ks), shape, jnp.float32)

    # --- raw (PyTorch-style) parameters ---
    emb_tables = [rnd((v, EMB_DIM)) for v in SPARSE_VOCABS]
    dense_params = [(rnd((EMB_DIM,)), rnd((EMB_DIM,))) for _ in range(NUM_DENSE)]
    c1w, c1b = rnd((CONV_CH, EMB_DIM, 3)), rnd((CONV_CH,))
    c2w, c2b = rnd((CONV_CH, CONV_CH, 3)), rnd((CONV_CH,))
    gw, gb = rnd((D1, D1)), rnd((D1,))
    m1w, m1b = rnd((HIDDEN[0], D1)), rnd((HIDDEN[0],))
    m2w, m2b = rnd((HIDDEN[1], HIDDEN[0])), rnd((HIDDEN[1],))
    m3w, m3b = rnd((1, HIDDEN[1])), rnd((1,))

    raw = dict(emb_tables=emb_tables, dense_params=dense_params,
               c1w=c1w, c1b=c1b, c2w=c2w, c2b=c2b, gw=gw, gb=gb,
               m1w=m1w, m1b=m1b, m2w=m2w, m2b=m2b, m3w=m3w, m3b=m3b)

    # --- kernel-ready packed parameter slabs ---
    params = pack_params(c1w, c1b, c2w, c2b, gw, gb,
                         m1w, m1b, m2w, m2b, m3w, m3b)

    # --- deterministic example inputs (the nn.Module takes a feature dict) ---
    sparse_idx = [jax.random.randint(next(ks), (BATCH,), 0, v) for v in SPARSE_VOCABS]
    dense_vals = [jax.random.normal(next(ks), (BATCH,), jnp.float32)
                  for _ in range(NUM_DENSE)]

    # --- glue: embedding lookup / dense transform / stack / flatten ---
    embeds = []
    for tbl, idx in zip(emb_tables, sparse_idx):
        embeds.append(tbl[idx][:, None, :])                          # (B,1,E)
    for (w, b), v in zip(dense_params, dense_vals):
        embeds.append(v[:, None, None] * w[None, None, :] + b[None, None, :])
    stack = jnp.concatenate(embeds, axis=1)                          # (B,F,E)
    conv_in = jnp.transpose(stack, (0, 2, 1))                        # (B,E,F)
    x_flat = conv_in.reshape(BATCH, D0)                              # (B, E*F)

    # --- run Pallas kernel (generation-aware tiling / elementwise dtype) ---
    n_cores, bf16_ew = _tpu_flavor()
    out = jax.block_until_ready(
        ctnet_pallas(x_flat, params, n_cores=n_cores, bf16_ew=bf16_ew))
    assert out.shape == (BATCH,)

    # --- correctness checks ---
    # tight-ish: reference mirroring the kernel's quantization choices
    ref_m = jax.block_until_ready(
        ctnet_ref(sparse_idx, dense_vals, raw, quantize=True, bf16_ew=bf16_ew))
    tol_m = 1e-2 if bf16_ew else 3e-4
    np.testing.assert_allclose(np.asarray(out), np.asarray(ref_m),
                               rtol=tol_m, atol=tol_m)
    # loose: full-f32 reference of the PyTorch forward (bf16 noise only)
    ref_f = jax.block_until_ready(
        ctnet_ref(sparse_idx, dense_vals, raw, quantize=False))
    np.testing.assert_allclose(np.asarray(out), np.asarray(ref_f),
                               rtol=2.5e-2, atol=2.5e-2)

    print("KERNEL_OK")
</pallas_src>

<mosaic_0001>
module attributes {stable_mosaic.version = 11 : i64} {
  func.func @ctnet_kernel(%arg0: i32, %arg1: memref<512x48xbf16, #tpu.memory_space<vmem>>, %arg2: memref<48x128xbf16, #tpu.memory_space<vmem>>, %arg3: memref<4x128x128xbf16, #tpu.memory_space<vmem>>, %arg4: memref<1x128xbf16, #tpu.memory_space<vmem>>, %arg5: memref<8x128xf32, #tpu.memory_space<vmem>>, %arg6: memref<1x512xf32, #tpu.memory_space<vmem>>) attributes {dimension_semantics = [#tpu.dimension_semantics<parallel>], iteration_bounds = array<i64: 1>, scalar_prefetch = 0 : i64, scratch_operands = 0 : i64, tpu.core_type = #tpu.core_type<tc>, window_params = [{transform_indices = @transform_0, window_bounds = array<i64: 512, 48>}, {pipeline_mode = #tpu.pipeline_mode<synchronous>, transform_indices = @transform_1, window_bounds = array<i64: 48, 128>}, {pipeline_mode = #tpu.pipeline_mode<synchronous>, transform_indices = @transform_2, window_bounds = array<i64: 4, 128, 128>}, {pipeline_mode = #tpu.pipeline_mode<synchronous>, transform_indices = @transform_3, window_bounds = array<i64: 1, 128>}, {pipeline_mode = #tpu.pipeline_mode<synchronous>, transform_indices = @transform_4, window_bounds = array<i64: 8, 128>}, {transform_indices = @transform_5, window_bounds = array<i64: 1, 512>}]} {
    %c0 = arith.constant 0 : index
    %c0_0 = arith.constant 0 : index
    %0 = vector.load %arg1[%c0, %c0_0] : memref<512x48xbf16, #tpu.memory_space<vmem>>, vector<512x48xbf16>
    %c0_1 = arith.constant 0 : index
    %c0_2 = arith.constant 0 : index
    %1 = vector.load %arg2[%c0_1, %c0_2] : memref<48x128xbf16, #tpu.memory_space<vmem>>, vector<48x128xbf16>
    %cst = arith.constant dense<0.000000e+00> : vector<512x128xf32>
    %2 = tpu.matmul %0, %1, %cst {dimension_numbers = #tpu.dot_dimension_numbers<[1], [0], [0], [1], [0, 0, 1, 1], [], []>} : vector<512x48xbf16>, vector<48x128xbf16>, vector<512x128xf32> -> vector<512x128xf32>
    %c0_3 = arith.constant 0 : index
    %c0_4 = arith.constant 0 : index
    %3 = vector.load %arg5[%c0_3, %c0_4] : memref<8x128xf32, #tpu.memory_space<vmem>>, vector<1x128xf32>
    %4 = vector.broadcast %3 : vector<1x128xf32> to vector<512x128xf32>
    %5 = arith.addf %2, %4 : vector<512x128xf32>
    %cst_5 = arith.constant 0.000000e+00 : f32
    %6 = vector.broadcast %cst_5 : f32 to vector<512x128xf32>
    %7 = arith.maximumf %5, %6 : vector<512x128xf32>
    %8 = arith.truncf %7 : vector<512x128xf32> to vector<512x128xbf16>
    %c0_6 = arith.constant 0 : index
    %c0_7 = arith.constant 0 : index
    %c0_8 = arith.constant 0 : index
    %9 = vector.load %arg3[%c0_6, %c0_7, %c0_8] : memref<4x128x128xbf16, #tpu.memory_space<vmem>>, vector<1x128x128xbf16>
    %10 = vector.shape_cast %9 : vector<1x128x128xbf16> to vector<128x128xbf16>
    %cst_9 = arith.constant dense<0.000000e+00> : vector<512x128xf32>
    %11 = tpu.matmul %8, %10, %cst_9 {dimension_numbers = #tpu.dot_dimension_numbers<[1], [0], [0], [1], [0, 0, 1, 1], [], []>} : vector<512x128xbf16>, vector<128x128xbf16>, vector<512x128xf32> -> vector<512x128xf32>
    %c1 = arith.constant 1 : index
    %c0_10 = arith.constant 0 : index
    %12 = vector.load %arg5[%c1, %c0_10] : memref<8x128xf32, #tpu.memory_space<vmem>>, vector<1x128xf32>
    %13 = vector.broadcast %12 : vector<1x128xf32> to vector<512x128xf32>
    %14 = arith.addf %11, %13 : vector<512x128xf32>
    %cst_11 = arith.constant 0.000000e+00 : f32
    %15 = vector.broadcast %cst_11 : f32 to vector<512x128xf32>
    %16 = arith.maximumf %14, %15 : vector<512x128xf32>
    %17 = arith.truncf %16 : vector<512x128xf32> to vector<512x128xbf16>
    %c1_12 = arith.constant 1 : index
    %c0_13 = arith.constant 0 : index
    %c0_14 = arith.constant 0 : index
    %18 = vector.load %arg3[%c1_12, %c0_13, %c0_14] : memref<4x128x128xbf16, #tpu.memory_space<vmem>>, vector<1x128x128xbf16>
    %19 = vector.shape_cast %18 : vector<1x128x128xbf16> to vector<128x128xbf16>
    %cst_15 = arith.constant dense<0.000000e+00> : vector<512x128xf32>
    %20 = tpu.matmul %17, %19, %cst_15 {dimension_numbers = #tpu.dot_dimension_numbers<[1], [0], [0], [1], [0, 0, 1, 1], [], []>} : vector<512x128xbf16>, vector<128x128xbf16>, vector<512x128xf32> -> vector<512x128xf32>
    %c2 = arith.constant 2 : index
    %c0_16 = arith.constant 0 : index
    %21 = vector.load %arg5[%c2, %c0_16] : memref<8x128xf32, #tpu.memory_space<vmem>>, vector<1x128xf32>
    %22 = vector.broadcast %21 : vector<1x128xf32> to vector<512x128xf32>
    %23 = arith.addf %20, %22 : vector<512x128xf32>
    %24 = arith.negf %23 : vector<512x128xf32>
    %25 = math.exp %24 : vector<512x128xf32>
    %cst_17 = arith.constant 1.000000e+00 : f32
    %26 = vector.broadcast %cst_17 : f32 to vector<512x128xf32>
    %27 = arith.addf %26, %25 : vector<512x128xf32>
    %28 = arith.divf %26, %27 : vector<512x128xf32>
    %29 = arith.mulf %16, %28 : vector<512x128xf32>
    %30 = arith.truncf %29 : vector<512x128xf32> to vector<512x128xbf16>
    %c2_18 = arith.constant 2 : index
    %c0_19 = arith.constant 0 : index
    %c0_20 = arith.constant 0 : index
    %31 = vector.load %arg3[%c2_18, %c0_19, %c0_20] : memref<4x128x128xbf16, #tpu.memory_space<vmem>>, vector<1x128x128xbf16>
    %32 = vector.shape_cast %31 : vector<1x128x128xbf16> to vector<128x128xbf16>
    %cst_21 = arith.constant dense<0.000000e+00> : vector<512x128xf32>
    %33 = tpu.matmul %30, %32, %cst_21 {dimension_numbers = #tpu.dot_dimension_numbers<[1], [0], [0], [1], [0, 0, 1, 1], [], []>} : vector<512x128xbf16>, vector<128x128xbf16>, vector<512x128xf32> -> vector<512x128xf32>
    %c3 = arith.constant 3 : index
    %c0_22 = arith.constant 0 : index
    %34 = vector.load %arg5[%c3, %c0_22] : memref<8x128xf32, #tpu.memory_space<vmem>>, vector<1x128xf32>
    %35 = vector.broadcast %34 : vector<1x128xf32> to vector<512x128xf32>
    %36 = arith.addf %33, %35 : vector<512x128xf32>
    %cst_23 = arith.constant 0.000000e+00 : f32
    %37 = vector.broadcast %cst_23 : f32 to vector<512x128xf32>
    %38 = arith.maximumf %36, %37 : vector<512x128xf32>
    %39 = arith.truncf %38 : vector<512x128xf32> to vector<512x128xbf16>
    %c3_24 = arith.constant 3 : index
    %c0_25 = arith.constant 0 : index
    %c0_26 = arith.constant 0 : index
    %40 = vector.load %arg3[%c3_24, %c0_25, %c0_26] : memref<4x128x128xbf16, #tpu.memory_space<vmem>>, vector<1x128x128xbf16>
    %41 = vector.shape_cast %40 : vector<1x128x128xbf16> to vector<128x128xbf16>
    %cst_27 = arith.constant dense<0.000000e+00> : vector<512x128xf32>
    %42 = tpu.matmul %39, %41, %cst_27 {dimension_numbers = #tpu.dot_dimension_numbers<[1], [0], [0], [1], [0, 0, 1, 1], [], []>} : vector<512x128xbf16>, vector<128x128xbf16>, vector<512x128xf32> -> vector<512x128xf32>
    %c4 = arith.constant 4 : index
    %c0_28 = arith.constant 0 : index
    %43 = vector.load %arg5[%c4, %c0_28] : memref<8x128xf32, #tpu.memory_space<vmem>>, vector<1x128xf32>
    %44 = vector.broadcast %43 : vector<1x128xf32> to vector<512x128xf32>
    %45 = arith.addf %42, %44 : vector<512x128xf32>
    %cst_29 = arith.constant 0.000000e+00 : f32
    %46 = vector.broadcast %cst_29 : f32 to vector<512x128xf32>
    %47 = arith.maximumf %45, %46 : vector<512x128xf32>
    %c0_30 = arith.constant 0 : index
    %c0_31 = arith.constant 0 : index
    %48 = vector.load %arg4[%c0_30, %c0_31] : memref<1x128xbf16, #tpu.memory_space<vmem>>, vector<1x128xbf16>
    %49 = arith.truncf %47 : vector<512x128xf32> to vector<512x128xbf16>
    %cst_32 = arith.constant dense<0.000000e+00> : vector<1x512xf32>
    %50 = tpu.matmul %48, %49, %cst_32 {dimension_numbers = #tpu.dot_dimension_numbers<[1], [1], [0], [0], [0, 0, 1, 0], [], []>} : vector<1x128xbf16>, vector<512x128xbf16>, vector<1x512xf32> -> vector<1x512xf32>
    %c5 = arith.constant 5 : index
    %c0_33 = arith.constant 0 : index
    %51 = vector.load %arg5[%c5, %c0_33] : memref<8x128xf32, #tpu.memory_space<vmem>>, vector<1x1xf32>
    %52 = vector.broadcast %51 : vector<1x1xf32> to vector<1x512xf32>
    %53 = arith.addf %50, %52 : vector<1x512xf32>
    %54 = arith.negf %53 : vector<1x512xf32>
    %55 = math.exp %54 : vector<1x512xf32>
    %cst_34 = arith.constant 1.000000e+00 : f32
    %56 = vector.broadcast %cst_34 : f32 to vector<1x512xf32>
    %57 = arith.addf %56, %55 : vector<1x512xf32>
    %58 = arith.divf %56, %57 : vector<1x512xf32>
    %c0_35 = arith.constant 0 : index
    %c0_36 = arith.constant 0 : index
    %59 = vector.load %arg6[%c0_35, %c0_36] : memref<1x512xf32, #tpu.memory_space<vmem>>, vector<1x512xf32>
    tpu.vector_store %arg6[%c0_35, %c0_36], %58 {strides = array<i32>} : memref<1x512xf32, #tpu.memory_space<vmem>>, vector<1x512xf32>,
    return
  }
  func.func @transform_0(%arg0: i32) -> (i32, i32) {
    %c0_i32 = arith.constant 0 : i32
    %c0_i32_0 = arith.constant 0 : i32
    return %arg0, %c0_i32 : i32, i32
  }
  func.func @transform_1(%arg0: i32) -> (i32, i32) {
    %c0_i32 = arith.constant 0 : i32
    %c0_i32_0 = arith.constant 0 : i32
    %c0_i32_1 = arith.constant 0 : i32
    return %c0_i32, %c0_i32_0 : i32, i32
  }
  func.func @transform_2(%arg0: i32) -> (i32, i32, i32) {
    %c0_i32 = arith.constant 0 : i32
    %c0_i32_0 = arith.constant 0 : i32
    %c0_i32_1 = arith.constant 0 : i32
    %c0_i32_2 = arith.constant 0 : i32
    return %c0_i32, %c0_i32_0, %c0_i32_1 : i32, i32, i32
  }
  func.func @transform_3(%arg0: i32) -> (i32, i32) {
    %c0_i32 = arith.constant 0 : i32
    %c0_i32_0 = arith.constant 0 : i32
    %c0_i32_1 = arith.constant 0 : i32
    return %c0_i32, %c0_i32_0 : i32, i32
  }
  func.func @transform_4(%arg0: i32) -> (i32, i32) {
    %c0_i32 = arith.constant 0 : i32
    %c0_i32_0 = arith.constant 0 : i32
    %c0_i32_1 = arith.constant 0 : i32
    return %c0_i32, %c0_i32_0 : i32, i32
  }
  func.func @transform_5(%arg0: i32) -> (i32, i32) {
    %c0_i32 = arith.constant 0 : i32
    %c0_i32_0 = arith.constant 0 : i32
    return %c0_i32, %arg0 : i32, i32
  }
}

</mosaic_0001>

<bundles_post_ra>
// kernel: tpu_custom_call.1
= control target key start
LH: loop header
LB: loop body
LE: loop exit
PB: predicated region body
PF: predicated region fallthrough
CT: control target
= control target key end

     0   :  { %vm275_vm0 = vcmask 392192   ;;  %s5457_s0 = inlined_call_operand.vmem [shape: bf16[512,48], index: 0, kind: input, shape index: {}]   ;;  %s5458_s1 = inlined_call_operand.vmem [shape: bf16[48,128], index: 1, kind: input, shape index: {}]   ;;  %s5459_s2 = inlined_call_operand.vmem [shape: bf16[4,128,128], index: 2, kind: input, shape index: {}]   ;;  %s5460_s3 = inlined_call_operand.vmem [shape: bf16[1,128], index: 3, kind: input, shape index: {}]   ;;  %s5461_s4 = inlined_call_operand.vmem [shape: f32[8,128], index: 4, kind: input, shape index: {}]   ;;  %s5462_s5 = inlined_call_operand.hbm [shape: f32[1,512], index: 5, kind: output, shape index: {}]  }
   0x1   :  { %v3966_v0 = vld [vmem:[%s5458_s1] sm:$0xff]   ;;  %v3967_v1 = vld [vmem:[%s5458_s1 + $0x8] sm:$0xff]   ;;  %v3968_v3 = vld [vmem:[%s5458_s1 + $0x10] sm:$0xff]  }
   0x2   :  { %3572 = vmatprep.subr.bf16.mxu0 %v3966_v0  ;;  %v3969_v2 = vld [vmem:[%s5457_s0] sm:$0xff]   ;;  %v3970_v4 = vld [vmem:[%s5457_s0 + $0x8] sm:$0xff]   ;;  %v3971_v5 = vld [vmem:[%s5457_s0 + $0x10] sm:$0xff]  }
   0x3   :  { %3573 = vmatpush3.bf16.msra.mxu0 %v3966_v0  ;;  %3578 = vmatprep.mubr.msk.bf16.mxu0 %vm275_vm0, %v3969_v2  ;;  %v3972_v6 = vld [vmem:[%s5457_s0 + $0x18] sm:$0xff]   ;;  %v3973_v7 = vld [vmem:[%s5457_s0 + $0x20] sm:$0xff]   ;;  %v3974_v8 = vld [vmem:[%s5457_s0 + $0x28] sm:$0xff]  }
   0x4   :  { %3574 = vmatprep.subr.bf16.mxu0 %v3967_v1  ;;  %v3975_v9 = vld [vmem:[%s5457_s0 + $0x30] sm:$0xff]   ;;  %v3976_v10 = vld [vmem:[%s5457_s0 + $0x38] sm:$0xff]   ;;  %v3977_v11 = vld [vmem:[%s5457_s0 + $0x40] sm:$0xff]  }
   0x5   :  { %v4001_v12 = vld [vmem:[%s5459_s2] sm:$0xff]   ;;  %v4002_v13 = vld [vmem:[%s5459_s2 + $0x8] sm:$0xff]   ;;  %v4003_v14 = vld [vmem:[%s5459_s2 + $0x10] sm:$0xff]  }
   0x6   :  { %3642 = vmatprep.subr.bf16.mxu1 %v4001_v12  ;;  %v3978_v15 = vld [vmem:[%s5457_s0 + $0x48] sm:$0xff]   ;;  %v3979_v16 = vld [vmem:[%s5457_s0 + $0x50] sm:$0xff]   ;;  %v4004_v17 = vld [vmem:[%s5459_s2 + $0x18] sm:$0xff]  }
   0x7   :  { %3575 = vmatpush3.bf16.msra.mxu0 %v3967_v1  ;;  %3643 = vmatpush3.bf16.msra.mxu1 %v4001_v12  ;;  %v4005_v18 = vld [vmem:[%s5459_s2 + $0x20] sm:$0xff]   ;;  %v3980_v19 = vld [vmem:[%s5457_s0 + $0x58] sm:$0xff]   ;;  %v4006_v21 = vld [vmem:[%s5459_s2 + $0x28] sm:$0xff]  }
   0x8   :  { %3576 = vmatprep.subr.bf16.mxu0 %v3968_v3  ;;  %3644 = vmatprep.subr.bf16.mxu1 %v4002_v13  ;;  %v3981_v20 = vld [vmem:[%s5457_s0 + $0x60] sm:$0xff]   ;;  %v3982_v22 = vld [vmem:[%s5457_s0 + $0x68] sm:$0xff]  }
   0xb   :  { %3577 = vmatpush3.bf16.msra.mxu0 %v3968_v3  ;;  %3645 = vmatpush3.bf16.msra.mxu1 %v4002_v13 }
   0xc   :  { %3646 = vmatprep.subr.bf16.mxu1 %v4003_v14 }
   0xe   :  { %3579 = vmatmul.mubr.msk.bf16.vlgmr.msra.gmra.mrb[0].mxu0 %vm275_vm0, %v3970_v4 }
   0xf   :  { %3582 = vmatprep.mubr.msk.bf16.mxu0 %vm275_vm0, %v3971_v5  ;;  %3647 = vmatpush3.bf16.msra.mxu1 %v4003_v14 }
  0x10   :  { %3648 = vmatprep.subr.bf16.mxu1 %v4004_v17 }
  0x13   :  { %3649 = vmatpush3.bf16.msra.mxu1 %v4004_v17 }
  0x14   :  { %3650 = vmatprep.subr.bf16.mxu1 %v4005_v18 }
  0x16   :  { %3583 = vmatmul.mubr.msk.bf16.gmra.mrb[4].mxu0 %vm275_vm0, %v3972_v6 }
  0x17   :  { %3586 = vmatprep.mubr.msk.bf16.mxu0 %vm275_vm0, %v3973_v7  ;;  %3651 = vmatpush3.bf16.msra.mxu1 %v4005_v18 }
  0x18   :  { %3652 = vmatprep.subr.bf16.mxu1 %v4006_v21 }
  0x1b   :  { %3653 = vmatpush3.bf16.msra.mxu1 %v4006_v21 }
  0x1e   :  { %3587 = vmatmul.mubr.msk.bf16.gmra.mrb[8].mxu0 %vm275_vm0, %v3974_v8 }
  0x1f   :  { %3590 = vmatprep.mubr.msk.bf16.mxu0 %vm275_vm0, %v3975_v9 }
  0x26   :  { %3591 = vmatmul.mubr.msk.bf16.gmra.mrb[12].mxu0 %vm275_vm0, %v3976_v10 }
  0x27   :  { %3594 = vmatprep.mubr.msk.bf16.mxu0 %vm275_vm0, %v3977_v11 }
  0x2e   :  { %3595 = vmatmul.mubr.msk.bf16.gmra.mrb[16].mxu0 %vm275_vm0, %v3978_v15 }
  0x2f   :  { %3598 = vmatprep.mubr.msk.bf16.mxu0 %vm275_vm0, %v3979_v16 }
  0x36   :  { %3599 = vmatmul.mubr.msk.bf16.gmra.mrb[20].mxu0 %vm275_vm0, %v3980_v19 }
  0x37   :  { %3602 = vmatprep.mubr.msk.bf16.mxu0 %vm275_vm0, %v3981_v20 }
  0x38   :  { %10 = vsyncpa [#allocation3], 0  ;;  %v3983_v23 = vld [vmem:[%s5457_s0 + $0x70] sm:$0xff]   ;;  %v3984_v24 = vld [vmem:[%s5457_s0 + $0x78] sm:$0xff]  }
  0x39   :  { %v3985_v25 = vld [vmem:[%s5457_s0 + $0x80] sm:$0xff]   ;;  %v3986_v26 = vld [vmem:[%s5457_s0 + $0x88] sm:$0xff]   ;;  %v3987_v27 = vld [vmem:[%s5457_s0 + $0x90] sm:$0xff]  }
  0x3a   :  { %v3988_v28 = vld [vmem:[%s5457_s0 + $0x98] sm:$0xff]   ;;  %v3989_v29 = vld [vmem:[%s5457_s0 + $0xa0] sm:$0xff]   ;;  %v3990_v30 = vld [vmem:[%s5457_s0 + $0xa8] sm:$0xff]  }
  0x3b   :  { %v3991_v31 = vld [vmem:[%s5457_s0 + $0xb0] sm:$0xff]   ;;  %v3992_v32 = vld [vmem:[%s5457_s0 + $0xb8] sm:$0xff]   ;;  %v3993_v34 = vld [vmem:[%s5457_s0 + $0xc0] sm:$0xff]  }
  0x3c   :  { %v4007_v33 = vld [vmem:[%s5459_s2 + $0x30] sm:$0xff]   ;;  %v4008_v35 = vld [vmem:[%s5459_s2 + $0x38] sm:$0xff]   ;;  %v3994_v36 = vld [vmem:[%s5457_s0 + $0xc8] sm:$0xff]  }
  0x3d   :  { %3654 = vmatprep.subr.bf16.mxu1 %v4007_v33  ;;  %v3995_v37 = vld [vmem:[%s5457_s0 + $0xd0] sm:$0xff]   ;;  %v3996_v38 = vld [vmem:[%s5457_s0 + $0xd8] sm:$0xff]   ;;  %v3997_v39 = vld [vmem:[%s5457_s0 + $0xe0] sm:$0xff]  }
  0x3e   :  { %3603 = vmatmul.mubr.msk.bf16.gmra.mrb[24].mxu0 %vm275_vm0, %v3982_v22  ;;  %3655 = vmatpush3.bf16.msra.mxu1 %v4007_v33  ;;  %v3998_v40 = vld [vmem:[%s5457_s0 + $0xe8] sm:$0xff]   ;;  %v3999_v41 = vld [vmem:[%s5457_s0 + $0xf0] sm:$0xff]   ;;  %v4000_v42 = vld [vmem:[%s5457_s0 + $0xf8] sm:$0xff]  }
  0x3f   :  { %3606 = vmatprep.mubr.msk.bf16.mxu0 %vm275_vm0, %v3983_v23  ;;  %3656 = vmatprep.subr.bf16.mxu1 %v4008_v35  ;;  %v4527_v43 = vld [vmem:[%s5461_s4] ss:$0 sm:$0xff]  ;;  %v4010_v52 = vld [vmem:[%s5459_s2 + $0x48] sm:$0xff]   ;;  %v4011_v59 = vld [vmem:[%s5459_s2 + $0x50] sm:$0xff]  }
  0x40   :  { %v4009_v51 = vld [vmem:[%s5459_s2 + $0x40] sm:$0xff]   ;;  %v4012_v4 = vld [vmem:[%s5459_s2 + $0x58] sm:$0xff]   ;;  %v4014_v20 = vld [vmem:[%s5459_s2 + $0x68] sm:$0xff]  }
  0x41   :  { %3722 = vmatprep.subr.bf16.mxu0 %v4009_v51  ;;  %v4013_v11 = vld [vmem:[%s5459_s2 + $0x60] sm:$0xff]  }
  0x42   :  { %3657 = vmatpush3.bf16.msra.mxu1 %v4008_v35  ;;  %3723 = vmatpush3.bf16.msra.mxu0 %v4009_v51 }
  0x43   :  { %3724 = vmatprep.subr.bf16.mxu0 %v4010_v52 }
  0x46   :  { %3607 = vmatmul.mubr.msk.bf16.gmra.mrb[28].mxu0 %vm275_vm0, %v3984_v24 }
  0x47   :  { %3610 = vmatprep.mubr.msk.bf16.mxu0 %vm275_vm0, %v3985_v25  ;;  %3725 = vmatpush3.bf16.msra.mxu0 %v4010_v52 }
  0x48   :  { %3726 = vmatprep.subr.bf16.mxu0 %v4011_v59 }
  0x4b   :  { %3727 = vmatpush3.bf16.msra.mxu0 %v4011_v59 }
  0x4c   :  { %3728 = vmatprep.subr.bf16.mxu0 %v4012_v4 }
  0x4e   :  { %3611 = vmatmul.mubr.msk.bf16.gmra.mrb[32].mxu0 %vm275_vm0, %v3986_v26 }
  0x4f   :  { %3614 = vmatprep.mubr.msk.bf16.mxu0 %vm275_vm0, %v3987_v27  ;;  %3729 = vmatpush3.bf16.msra.mxu0 %v4012_v4 }
  0x50   :  { %3730 = vmatprep.subr.bf16.mxu0 %v4013_v11 }
  0x53   :  { %3731 = vmatpush3.bf16.msra.mxu0 %v4013_v11 }
  0x54   :  { %3732 = vmatprep.subr.bf16.mxu0 %v4014_v20 }
  0x56   :  { %3615 = vmatmul.mubr.msk.bf16.gmra.mrb[36].mxu0 %vm275_vm0, %v3988_v28 }
  0x57   :  { %3618 = vmatprep.mubr.msk.bf16.mxu0 %vm275_vm0, %v3989_v29  ;;  %3733 = vmatpush3.bf16.msra.mxu0 %v4014_v20 }
  0x5e   :  { %3619 = vmatmul.mubr.msk.bf16.gmra.mrb[40].mxu0 %vm275_vm0, %v3990_v30 }
  0x5f   :  { %3622 = vmatprep.mubr.msk.bf16.mxu0 %vm275_vm0, %v3991_v31 }
  0x66   :  { %3623 = vmatmul.mubr.msk.bf16.gmra.mrb[44].mxu0 %vm275_vm0, %v3992_v32 }
  0x67   :  { %3626 = vmatprep.mubr.msk.bf16.mxu0 %vm275_vm0, %v3993_v34 }
  0x6e   :  { %3627 = vmatmul.mubr.msk.bf16.gmra.mrb[48].mxu0 %vm275_vm0, %v3994_v36 }
  0x6f   :  { %3630 = vmatprep.mubr.msk.bf16.mxu0 %vm275_vm0, %v3995_v37 }
  0x76   :  { %3631 = vmatmul.mubr.msk.bf16.gmra.mrb[52].mxu0 %vm275_vm0, %v3996_v38 }
  0x77   :  { %3634 = vmatprep.mubr.msk.bf16.mxu0 %vm275_vm0, %v3997_v39 }
  0x7e   :  { %3635 = vmatmul.mubr.msk.bf16.gmra.mrb[56].mxu0 %vm275_vm0, %v3998_v40 }
  0x7f   :  { %3638 = vmatprep.mubr.msk.bf16.mxu0 %vm275_vm0, %v3999_v41 }
  0x86   :  { %3639 = vmatmul.mubr.msk.bf16.gmra.mrb[60].mxu0 %vm275_vm0, %v4000_v42 }
  0xe1   :  { %v3580_v44 = vpop.f32.mrb[0].mxu0 }
  0xe2   :  { %v415_v45 = vadd.f32 %v3580_v44, %v4527_v43  ;;  %v406_v46 = vpop.f32.mrb[1].mxu0 }
  0xe3   :  { %v407_v47 = vadd.f32 %v4527_v43, %v406_v46  ;;  %v3581_v48 = vpop.f32.mrb[2].mxu0 }
  0xe4   :  { %v418_v49 = vadd.f32 %v3581_v48, %v4527_v43  ;;  %v409_v50 = vpop.f32.mrb[3].mxu0  ;;  %v663_v54 = vmax.f32 %v415_v45, 0.0 }
  0xe5   :  { %v410_v53 = vadd.f32 %v4527_v43, %v409_v50  ;;  %v661_v56 = vmax.f32 %v407_v47, 0.0 }
  0xe6   :  { %v664_v55 = vmax.f32 %v418_v49, 0.0 }
  0xe7   :  { %v662_v57 = vmax.f32 %v410_v53, 0.0 }
  0xe8   :  { %v726_v58 = vpack.c.bf16 %v664_v55, %v663_v54 }
  0xe9   :  { %v3584_v60 = vpop.f32.mrb[4].mxu0  ;;  %v725_v61 = vpack.c.bf16 %v662_v57, %v661_v56 }
  0xea   :  { %v431_v62 = vadd.f32 %v3584_v60, %v4527_v43  ;;  %v422_v63 = vpop.f32.mrb[5].mxu0 }
  0xeb   :  { %v423_v0 = vadd.f32 %v4527_v43, %v422_v63  ;;  %v3585_v1 = vpop.f32.mrb[6].mxu0  ;;  %3658 = vmatprep.mubr.bf16.mxu1 %v725_v61 }
  0xec   :  { %v434_v2 = vadd.f32 %v3585_v1, %v4527_v43  ;;  %v425_v3 = vpop.f32.mrb[7].mxu0  ;;  %3659 = vmatmul.mubr.bf16.vlgmr.msra.gmra.mrb[0].mxu1 %v726_v58  ;;  %v667_v6 = vmax.f32 %v431_v62, 0.0 }
  0xed   :  { %v426_v5 = vadd.f32 %v4527_v43, %v425_v3  ;;  %v665_v8 = vmax.f32 %v423_v0, 0.0 }
  0xee   :  { %v668_v7 = vmax.f32 %v434_v2, 0.0 }
  0xef   :  { %v666_v9 = vmax.f32 %v426_v5, 0.0 }
  0xf0   :  { %v728_v10 = vpack.c.bf16 %v668_v7, %v667_v6 }
  0xf1   :  { %v727_v12 = vpack.c.bf16 %v666_v9, %v665_v8  ;;  %v3588_v13 = vpop.f32.mrb[8].mxu0 }
  0xf2   :  { %v447_v14 = vadd.f32 %v3588_v13, %v4527_v43  ;;  %v438_v15 = vpop.f32.mrb[9].mxu0 }
  0xf3   :  { %v439_v16 = vadd.f32 %v4527_v43, %v438_v15  ;;  %v3589_v17 = vpop.f32.mrb[10].mxu0  ;;  %3662 = vmatprep.mubr.bf16.mxu1 %v727_v12 }
  0xf4   :  { %v450_v18 = vadd.f32 %v3589_v17, %v4527_v43  ;;  %v441_v19 = vpop.f32.mrb[11].mxu0  ;;  %3663 = vmatmul.mubr.bf16.gmra.mrb[4].mxu1 %v728_v10  ;;  %v671_v22 = vmax.f32 %v447_v14, 0.0 }
  0xf5   :  { %v442_v21 = vadd.f32 %v4527_v43, %v441_v19  ;;  %v669_v24 = vmax.f32 %v439_v16, 0.0 }
  0xf6   :  { %v672_v23 = vmax.f32 %v450_v18, 0.0 }
  0xf7   :  { %v670_v25 = vmax.f32 %v442_v21, 0.0 }
  0xf8   :  { %v730_v26 = vpack.c.bf16 %v672_v23, %v671_v22 }
  0xf9   :  { %v729_v27 = vpack.c.bf16 %v670_v25, %v669_v24  ;;  %v3592_v28 = vpop.f32.mrb[12].mxu0 }
  0xfa   :  { %v463_v29 = vadd.f32 %v3592_v28, %v4527_v43  ;;  %v454_v30 = vpop.f32.mrb[13].mxu0 }
  0xfb   :  { %v455_v31 = vadd.f32 %v4527_v43, %v454_v30  ;;  %v3593_v32 = vpop.f32.mrb[14].mxu0  ;;  %3666 = vmatprep.mubr.bf16.mxu1 %v729_v27 }
  0xfc   :  { %v466_v33 = vadd.f32 %v3593_v32, %v4527_v43  ;;  %v457_v34 = vpop.f32.mrb[15].mxu0  ;;  %3667 = vmatmul.mubr.bf16.gmra.mrb[8].mxu1 %v730_v26  ;;  %v675_v36 = vmax.f32 %v463_v29, 0.0 }
  0xfd   :  { %v458_v35 = vadd.f32 %v4527_v43, %v457_v34  ;;  %v673_v38 = vmax.f32 %v455_v31, 0.0 }
  0xfe   :  { %v676_v37 = vmax.f32 %v466_v33, 0.0 }
  0xff   :  { %v674_v39 = vmax.f32 %v458_v35, 0.0 }
 0x100   :  { %v732_v40 = vpack.c.bf16 %v676_v37, %v675_v36 }
 0x101   :  { %v731_v41 = vpack.c.bf16 %v674_v39, %v673_v38  ;;  %v3596_v42 = vpop.f32.mrb[16].mxu0 }
 0x102   :  { %v479_v44 = vadd.f32 %v3596_v42, %v4527_v43  ;;  %v470_v45 = vpop.f32.mrb[17].mxu0 }
 0x103   :  { %v471_v46 = vadd.f32 %v4527_v43, %v470_v45  ;;  %v3597_v47 = vpop.f32.mrb[18].mxu0  ;;  %3670 = vmatprep.mubr.bf16.mxu1 %v731_v41 }
 0x104   :  { %v482_v48 = vadd.f32 %v3597_v47, %v4527_v43  ;;  %v473_v49 = vpop.f32.mrb[19].mxu0  ;;  %3671 = vmatmul.mubr.bf16.gmra.mrb[12].mxu1 %v732_v40  ;;  %v679_v51 = vmax.f32 %v479_v44, 0.0 }
 0x105   :  { %v474_v50 = vadd.f32 %v4527_v43, %v473_v49  ;;  %v677_v53 = vmax.f32 %v471_v46, 0.0 }
 0x106   :  { %v680_v52 = vmax.f32 %v482_v48, 0.0 }
 0x107   :  { %v678_v54 = vmax.f32 %v474_v50, 0.0 }
 0x108   :  { %v734_v55 = vpack.c.bf16 %v680_v52, %v679_v51 }
 0x109   :  { %v733_v56 = vpack.c.bf16 %v678_v54, %v677_v53  ;;  %v3600_v57 = vpop.f32.mrb[20].mxu0 }
 0x10a   :  { %v495_v58 = vadd.f32 %v3600_v57, %v4527_v43  ;;  %v486_v59 = vpop.f32.mrb[21].mxu0 }
 0x10b   :  { %v487_v60 = vadd.f32 %v4527_v43, %v486_v59  ;;  %v3601_v61 = vpop.f32.mrb[22].mxu0  ;;  %3674 = vmatprep.mubr.bf16.mxu1 %v733_v56 }
 0x10c   :  { %v498_v62 = vadd.f32 %v3601_v61, %v4527_v43  ;;  %v489_v63 = vpop.f32.mrb[23].mxu0  ;;  %3675 = vmatmul.mubr.bf16.gmra.mrb[16].mxu1 %v734_v55  ;;  %v683_v1 = vmax.f32 %v495_v58, 0.0 }
 0x10d   :  { %v490_v0 = vadd.f32 %v4527_v43, %v489_v63  ;;  %v681_v3 = vmax.f32 %v487_v60, 0.0 }
 0x10e   :  { %v684_v2 = vmax.f32 %v498_v62, 0.0 }
 0x10f   :  { %v682_v4 = vmax.f32 %v490_v0, 0.0 }
 0x110   :  { %v736_v5 = vpack.c.bf16 %v684_v2, %v683_v1 }
 0x111   :  { %v735_v6 = vpack.c.bf16 %v682_v4, %v681_v3  ;;  %v3604_v7 = vpop.f32.mrb[24].mxu0 }
 0x112   :  { %v511_v8 = vadd.f32 %v3604_v7, %v4527_v43  ;;  %v502_v9 = vpop.f32.mrb[25].mxu0 }
 0x113   :  { %v503_v10 = vadd.f32 %v4527_v43, %v502_v9  ;;  %v3605_v11 = vpop.f32.mrb[26].mxu0  ;;  %3678 = vmatprep.mubr.bf16.mxu1 %v735_v6 }
 0x114   :  { %v514_v12 = vadd.f32 %v3605_v11, %v4527_v43  ;;  %v505_v13 = vpop.f32.mrb[27].mxu0  ;;  %3679 = vmatmul.mubr.bf16.gmra.mrb[20].mxu1 %v736_v5  ;;  %v687_v15 = vmax.f32 %v511_v8, 0.0 }
 0x115   :  { %v506_v14 = vadd.f32 %v4527_v43, %v505_v13  ;;  %v685_v17 = vmax.f32 %v503_v10, 0.0 }
 0x116   :  { %v688_v16 = vmax.f32 %v514_v12, 0.0 }
 0x117   :  { %v686_v18 = vmax.f32 %v506_v14, 0.0 }
 0x118   :  { %v738_v19 = vpack.c.bf16 %v688_v16, %v687_v15 }
 0x119   :  { %v737_v20 = vpack.c.bf16 %v686_v18, %v685_v17  ;;  %v3608_v21 = vpop.f32.mrb[28].mxu0 }
 0x11a   :  { %v527_v22 = vadd.f32 %v3608_v21, %v4527_v43  ;;  %v518_v23 = vpop.f32.mrb[29].mxu0 }
 0x11b   :  { %v519_v24 = vadd.f32 %v4527_v43, %v518_v23  ;;  %v3609_v25 = vpop.f32.mrb[30].mxu0  ;;  %3682 = vmatprep.mubr.bf16.mxu1 %v737_v20 }
 0x11c   :  { %v530_v26 = vadd.f32 %v3609_v25, %v4527_v43  ;;  %v521_v27 = vpop.f32.mrb[31].mxu0  ;;  %3683 = vmatmul.mubr.bf16.gmra.mrb[24].mxu1 %v738_v19  ;;  %v691_v29 = vmax.f32 %v527_v22, 0.0 }
 0x11d   :  { %v522_v28 = vadd.f32 %v4527_v43, %v521_v27  ;;  %v689_v31 = vmax.f32 %v519_v24, 0.0  ;;  %v4015_v27 = vld [vmem:[%s5459_s2 + $0x70] sm:$0xff]  }
 0x11e   :  { %v692_v30 = vmax.f32 %v530_v26, 0.0  ;;  %3734 = vmatprep.subr.bf16.mxu0 %v4015_v27 }
 0x11f   :  { %v690_v32 = vmax.f32 %v522_v28, 0.0  ;;  %3735 = vmatpush3.bf16.msra.mxu0 %v4015_v27 }
 0x120   :  { %v740_v33 = vpack.c.bf16 %v692_v30, %v691_v29 }
 0x121   :  { %v739_v34 = vpack.c.bf16 %v690_v32, %v689_v31  ;;  %v3612_v35 = vpop.f32.mrb[32].mxu0 }
 0x122   :  { %v543_v36 = vadd.f32 %v3612_v35, %v4527_v43  ;;  %v534_v37 = vpop.f32.mrb[33].mxu0 }
 0x123   :  { %v535_v38 = vadd.f32 %v4527_v43, %v534_v37  ;;  %v3613_v39 = vpop.f32.mrb[34].mxu0  ;;  %3686 = vmatprep.mubr.bf16.mxu1 %v739_v34 }
 0x124   :  { %v546_v40 = vadd.f32 %v3613_v39, %v4527_v43  ;;  %v537_v41 = vpop.f32.mrb[35].mxu0  ;;  %3687 = vmatmul.mubr.bf16.gmra.mrb[28].mxu1 %v740_v33  ;;  %v695_v44 = vmax.f32 %v543_v36, 0.0  ;;  %v4016_v36 = vld [vmem:[%s5459_s2 + $0x78] sm:$0xff]  }
 0x125   :  { %v538_v42 = vadd.f32 %v4527_v43, %v537_v41  ;;  %v693_v46 = vmax.f32 %v535_v38, 0.0  ;;  %3736 = vmatprep.subr.bf16.mxu0 %v4016_v36 }
 0x126   :  { %v696_v45 = vmax.f32 %v546_v40, 0.0  ;;  %3737 = vmatpush3.bf16.msra.mxu0 %v4016_v36 }
 0x127   :  { %v694_v47 = vmax.f32 %v538_v42, 0.0 }
 0x128   :  { %v742_v48 = vpack.c.bf16 %v696_v45, %v695_v44 }
 0x129   :  { %v741_v49 = vpack.c.bf16 %v694_v47, %v693_v46  ;;  %v3616_v50 = vpop.f32.mrb[36].mxu0 }
 0x12a   :  { %v559_v51 = vadd.f32 %v3616_v50, %v4527_v43  ;;  %v550_v52 = vpop.f32.mrb[37].mxu0 }
 0x12b   :  { %v551_v53 = vadd.f32 %v4527_v43, %v550_v52  ;;  %v3617_v54 = vpop.f32.mrb[38].mxu0  ;;  %3690 = vmatprep.mubr.bf16.mxu1 %v741_v49 }
 0x12c   :  { %v562_v55 = vadd.f32 %v3617_v54, %v4527_v43  ;;  %v553_v56 = vpop.f32.mrb[39].mxu0  ;;  %3691 = vmatmul.mubr.bf16.gmra.mrb[32].mxu1 %v742_v48  ;;  %v699_v58 = vmax.f32 %v559_v51, 0.0 }
 0x12d   :  { %v554_v57 = vadd.f32 %v4527_v43, %v553_v56  ;;  %v697_v60 = vmax.f32 %v551_v53, 0.0 }
 0x12e   :  { %v700_v59 = vmax.f32 %v562_v55, 0.0 }
 0x12f   :  { %v698_v61 = vmax.f32 %v554_v57, 0.0 }
 0x130   :  { %v744_v62 = vpack.c.bf16 %v700_v59, %v699_v58 }
 0x131   :  { %v743_v63 = vpack.c.bf16 %v698_v61, %v697_v60  ;;  %v3620_v0 = vpop.f32.mrb[40].mxu0 }
 0x132   :  { %v575_v1 = vadd.f32 %v3620_v0, %v4527_v43  ;;  %v566_v2 = vpop.f32.mrb[41].mxu0 }
 0x133   :  { %v567_v3 = vadd.f32 %v4527_v43, %v566_v2  ;;  %v3621_v4 = vpop.f32.mrb[42].mxu0  ;;  %3694 = vmatprep.mubr.bf16.mxu1 %v743_v63 }
 0x134   :  { %v578_v5 = vadd.f32 %v3621_v4, %v4527_v43  ;;  %v569_v6 = vpop.f32.mrb[43].mxu0  ;;  %3695 = vmatmul.mubr.bf16.gmra.mrb[36].mxu1 %v744_v62  ;;  %v703_v8 = vmax.f32 %v575_v1, 0.0 }
 0x135   :  { %v570_v7 = vadd.f32 %v4527_v43, %v569_v6  ;;  %v701_v10 = vmax.f32 %v567_v3, 0.0 }
 0x136   :  { %v704_v9 = vmax.f32 %v578_v5, 0.0 }
 0x137   :  { %v702_v11 = vmax.f32 %v570_v7, 0.0 }
 0x138   :  { %v746_v12 = vpack.c.bf16 %v704_v9, %v703_v8 }
 0x139   :  { %v745_v13 = vpack.c.bf16 %v702_v11, %v701_v10  ;;  %v3624_v14 = vpop.f32.mrb[44].mxu0 }
 0x13a   :  { %v591_v15 = vadd.f32 %v3624_v14, %v4527_v43  ;;  %v582_v16 = vpop.f32.mrb[45].mxu0 }
 0x13b   :  { %v583_v17 = vadd.f32 %v4527_v43, %v582_v16  ;;  %v3625_v18 = vpop.f32.mrb[46].mxu0  ;;  %3698 = vmatprep.mubr.bf16.mxu1 %v745_v13 }
 0x13c   :  { %v594_v19 = vadd.f32 %v3625_v18, %v4527_v43  ;;  %v585_v20 = vpop.f32.mrb[47].mxu0  ;;  %3699 = vmatmul.mubr.bf16.gmra.mrb[40].mxu1 %v746_v12  ;;  %v707_v22 = vmax.f32 %v591_v15, 0.0 }
 0x13d   :  { %v586_v21 = vadd.f32 %v4527_v43, %v585_v20  ;;  %v705_v24 = vmax.f32 %v583_v17, 0.0 }
 0x13e   :  { %v708_v23 = vmax.f32 %v594_v19, 0.0 }
 0x13f   :  { %v706_v25 = vmax.f32 %v586_v21, 0.0 }
 0x140   :  { %v748_v26 = vpack.c.bf16 %v708_v23, %v707_v22  ;;  %v4620_v23 = vld [vmem:[%s5461_s4 + $0x1] ss:$0 sm:$0xff] }
 0x141   :  { %v747_v28 = vpack.c.bf16 %v706_v25, %v705_v24  ;;  %v3628_v29 = vpop.f32.mrb[48].mxu0 }
 0x142   :  { %v607_v30 = vadd.f32 %v3628_v29, %v4527_v43  ;;  %v598_v31 = vpop.f32.mrb[49].mxu0 }
 0x143   :  { %v599_v32 = vadd.f32 %v4527_v43, %v598_v31  ;;  %v3629_v33 = vpop.f32.mrb[50].mxu0  ;;  %3702 = vmatprep.mubr.bf16.mxu1 %v747_v28  ;;  %v4018_v31 = vld [vmem:[%s5459_s2 + $0x88] sm:$0xff]  }
 0x144   :  { %v610_v34 = vadd.f32 %v3629_v33, %v4527_v43  ;;  %v601_v35 = vpop.f32.mrb[51].mxu0  ;;  %3703 = vmatmul.mubr.bf16.gmra.mrb[44].mxu1 %v748_v26  ;;  %v711_v38 = vmax.f32 %v607_v30, 0.0  ;;  %v4017_v30 = vld [vmem:[%s5459_s2 + $0x80] sm:$0xff]  }
 0x145   :  { %v602_v37 = vadd.f32 %v4527_v43, %v601_v35  ;;  %v709_v40 = vmax.f32 %v599_v32, 0.0  ;;  %3802 = vmatprep.subr.bf16.mxu1 %v4017_v30 }
 0x146   :  { %v712_v39 = vmax.f32 %v610_v34, 0.0  ;;  %3803 = vmatpush3.bf16.msra.mxu1 %v4017_v30 }
 0x147   :  { %v710_v41 = vmax.f32 %v602_v37, 0.0  ;;  %3804 = vmatprep.subr.bf16.mxu1 %v4018_v31 }
 0x148   :  { %v750_v42 = vpack.c.bf16 %v712_v39, %v711_v38 }
 0x149   :  { %v749_v44 = vpack.c.bf16 %v710_v41, %v709_v40  ;;  %v3632_v45 = vpop.f32.mrb[52].mxu0 }
 0x14a   :  { %v623_v46 = vadd.f32 %v3632_v45, %v4527_v43  ;;  %v614_v47 = vpop.f32.mrb[53].mxu0  ;;  %3805 = vmatpush3.bf16.msra.mxu1 %v4018_v31 }
 0x14b   :  { %v615_v48 = vadd.f32 %v4527_v43, %v614_v47  ;;  %v3633_v49 = vpop.f32.mrb[54].mxu0  ;;  %3706 = vmatprep.mubr.bf16.mxu1 %v749_v44 }
 0x14c   :  { %v715_v50 = vmax.f32 %v623_v46, 0.0  ;;  %v626_v51 = vadd.f32 %v3633_v49, %v4527_v43  ;;  %v617_v52 = vpop.f32.mrb[55].mxu0  ;;  %3707 = vmatmul.mubr.bf16.gmra.mrb[48].mxu1 %v750_v42 }
 0x14d   :  { %v713_v53 = vmax.f32 %v615_v48, 0.0  ;;  %v618_v54 = vadd.f32 %v4527_v43, %v617_v52 }
 0x14e   :  { %v716_v55 = vmax.f32 %v626_v51, 0.0 }
 0x14f   :  { %v714_v56 = vmax.f32 %v618_v54, 0.0 }
 0x150   :  { %v752_v57 = vpack.c.bf16 %v716_v55, %v715_v50 }
 0x151   :  { %v751_v58 = vpack.c.bf16 %v714_v56, %v713_v53  ;;  %v3636_v59 = vpop.f32.mrb[56].mxu0 }
 0x152   :  { %v639_v60 = vadd.f32 %v3636_v59, %v4527_v43  ;;  %v630_v61 = vpop.f32.mrb[57].mxu0 }
 0x153   :  { %v631_v62 = vadd.f32 %v4527_v43, %v630_v61  ;;  %v3637_v63 = vpop.f32.mrb[58].mxu0  ;;  %3710 = vmatprep.mubr.bf16.mxu1 %v751_v58 }
 0x154   :  { %v719_v0 = vmax.f32 %v639_v60, 0.0  ;;  %v642_v1 = vadd.f32 %v3637_v63, %v4527_v43  ;;  %v633_v2 = vpop.f32.mrb[59].mxu0  ;;  %3711 = vmatmul.mubr.bf16.gmra.mrb[52].mxu1 %v752_v57 }
 0x155   :  { %v717_v3 = vmax.f32 %v631_v62, 0.0  ;;  %v634_v4 = vadd.f32 %v4527_v43, %v633_v2 }
 0x156   :  { %v720_v5 = vmax.f32 %v642_v1, 0.0 }
 0x157   :  { %v718_v6 = vmax.f32 %v634_v4, 0.0 }
 0x158   :  { %v754_v7 = vpack.c.bf16 %v720_v5, %v719_v0 }
 0x159   :  { %v753_v8 = vpack.c.bf16 %v718_v6, %v717_v3  ;;  %v3640_v9 = vpop.f32.mrb[60].mxu0 }
 0x15a   :  { %v655_v10 = vadd.f32 %v3640_v9, %v4527_v43  ;;  %v646_v11 = vpop.f32.mrb[61].mxu0 }
 0x15b   :  { %v647_v12 = vadd.f32 %v4527_v43, %v646_v11  ;;  %v3641_v13 = vpop.f32.mrb[62].mxu0  ;;  %3714 = vmatprep.mubr.bf16.mxu1 %v753_v8 }
 0x15c   :  { %v723_v14 = vmax.f32 %v655_v10, 0.0  ;;  %v658_v15 = vadd.f32 %v3641_v13, %v4527_v43  ;;  %v649_v16 = vpop.f32.mrb[63].mxu0  ;;  %3715 = vmatmul.mubr.bf16.gmra.mrb[56].mxu1 %v754_v7 }
 0x15d   :  { %v721_v17 = vmax.f32 %v647_v12, 0.0  ;;  %v650_v18 = vadd.f32 %v4527_v43, %v649_v16 }
 0x15e   :  { %v724_v19 = vmax.f32 %v658_v15, 0.0 }
 0x15f   :  { %v722_v20 = vmax.f32 %v650_v18, 0.0 }
 0x160   :  { %v756_v21 = vpack.c.bf16 %v724_v19, %v723_v14 }
 0x161   :  { %v755_v22 = vpack.c.bf16 %v722_v20, %v721_v17 }
 0x163   :  { %3718 = vmatprep.mubr.bf16.mxu1 %v755_v22 }
 0x164   :  { %3719 = vmatmul.mubr.bf16.gmra.mrb[60].mxu1 %v756_v21 }
 0x1bf   :  { %v3660_v24 = vpop.f32.mrb[0].mxu1 }
 0x1c0   :  { %v860_v25 = vpop.f32.mrb[1].mxu1  ;;  %v4626_v28 = vadd.f32 %v3660_v24, %v4620_v23 }
 0x1c1   :  { %v4623_v26 = vadd.f32 %v4620_v23, %v860_v25  ;;  %v3661_v27 = vpop.f32.mrb[2].mxu1 }
 0x1c2   :  { %v4629_v43 = vadd.f32 %v3661_v27, %v4620_v23  ;;  %v863_v29 = vpop.f32.mrb[3].mxu1  ;;  %v5510_v36 = vmax.f32 %v4626_v28, 0.0 }
 0x1c3   :  { %v4638_v32 = vadd.f32 %v4620_v23, %v863_v29  ;;  %v5504_v34 = vmax.f32 %v4623_v26, 0.0 }
 0x1c4   :  { %v5509_v33 = vmax.f32 %v4629_v43, 0.0 }
 0x1c5   :  { %v5503_v35 = vmax.f32 %v4638_v32, 0.0 }
 0x1c6   :  { %v1180_v39 = vpack.c.bf16 %v5509_v33, %v5510_v36  ;;  %v4019_v33 = vld [vmem:[%s5459_s2 + $0x90] sm:$0xff]  }
 0x1c7   :  { %v1179_v37 = vpack.c.bf16 %v5503_v35, %v5504_v34  ;;  %v3664_v38 = vpop.f32.mrb[4].mxu1  ;;  %3806 = vmatprep.subr.bf16.mxu1 %v4019_v33 }
 0x1c8   :  { %v876_v40 = vpop.f32.mrb[5].mxu1  ;;  %v4656_v44 = vadd.f32 %v3664_v38, %v4620_v23  ;;  %3807 = vmatpush3.bf16.msra.mxu1 %v4019_v33 }
 0x1c9   :  { %v4653_v41 = vadd.f32 %v4620_v23, %v876_v40  ;;  %v3665_v42 = vpop.f32.mrb[6].mxu1  ;;  %3738 = vmatprep.mubr.bf16.mxu0 %v1179_v37 }
 0x1ca   :  { %v4659_v45 = vadd.f32 %v3665_v42, %v4620_v23  ;;  %v879_v46 = vpop.f32.mrb[7].mxu1  ;;  %3739 = vmatmul.mubr.bf16.vlgmr.msra.gmra.mrb[64].mxu0 %v1180_v39  ;;  %v5502_v51 = vmax.f32 %v4656_v44, 0.0 }
 0x1cb   :  { %v4662_v47 = vadd.f32 %v4620_v23, %v879_v46  ;;  %v5496_v49 = vmax.f32 %v4653_v41, 0.0 }
 0x1cc   :  { %v5501_v48 = vmax.f32 %v4659_v45, 0.0 }
 0x1cd   :  { %v5495_v50 = vmax.f32 %v4662_v47, 0.0 }
 0x1ce   :  { %v1182_v54 = vpack.c.bf16 %v5501_v48, %v5502_v51 }
 0x1cf   :  { %v1181_v52 = vpack.c.bf16 %v5495_v50, %v5496_v49  ;;  %v3668_v53 = vpop.f32.mrb[8].mxu1 }
 0x1d0   :  { %v892_v55 = vpop.f32.mrb[9].mxu1  ;;  %v4680_v58 = vadd.f32 %v3668_v53, %v4620_v23 }
 0x1d1   :  { %v4677_v56 = vadd.f32 %v4620_v23, %v892_v55  ;;  %v3669_v57 = vpop.f32.mrb[10].mxu1  ;;  %3742 = vmatprep.mubr.bf16.mxu0 %v1181_v52 }
 0x1d2   :  { %v4683_v59 = vadd.f32 %v3669_v57, %v4620_v23  ;;  %v895_v60 = vpop.f32.mrb[11].mxu1  ;;  %3743 = vmatmul.mubr.bf16.gmra.mrb[68].mxu0 %v1182_v54  ;;  %v5494_v1 = vmax.f32 %v4680_v58, 0.0 }
 0x1d3   :  { %v4686_v61 = vadd.f32 %v4620_v23, %v895_v60  ;;  %v5488_v63 = vmax.f32 %v4677_v56, 0.0 }
 0x1d4   :  { %v5493_v62 = vmax.f32 %v4683_v59, 0.0 }
 0x1d5   :  { %v5487_v0 = vmax.f32 %v4686_v61, 0.0 }
 0x1d6   :  { %v1184_v4 = vpack.c.bf16 %v5493_v62, %v5494_v1 }
 0x1d7   :  { %v1183_v2 = vpack.c.bf16 %v5487_v0, %v5488_v63  ;;  %v3672_v3 = vpop.f32.mrb[12].mxu1 }
 0x1d8   :  { %v908_v5 = vpop.f32.mrb[13].mxu1  ;;  %v4704_v8 = vadd.f32 %v3672_v3, %v4620_v23 }
 0x1d9   :  { %v4701_v6 = vadd.f32 %v4620_v23, %v908_v5  ;;  %v3673_v7 = vpop.f32.mrb[14].mxu1  ;;  %3746 = vmatprep.mubr.bf16.mxu0 %v1183_v2 }
 0x1da   :  { %v4707_v9 = vadd.f32 %v3673_v7, %v4620_v23  ;;  %v911_v10 = vpop.f32.mrb[15].mxu1  ;;  %3747 = vmatmul.mubr.bf16.gmra.mrb[72].mxu0 %v1184_v4  ;;  %v5486_v15 = vmax.f32 %v4704_v8, 0.0 }
 0x1db   :  { %v4710_v11 = vadd.f32 %v4620_v23, %v911_v10  ;;  %v5479_v13 = vmax.f32 %v4701_v6, 0.0 }
 0x1dc   :  { %v5485_v12 = vmax.f32 %v4707_v9, 0.0 }
 0x1dd   :  { %v5480_v14 = vmax.f32 %v4710_v11, 0.0 }
 0x1de   :  { %v1186_v18 = vpack.c.bf16 %v5485_v12, %v5486_v15 }
 0x1df   :  { %v1185_v16 = vpack.c.bf16 %v5480_v14, %v5479_v13  ;;  %v3676_v17 = vpop.f32.mrb[16].mxu1 }
 0x1e0   :  { %v924_v19 = vpop.f32.mrb[17].mxu1  ;;  %v4728_v22 = vadd.f32 %v3676_v17, %v4620_v23 }
 0x1e1   :  { %v4725_v20 = vadd.f32 %v4620_v23, %v924_v19  ;;  %v3677_v21 = vpop.f32.mrb[18].mxu1  ;;  %3750 = vmatprep.mubr.bf16.mxu0 %v1185_v16 }
 0x1e2   :  { %v4731_v24 = vadd.f32 %v3677_v21, %v4620_v23  ;;  %v927_v25 = vpop.f32.mrb[19].mxu1  ;;  %3751 = vmatmul.mubr.bf16.gmra.mrb[76].mxu0 %v1186_v18  ;;  %v5471_v37 = vmax.f32 %v4728_v22, 0.0 }
 0x1e3   :  { %v4734_v27 = vadd.f32 %v4620_v23, %v927_v25  ;;  %v5477_v30 = vmax.f32 %v4725_v20, 0.0 }
 0x1e4   :  { %v5478_v29 = vmax.f32 %v4731_v24, 0.0 }
 0x1e5   :  { %v5472_v31 = vmax.f32 %v4734_v27, 0.0 }
 0x1e6   :  { %v1188_v40 = vpack.c.bf16 %v5478_v29, %v5471_v37 }
 0x1e7   :  { %v1187_v38 = vpack.c.bf16 %v5472_v31, %v5477_v30  ;;  %v3680_v39 = vpop.f32.mrb[20].mxu1 }
 0x1e8   :  { %v940_v42 = vpop.f32.mrb[21].mxu1  ;;  %v4752_v53 = vadd.f32 %v3680_v39, %v4620_v23 }
 0x1e9   :  { %v4749_v46 = vadd.f32 %v4620_v23, %v940_v42  ;;  %v3681_v52 = vpop.f32.mrb[22].mxu1  ;;  %3754 = vmatprep.mubr.bf16.mxu0 %v1187_v38 }
 0x1ea   :  { %v4755_v54 = vadd.f32 %v3681_v52, %v4620_v23  ;;  %v943_v55 = vpop.f32.mrb[23].mxu1  ;;  %3755 = vmatmul.mubr.bf16.gmra.mrb[80].mxu0 %v1188_v40  ;;  %v5463_v4 = vmax.f32 %v4752_v53, 0.0 }
 0x1eb   :  { %v4758_v57 = vadd.f32 %v4620_v23, %v943_v55  ;;  %v5464_v2 = vmax.f32 %v4749_v46, 0.0 }
 0x1ec   :  { %v5469_v60 = vmax.f32 %v4755_v54, 0.0 }
 0x1ed   :  { %v5470_v3 = vmax.f32 %v4758_v57, 0.0 }
 0x1ee   :  { %v1190_v10 = vpack.c.bf16 %v5469_v60, %v5463_v4 }
 0x1ef   :  { %v1189_v5 = vpack.c.bf16 %v5470_v3, %v5464_v2  ;;  %v3684_v7 = vpop.f32.mrb[24].mxu1 }
 0x1f0   :  { %v956_v16 = vpop.f32.mrb[25].mxu1  ;;  %v4776_v19 = vadd.f32 %v3684_v7, %v4620_v23 }
 0x1f1   :  { %v4773_v17 = vadd.f32 %v4620_v23, %v956_v16  ;;  %v3685_v18 = vpop.f32.mrb[26].mxu1  ;;  %3758 = vmatprep.mubr.bf16.mxu0 %v1189_v5 }
 0x1f2   :  { %v4779_v21 = vadd.f32 %v3685_v18, %v4620_v23  ;;  %v959_v25 = vpop.f32.mrb[27].mxu1  ;;  %3759 = vmatmul.mubr.bf16.gmra.mrb[84].mxu0 %v1190_v10  ;;  %v5467_v52 = vmax.f32 %v4776_v19, 0.0 }
 0x1f3   :  { %v4782_v38 = vadd.f32 %v4620_v23, %v959_v25  ;;  %v5466_v40 = vmax.f32 %v4773_v17, 0.0 }
 0x1f4   :  { %v5468_v39 = vmax.f32 %v4779_v21, 0.0 }
 0x1f5   :  { %v5465_v42 = vmax.f32 %v4782_v38, 0.0 }
 0x1f6   :  { %v1192_v7 = vpack.c.bf16 %v5468_v39, %v5467_v52 }
 0x1f7   :  { %v1191_v55 = vpack.c.bf16 %v5465_v42, %v5466_v40  ;;  %v3688_v5 = vpop.f32.mrb[28].mxu1 }
 0x1f8   :  { %v972_v10 = vpop.f32.mrb[29].mxu1  ;;  %v4800_v25 = vadd.f32 %v3688_v5, %v4620_v23 }
 0x1f9   :  { %v4797_v16 = vadd.f32 %v4620_v23, %v972_v10  ;;  %v3689_v18 = vpop.f32.mrb[30].mxu1  ;;  %3762 = vmatprep.mubr.bf16.mxu0 %v1191_v55 }
 0x1fa   :  { %v4803_v4 = vadd.f32 %v3689_v18, %v4620_v23  ;;  %v975_v2 = vpop.f32.mrb[31].mxu1  ;;  %3763 = vmatmul.mubr.bf16.gmra.mrb[88].mxu0 %v1192_v7  ;;  %v5475_v39 = vmax.f32 %v4800_v25, 0.0 }
 0x1fb   :  { %v4806_v42 = vadd.f32 %v4620_v23, %v975_v2  ;;  %v5474_v52 = vmax.f32 %v4797_v16, 0.0 }
 0x1fc   :  { %v5476_v40 = vmax.f32 %v4803_v4, 0.0 }
 0x1fd   :  { %v5473_v10 = vmax.f32 %v4806_v42, 0.0 }
 0x1fe   :  { %v1194_v2 = vpack.c.bf16 %v5476_v40, %v5475_v39 }
 0x1ff   :  { %v1193_v55 = vpack.c.bf16 %v5473_v10, %v5474_v52  ;;  %v3692_v5 = vpop.f32.mrb[32].mxu1 }
 0x200   :  { %v988_v7 = vpop.f32.mrb[33].mxu1  ;;  %v4824_v3 = vadd.f32 %v3692_v5, %v4620_v23 }
 0x201   :  { %v4821_v18 = vadd.f32 %v4620_v23, %v988_v7  ;;  %v3693_v60 = vpop.f32.mrb[34].mxu1  ;;  %3766 = vmatprep.mubr.bf16.mxu0 %v1193_v55 }
 0x202   :  { %v4827_v37 = vadd.f32 %v3693_v60, %v4620_v23  ;;  %v991_v31 = vpop.f32.mrb[35].mxu1  ;;  %3767 = vmatmul.mubr.bf16.gmra.mrb[92].mxu0 %v1194_v2  ;;  %v5484_v40 = vmax.f32 %v4824_v3, 0.0 }
 0x203   :  { %v4830_v10 = vadd.f32 %v4620_v23, %v991_v31  ;;  %v5482_v39 = vmax.f32 %v4821_v18, 0.0 }
 0x204   :  { %v5483_v52 = vmax.f32 %v4827_v37, 0.0 }
 0x205   :  { %v5481_v7 = vmax.f32 %v4830_v10, 0.0 }
 0x206   :  { %v1196_v31 = vpack.c.bf16 %v5483_v52, %v5484_v40 }
 0x207   :  { %v1195_v55 = vpack.c.bf16 %v5481_v7, %v5482_v39  ;;  %v3696_v60 = vpop.f32.mrb[36].mxu1 }
 0x208   :  { %v1004_v5 = vpop.f32.mrb[37].mxu1  ;;  %v4848_v29 = vadd.f32 %v3696_v60, %v4620_v23 }
 0x209   :  { %v4845_v2 = vadd.f32 %v4620_v23, %v1004_v5  ;;  %v3697_v30 = vpop.f32.mrb[38].mxu1  ;;  %3770 = vmatprep.mubr.bf16.mxu0 %v1195_v55 }
 0x20a   :  { %v4851_v13 = vadd.f32 %v3697_v30, %v4620_v23  ;;  %v1007_v14 = vpop.f32.mrb[39].mxu1  ;;  %3771 = vmatmul.mubr.bf16.gmra.mrb[96].mxu0 %v1196_v31  ;;  %v5492_v40 = vmax.f32 %v4848_v29, 0.0 }
 0x20b   :  { %v4854_v7 = vadd.f32 %v4620_v23, %v1007_v14  ;;  %v5490_v52 = vmax.f32 %v4845_v2, 0.0 }
 0x20c   :  { %v5491_v39 = vmax.f32 %v4851_v13, 0.0 }
 0x20d   :  { %v5489_v5 = vmax.f32 %v4854_v7, 0.0 }
 0x20e   :  { %v1198_v14 = vpack.c.bf16 %v5491_v39, %v5492_v40 }
 0x20f   :  { %v1197_v55 = vpack.c.bf16 %v5489_v5, %v5490_v52  ;;  %v3700_v30 = vpop.f32.mrb[40].mxu1 }
 0x210   :  { %v1020_v60 = vpop.f32.mrb[41].mxu1  ;;  %v4872_v15 = vadd.f32 %v3700_v30, %v4620_v23 }
 0x211   :  { %v4869_v31 = vadd.f32 %v4620_v23, %v1020_v60  ;;  %v3701_v12 = vpop.f32.mrb[42].mxu1  ;;  %3774 = vmatprep.mubr.bf16.mxu0 %v1197_v55 }
 0x212   :  { %v4875_v0 = vadd.f32 %v3701_v12, %v4620_v23  ;;  %v1023_v63 = vpop.f32.mrb[43].mxu1  ;;  %3775 = vmatmul.mubr.bf16.gmra.mrb[100].mxu0 %v1198_v14  ;;  %v5500_v40 = vmax.f32 %v4872_v15, 0.0 }
 0x213   :  { %v4878_v5 = vadd.f32 %v4620_v23, %v1023_v63  ;;  %v5498_v39 = vmax.f32 %v4869_v31, 0.0 }
 0x214   :  { %v5499_v52 = vmax.f32 %v4875_v0, 0.0 }
 0x215   :  { %5547 = vst [vmem:[#allocation5_spill] sm:$0xff] %v4878_v5  ;;  %v5497_v60 = vmax.f32 %v4878_v5, 0.0 }
 0x216   :  { %v1200_v63 = vpack.c.bf16 %v5499_v52, %v5500_v40 }
 0x217   :  { %v1199_v55 = vpack.c.bf16 %v5497_v60, %v5498_v39  ;;  %v3704_v12 = vpop.f32.mrb[44].mxu1 }
 0x218   :  { %v1036_v30 = vpop.f32.mrb[45].mxu1  ;;  %v4896_v1 = vadd.f32 %v3704_v12, %v4620_v23 }
 0x219   :  { %v4893_v14 = vadd.f32 %v4620_v23, %v1036_v30  ;;  %v3705_v62 = vpop.f32.mrb[46].mxu1  ;;  %3778 = vmatprep.mubr.bf16.mxu0 %v1199_v55 }
 0x21a   :  { %5549 = vst [vmem:[#allocation7_spill] sm:$0xff] %v4896_v1  ;;  %v4899_v50 = vadd.f32 %v3705_v62, %v4620_v23  ;;  %v1039_v49 = vpop.f32.mrb[47].mxu1  ;;  %3779 = vmatmul.mubr.bf16.gmra.mrb[104].mxu0 %v1200_v63  ;;  %v5508_v40 = vmax.f32 %v4896_v1, 0.0 }
 0x21b   :  { %5548 = vst [vmem:[#allocation6_spill] sm:$0xff] %v4893_v14  ;;  %v4902_v60 = vadd.f32 %v4620_v23, %v1039_v49  ;;  %v5506_v52 = vmax.f32 %v4893_v14, 0.0 }
 0x21c   :  { %5550 = vst [vmem:[#allocation8_spill] sm:$0xff] %v4899_v50  ;;  %v5507_v39 = vmax.f32 %v4899_v50, 0.0 }
 0x21d   :  { %5551 = vst [vmem:[#allocation9_spill] sm:$0xff] %v4902_v60  ;;  %v5505_v30 = vmax.f32 %v4902_v60, 0.0 }
 0x21e   :  { %v1202_v49 = vpack.c.bf16 %v5507_v39, %v5508_v40 }
 0x21f   :  { %v1201_v55 = vpack.c.bf16 %v5505_v30, %v5506_v52  ;;  %v3708_v62 = vpop.f32.mrb[48].mxu1 }
 0x220   :  { %v1052_v12 = vpop.f32.mrb[49].mxu1  ;;  %v4920_v51 = vadd.f32 %v3708_v62, %v4620_v23 }
 0x221   :  { %v4917_v63 = vadd.f32 %v4620_v23, %v1052_v12  ;;  %v3709_v48 = vpop.f32.mrb[50].mxu1  ;;  %3782 = vmatprep.mubr.bf16.mxu0 %v1201_v55 }
 0x222   :  { %5553 = vst [vmem:[#allocation11_spill] sm:$0xff] %v4920_v51  ;;  %v4923_v35 = vadd.f32 %v3709_v48, %v4620_v23  ;;  %v1055_v34 = vpop.f32.mrb[51].mxu1  ;;  %3783 = vmatmul.mubr.bf16.gmra.mrb[108].mxu0 %v1202_v49  ;;  %v5516_v40 = vmax.f32 %v4920_v51, 0.0 }
 0x223   :  { %5552 = vst [vmem:[#allocation10_spill] sm:$0xff] %v4917_v63  ;;  %v4926_v30 = vadd.f32 %v4620_v23, %v1055_v34  ;;  %v5513_v39 = vmax.f32 %v4917_v63, 0.0 }
 0x224   :  { %5554 = vst [vmem:[#allocation12_spill] sm:$0xff] %v4923_v35  ;;  %v5515_v52 = vmax.f32 %v4923_v35, 0.0 }
 0x225   :  { %5555 = vst [vmem:[#allocation13_spill] sm:$0xff] %v4926_v30  ;;  %v5512_v12 = vmax.f32 %v4926_v30, 0.0 }
 0x226   :  { %v1204_v34 = vpack.c.bf16 %v5515_v52, %v5516_v40 }
 0x227   :  { %v1203_v55 = vpack.c.bf16 %v5512_v12, %v5513_v39  ;;  %v3712_v48 = vpop.f32.mrb[52].mxu1 }
 0x228   :  { %v4941_v62 = vadd.f32 %v3712_v48, %v4620_v23  ;;  %v1068_v49 = vpop.f32.mrb[53].mxu1 }
 0x229   :  { %v4947_v36 = vadd.f32 %v4620_v23, %v1068_v49  ;;  %v3713_v63 = vpop.f32.mrb[54].mxu1  ;;  %3786 = vmatprep.mubr.bf16.mxu0 %v1203_v55  ;;  %v4020_v55 = vld [vmem:[%s5459_s2 + $0x98] sm:$0xff]  }
 0x22a   :  { %5556 = vst [vmem:[#allocation14_spill] sm:$0xff] %v4941_v62  ;;  %v5521_v12 = vmax.f32 %v4941_v62, 0.0  ;;  %v4951_v39 = vadd.f32 %v3713_v63, %v4620_v23  ;;  %v1071_v30 = vpop.f32.mrb[55].mxu1  ;;  %3787 = vmatmul.mubr.bf16.gmra.mrb[112].mxu0 %v1204_v34  ;;  %3808 = vmatprep.subr.bf16.mxu1 %v4020_v55 }
 0x22b   :  { %5557 = vst [vmem:[#allocation15_spill] sm:$0xff] %v4947_v36  ;;  %v5523_v48 = vmax.f32 %v4947_v36, 0.0  ;;  %v4955_v52 = vadd.f32 %v4620_v23, %v1071_v30  ;;  %3809 = vmatpush3.bf16.msra.mxu1 %v4020_v55 }
 0x22c   :  { %5558 = vst [vmem:[#allocation16_spill] sm:$0xff] %v4951_v39  ;;  %v5520_v40 = vmax.f32 %v4951_v39, 0.0 }
 0x22d   :  { %5559 = vst [vmem:[#allocation17_spill] sm:$0xff] %v4955_v52  ;;  %v5522_v49 = vmax.f32 %v4955_v52, 0.0 }
 0x22e   :  { %v1206_v63 = vpack.c.bf16 %v5520_v40, %v5521_v12  ;;  %v4021_v40 = vld [vmem:[%s5459_s2 + $0xa0] sm:$0xff]   ;;  %v4022_v12 = vld [vmem:[%s5459_s2 + $0xa8] sm:$0xff]  }
 0x22f   :  { %v1205_v30 = vpack.c.bf16 %v5522_v49, %v5523_v48  ;;  %v3716_v34 = vpop.f32.mrb[56].mxu1  ;;  %3810 = vmatprep.subr.bf16.mxu1 %v4021_v40 }
 0x230   :  { %v4971_v33 = vadd.f32 %v3716_v34, %v4620_v23  ;;  %v1084_v35 = vpop.f32.mrb[57].mxu1  ;;  %3811 = vmatpush3.bf16.msra.mxu1 %v4021_v40 }
 0x231   :  { %v4974_v51 = vadd.f32 %v4620_v23, %v1084_v35  ;;  %v3717_v60 = vpop.f32.mrb[58].mxu1  ;;  %3790 = vmatprep.mubr.bf16.mxu0 %v1205_v30  ;;  %3812 = vmatprep.subr.bf16.mxu1 %v4022_v12 }
 0x232   :  { %5560 = vst [vmem:[#allocation18_spill] sm:$0xff] %v4971_v33  ;;  %v4981_v49 = vadd.f32 %v3717_v60, %v4620_v23  ;;  %v1087_v48 = vpop.f32.mrb[59].mxu1  ;;  %3791 = vmatmul.mubr.bf16.gmra.mrb[116].mxu0 %v1206_v63  ;;  %v5564_v60 = vmax.f32 %v4971_v33, 0.0 }
 0x233   :  { %5561 = vst [vmem:[#allocation19_spill] sm:$0xff] %v4974_v51  ;;  %v5530_v34 = vmax.f32 %v4974_v51, 0.0  ;;  %v4985_v55 = vadd.f32 %v4620_v23, %v1087_v48 }
 0x234   :  { %5562 = vst [vmem:[#allocation20_spill] sm:$0xff] %v4981_v49  ;;  %v5528_v35 = vmax.f32 %v4981_v49, 0.0  ;;  %3813 = vmatpush3.bf16.msra.mxu1 %v4022_v12 }
 0x235   :  { %5563 = vst [vmem:[#allocation21_spill] sm:$0xff] %v4985_v55  ;;  %v5529_v30 = vmax.f32 %v4985_v55, 0.0 }
 0x236   :  { %v1208_v63 = vpack.c.bf16 %v5528_v35, %v5564_v60  ;;  %v4023_v60 = vld [vmem:[%s5459_s2 + $0xb0] sm:$0xff]  }
 0x237   :  { %v1207_v48 = vpack.c.bf16 %v5529_v30, %v5530_v34  ;;  %v3720_v52 = vpop.f32.mrb[60].mxu1  ;;  %3814 = vmatprep.subr.bf16.mxu1 %v4023_v60 }
 0x238   :  { %v5001_v40 = vadd.f32 %v3720_v52, %v4620_v23  ;;  %v1100_v36 = vpop.f32.mrb[61].mxu1  ;;  %3815 = vmatpush3.bf16.msra.mxu1 %v4023_v60 }
 0x239   :  { %v5004_v39 = vadd.f32 %v4620_v23, %v1100_v36  ;;  %v3721_v62 = vpop.f32.mrb[62].mxu1  ;;  %3794 = vmatprep.mubr.bf16.mxu0 %v1207_v48 }
 0x23a   :  { %5565 = vst [vmem:[#allocation22_spill] sm:$0xff] %v5001_v40  ;;  %v5533_v35 = vmax.f32 %v5001_v40, 0.0  ;;  %v5011_v30 = vadd.f32 %v3721_v62, %v4620_v23  ;;  %v1103_v34 = vpop.f32.mrb[63].mxu1  ;;  %3795 = vmatmul.mubr.bf16.gmra.mrb[120].mxu0 %v1208_v63  ;;  %v4024_v62 = vld [vmem:[%s5459_s2 + $0xb8] sm:$0xff]  }
 0x23b   :  { %5566 = vst [vmem:[#allocation23_spill] sm:$0xff] %v5004_v39  ;;  %v5538_v52 = vmax.f32 %v5004_v39, 0.0  ;;  %v5015_v12 = vadd.f32 %v4620_v23, %v1103_v34  ;;  %3816 = vmatprep.subr.bf16.mxu1 %v4024_v62  ;;  %v5033_v34 = vld [vmem:[%s5461_s4 + $0x2] ss:$0 sm:$0xff] }
 0x23c   :  { %5567 = vst [vmem:[#allocation24_spill] sm:$0xff] %v5011_v30  ;;  %v5532_v36 = vmax.f32 %v5011_v30, 0.0  ;;  %3817 = vmatpush3.bf16.msra.mxu1 %v4024_v62 }
 0x23d   :  { %5568 = vst [vmem:[#allocation25_spill] sm:$0xff] %v5015_v12  ;;  %v5537_v48 = vmax.f32 %v5015_v12, 0.0 }
 0x23e   :  { %v1210_v55 = vpack.c.bf16 %v5532_v36, %v5533_v35 }
 0x23f   :  { %v1209_v23 = vpack.c.bf16 %v5537_v48, %v5538_v52 }
 0x241   :  { %3798 = vmatprep.mubr.bf16.mxu0 %v1209_v23 }
 0x242   :  { %3799 = vmatmul.mubr.bf16.gmra.mrb[124].mxu0 %v1210_v55 }
 0x29d   :  { %v3740_v63 = vpop.f32.mrb[64].mxu0 }
 0x29e   :  { %v1324_v60 = vadd.f32 %v3740_v63, %v5033_v34  ;;  %v1315_v36 = vpop.f32.mrb[65].mxu0 }
 0x29f   :  { %v1316_v35 = vadd.f32 %v5033_v34, %v1315_v36  ;;  %v3741_v30 = vpop.f32.mrb[66].mxu0 }
 0x2a0   :  { %v3225_v39 = vmul.f32 -1.442695, %v1324_v60  ;;  %v1327_v12 = vadd.f32 %v3741_v30, %v5033_v34  ;;  %v1318_v48 = vpop.f32.mrb[67].mxu0 }
 0x2a1   :  { %v3223_v52 = vmul.f32 -1.442695, %v1316_v35  ;;  %v1319_v62 = vadd.f32 %v5033_v34, %v1318_v48 }
 0x2a2   :  { %4033 = vpow2.f32 %v3225_v39  ;;  %v3226_v55 = vmul.f32 -1.442695, %v1327_v12 }
 0x2a3   :  { %4035 = vpow2.f32 %v3223_v52  ;;  %v3224_v23 = vmul.f32 -1.442695, %v1319_v62 }
 0x2a4   :  { %4037 = vpow2.f32 %v3226_v55 }
 0x2a5   :  { %4039 = vpow2.f32 %v3224_v23  ;;  %v3744_v40 = vpop.f32.mrb[68].mxu0 }
 0x2a6   :  { %v1340_v63 = vadd.f32 %v3744_v40, %v5033_v34  ;;  %v1331_v51 = vpop.f32.mrb[69].mxu0 }
 0x2a7   :  { %v1332_v36 = vadd.f32 %v5033_v34, %v1331_v51  ;;  %v3745_v49 = vpop.f32.mrb[70].mxu0 }
 0x2a8   :  { %v3229_v60 = vmul.f32 -1.442695, %v1340_v63  ;;  %v1343_v30 = vadd.f32 %v3745_v49, %v5033_v34  ;;  %v1334_v33 = vpop.f32.mrb[71].mxu0 }
 0x2a9   :  { %v3227_v35 = vmul.f32 -1.442695, %v1332_v36  ;;  %v1335_v48 = vadd.f32 %v5033_v34, %v1334_v33 }
 0x2aa   :  { %4041 = vpow2.f32 %v3229_v60  ;;  %v3230_v39 = vmul.f32 -1.442695, %v1343_v30 }
 0x2ab   :  { %4043 = vpow2.f32 %v3227_v35  ;;  %v3228_v52 = vmul.f32 -1.442695, %v1335_v48 }
 0x2ac   :  { %v4034_v12 = vpop.eup %4033  ;;  %4045 = vpow2.f32 %v3230_v39 }
 0x2ad   :  { %v4036_v62 = vpop.eup %4035  ;;  %v1764_v55 = vadd.f32 1.0, %v4034_v12  ;;  %4047 = vpow2.f32 %v3228_v52  ;;  %v3748_v40 = vpop.f32.mrb[72].mxu0 }
 0x2ae   :  { %v4038_v23 = vpop.eup %4037  ;;  %v1762_v51 = vadd.f32 1.0, %v4036_v62  ;;  %v1356_v63 = vadd.f32 %v3748_v40, %v5033_v34  ;;  %v1347_v14 = vpop.f32.mrb[73].mxu0 }
 0x2af   :  { %v4040_v49 = vpop.eup %4039  ;;  %4049 = vrcp.f32 %v1764_v55  ;;  %v1765_v36 = vadd.f32 1.0, %v4038_v23  ;;  %v1348_v33 = vadd.f32 %v5033_v34, %v1347_v14  ;;  %v3749_v60 = vpop.f32.mrb[74].mxu0 }
 0x2b0   :  { %4051 = vrcp.f32 %v1762_v51  ;;  %v1763_v30 = vadd.f32 1.0, %v4040_v49  ;;  %v3233_v35 = vmul.f32 -1.442695, %v1356_v63  ;;  %v1359_v48 = vadd.f32 %v3749_v60, %v5033_v34  ;;  %v1350_v39 = vpop.f32.mrb[75].mxu0 }
 0x2b1   :  { %4053 = vrcp.f32 %v1765_v36  ;;  %v3231_v52 = vmul.f32 -1.442695, %v1348_v33  ;;  %v1351_v12 = vadd.f32 %v5033_v34, %v1350_v39 }
 0x2b2   :  { %4055 = vrcp.f32 %v1763_v30  ;;  %v3234_v62 = vmul.f32 -1.442695, %v1359_v48 }
 0x2b3   :  { %4057 = vpow2.f32 %v3233_v35  ;;  %v3232_v40 = vmul.f32 -1.442695, %v1351_v12 }
 0x2b4   :  { %v4042_v50 = vpop.eup %4041  ;;  %4059 = vpow2.f32 %v3231_v52 }
 0x2b5   :  { %v4044_v55 = vpop.eup %4043  ;;  %v1768_v23 = vadd.f32 1.0, %v4042_v50  ;;  %4061 = vpow2.f32 %v3234_v62  ;;  %v3752_v14 = vpop.f32.mrb[76].mxu0 }
 0x2b6   :  { %v4046_v51 = vpop.eup %4045  ;;  %v1766_v49 = vadd.f32 1.0, %v4044_v55  ;;  %4063 = vpow2.f32 %v3232_v40  ;;  %v1372_v63 = vadd.f32 %v3752_v14, %v5033_v34  ;;  %v1363_v60 = vpop.f32.mrb[77].mxu0 }
 0x2b7   :  { %v4048_v36 = vpop.eup %4047  ;;  %4065 = vrcp.f32 %v1768_v23  ;;  %v1769_v33 = vadd.f32 1.0, %v4046_v51  ;;  %v1364_v30 = vadd.f32 %v5033_v34, %v1363_v60  ;;  %v3753_v48 = vpop.f32.mrb[78].mxu0 }
 0x2b8   :  { %4067 = vrcp.f32 %v1766_v49  ;;  %v1767_v35 = vadd.f32 1.0, %v4048_v36  ;;  %v3237_v39 = vmul.f32 -1.442695, %v1372_v63  ;;  %v1375_v52 = vadd.f32 %v3753_v48, %v5033_v34  ;;  %v1366_v50 = vpop.f32.mrb[79].mxu0 }
 0x2b9   :  { %v4050_v12 = vpop.eup %4049  ;;  %4069 = vrcp.f32 %v1769_v33  ;;  %v3235_v62 = vmul.f32 -1.442695, %v1364_v30  ;;  %v1367_v40 = vadd.f32 %v5033_v34, %v1366_v50  ;;  %v5569_v49 = vmax.f32 %v4626_v28, 0.0 }
 0x2ba   :  { %v4052_v55 = vpop.eup %4051  ;;  %4071 = vrcp.f32 %v1767_v35  ;;  %v3238_v14 = vmul.f32 -1.442695, %v1375_v52  ;;  %v5570_v63 = vmax.f32 %v4629_v43, 0.0  ;;  %v5571_v30 = vmax.f32 %v4623_v26, 0.0 }
 0x2bb   :  { %v4054_v1 = vpop.eup %4053  ;;  %4073 = vpow2.f32 %v3237_v39  ;;  %v3236_v23 = vmul.f32 -1.442695, %v1367_v40  ;;  %v1956_v60 = vmul.f32 %v4050_v12, %v5569_v49  ;;  %v5572_v35 = vmax.f32 %v4638_v32, 0.0 }
 0x2bc   :  { %v4056_v51 = vpop.eup %4055  ;;  %4075 = vpow2.f32 %v3235_v62  ;;  %v1957_v36 = vmul.f32 %v4054_v1, %v5570_v63  ;;  %v1954_v50 = vmul.f32 %v4052_v55, %v5571_v30 }
 0x2bd   :  { %v4058_v48 = vpop.eup %4057  ;;  %4077 = vpow2.f32 %v3238_v14  ;;  %v3756_v33 = vpop.f32.mrb[80].mxu0  ;;  %v1955_v52 = vmul.f32 %v4056_v51, %v5572_v35 }
 0x2be   :  { %v4060_v5 = vpop.eup %4059  ;;  %v1772_v39 = vadd.f32 1.0, %v4058_v48  ;;  %4079 = vpow2.f32 %v3236_v23  ;;  %v1388_v62 = vadd.f32 %v3756_v33, %v5033_v34  ;;  %v1379_v40 = vpop.f32.mrb[81].mxu0  ;;  %v2019_v28 = vpack.c.bf16 %v1957_v36, %v1956_v60  ;;  %v4025_v23 = vld [vmem:[%s5459_s2 + $0xc0] sm:$0xff]   ;;  %v4026_v60 = vld [vmem:[%s5459_s2 + $0xc8] sm:$0xff]  }
 0x2bf   :  { %v4062_v12 = vpop.eup %4061  ;;  %v1770_v49 = vadd.f32 1.0, %v4060_v5  ;;  %v1380_v43 = vadd.f32 %v5033_v34, %v1379_v40  ;;  %v3757_v1 = vpop.f32.mrb[82].mxu0  ;;  %v2018_v14 = vpack.c.bf16 %v1955_v52, %v1954_v50  ;;  %3882 = vmatprep.subr.bf16.mxu0 %v4025_v23 }
 0x2c0   :  { %v4064_v63 = vpop.eup %4063  ;;  %4081 = vrcp.f32 %v1772_v39  ;;  %v1773_v26 = vadd.f32 1.0, %v4062_v12  ;;  %v3241_v55 = vmul.f32 -1.442695, %v1388_v62  ;;  %v1391_v32 = vadd.f32 %v3757_v1, %v5033_v34  ;;  %v1382_v51 = vpop.f32.mrb[83].mxu0  ;;  %3883 = vmatpush3.bf16.msra.mxu0 %v4025_v23 }
 0x2c1   :  { %v4066_v5 = vpop.eup %4065  ;;  %4083 = vrcp.f32 %v1770_v49  ;;  %v1771_v36 = vadd.f32 1.0, %v4064_v63  ;;  %v3239_v48 = vmul.f32 -1.442695, %v1380_v43  ;;  %v1383_v33 = vadd.f32 %v5033_v34, %v1382_v51  ;;  %3818 = vmatprep.mubr.bf16.mxu1 %v2018_v14  ;;  %3884 = vmatprep.subr.bf16.mxu0 %v4026_v60  ;;  %v4027_v43 = vld [vmem:[%s5459_s2 + $0xd0] sm:$0xff]  }
 0x2c2   :  { %v4068_v30 = vpop.eup %4067  ;;  %4085 = vrcp.f32 %v1773_v26  ;;  %v3242_v50 = vmul.f32 -1.442695, %v1391_v32  ;;  %3819 = vmatmul.mubr.bf16.vlgmr.msra.gmra.mrb[64].mxu1 %v2019_v28  ;;  %v5573_v62 = vmax.f32 %v4656_v44, 0.0  ;;  %v5574_v12 = vmax.f32 %v4659_v45, 0.0 }
 0x2c3   :  { %v4070_v35 = vpop.eup %4069  ;;  %4087 = vrcp.f32 %v1771_v36  ;;  %v3240_v52 = vmul.f32 -1.442695, %v1383_v33  ;;  %v5575_v14 = vmax.f32 %v4653_v41, 0.0  ;;  %v5576_v26 = vmax.f32 %v4662_v47, 0.0 }
 0x2c4   :  { %v4072_v39 = vpop.eup %4071  ;;  %4089 = vpow2.f32 %v3241_v55  ;;  %v1960_v40 = vmul.f32 %v4066_v5, %v5573_v62  ;;  %v1961_v49 = vmul.f32 %v4070_v35, %v5574_v12  ;;  %3885 = vmatpush3.bf16.msra.mxu0 %v4026_v60 }
 0x2c5   :  { %v4074_v1 = vpop.eup %4073  ;;  %4091 = vpow2.f32 %v3239_v48  ;;  %v3760_v28 = vpop.f32.mrb[84].mxu0  ;;  %v1958_v63 = vmul.f32 %v4068_v30, %v5575_v14  ;;  %v1959_v55 = vmul.f32 %v4072_v39, %v5576_v26  ;;  %3886 = vmatprep.subr.bf16.mxu0 %v4027_v43 }
 0x2c6   :  { %v4076_v32 = vpop.eup %4075  ;;  %v1776_v44 = vadd.f32 1.0, %v4074_v1  ;;  %4093 = vpow2.f32 %v3242_v50  ;;  %v1404_v45 = vadd.f32 %v3760_v28, %v5033_v34  ;;  %v1395_v51 = vpop.f32.mrb[85].mxu0  ;;  %v2021_v23 = vpack.c.bf16 %v1961_v49, %v1960_v40  ;;  %v4028_v50 = vld [vmem:[%s5459_s2 + $0xd8] sm:$0xff]  }
 0x2c7   :  { %v4078_v5 = vpop.eup %4077  ;;  %v1774_v36 = vadd.f32 1.0, %v4076_v32  ;;  %4095 = vpow2.f32 %v3240_v52  ;;  %v1396_v33 = vadd.f32 %v5033_v34, %v1395_v51  ;;  %v3761_v48 = vpop.f32.mrb[86].mxu0  ;;  %v2020_v35 = vpack.c.bf16 %v1959_v55, %v1958_v63  ;;  %v4029_v63 = vld [vmem:[%s5459_s2 + $0xe0] sm:$0xff]  }
 0x2c8   :  { %v4080_v41 = vpop.eup %4079  ;;  %4097 = vrcp.f32 %v1776_v44  ;;  %v1777_v30 = vadd.f32 1.0, %v4078_v5  ;;  %v3245_v47 = vmul.f32 -1.442695, %v1404_v45  ;;  %v1407_v39 = vadd.f32 %v3761_v48, %v5033_v34  ;;  %v1398_v62 = vpop.f32.mrb[87].mxu0  ;;  %3887 = vmatpush3.bf16.msra.mxu0 %v4027_v43 }
 0x2c9   :  { %4099 = vrcp.f32 %v1774_v36  ;;  %v1775_v40 = vadd.f32 1.0, %v4080_v41  ;;  %v3243_v52 = vmul.f32 -1.442695, %v1396_v33  ;;  %v1399_v12 = vadd.f32 %v5033_v34, %v1398_v62  ;;  %3822 = vmatprep.mubr.bf16.mxu1 %v2020_v35  ;;  %3888 = vmatprep.subr.bf16.mxu0 %v4028_v50 }
 0x2ca   :  { %v4082_v49 = vpop.eup %4081  ;;  %4101 = vrcp.f32 %v1777_v30  ;;  %v3246_v60 = vmul.f32 -1.442695, %v1407_v39  ;;  %3823 = vmatmul.mubr.bf16.gmra.mrb[68].mxu1 %v2021_v23  ;;  %v5577_v32 = vmax.f32 %v4680_v58, 0.0  ;;  %v5578_v45 = vmax.f32 %v4683_v59, 0.0 }
 0x2cb   :  { %v4084_v1 = vpop.eup %4083  ;;  %4103 = vrcp.f32 %v1775_v40  ;;  %v3244_v28 = vmul.f32 -1.442695, %v1399_v12  ;;  %v5579_v36 = vmax.f32 %v4677_v56, 0.0  ;;  %v5580_v48 = vmax.f32 %v4686_v61, 0.0  ;;  %v4030_v56 = vld [vmem:[%s5459_s2 + $0xe8] sm:$0xff]  }
 0x2cc   :  { %v4086_v14 = vpop.eup %4085  ;;  %4105 = vpow2.f32 %v3245_v47  ;;  %v1964_v44 = vmul.f32 %v4082_v49, %v5577_v32  ;;  %3889 = vmatpush3.bf16.msra.mxu0 %v4028_v50 }
 0x2cd   :  { %v4088_v26 = vpop.eup %4087  ;;  %4107 = vpow2.f32 %v3243_v52  ;;  %v3764_v55 = vpop.f32.mrb[88].mxu0  ;;  %v1965_v51 = vmul.f32 %v4086_v14, %v5578_v45  ;;  %v1962_v33 = vmul.f32 %v4084_v1, %v5579_v36  ;;  %3890 = vmatprep.subr.bf16.mxu0 %v4029_v63 }
 0x2ce   :  { %v4090_v23 = vpop.eup %4089  ;;  %4109 = vpow2.f32 %v3246_v60  ;;  %v1420_v43 = vadd.f32 %v3764_v55, %v5033_v34  ;;  %v1411_v5 = vpop.f32.mrb[89].mxu0  ;;  %v1963_v35 = vmul.f32 %v4088_v26, %v5580_v48 }
 0x2cf   :  { %v4092_v41 = vpop.eup %4091  ;;  %v1780_v30 = vadd.f32 1.0, %v4090_v23  ;;  %4111 = vpow2.f32 %v3244_v28  ;;  %v1412_v58 = vadd.f32 %v5033_v34, %v1411_v5  ;;  %v3765_v47 = vpop.f32.mrb[90].mxu0  ;;  %v2023_v39 = vpack.c.bf16 %v1965_v51, %v1964_v44 }
 0x2d0   :  { %v4094_v59 = vpop.eup %4093  ;;  %v1778_v62 = vadd.f32 1.0, %v4092_v41  ;;  %v1423_v40 = vadd.f32 %v3765_v47, %v5033_v34  ;;  %v1414_v52 = vpop.f32.mrb[91].mxu0  ;;  %v2022_v12 = vpack.c.bf16 %v1963_v35, %v1962_v33  ;;  %v3249_v60 = vmul.f32 -1.442695, %v1420_v43  ;;  %3891 = vmatpush3.bf16.msra.mxu0 %v4029_v63 }
 0x2d1   :  { %v4096_v61 = vpop.eup %4095  ;;  %4113 = vrcp.f32 %v1780_v30  ;;  %v1781_v49 = vadd.f32 1.0, %v4094_v59  ;;  %v1415_v1 = vadd.f32 %v5033_v34, %v1414_v52  ;;  %v3247_v14 = vmul.f32 -1.442695, %v1412_v58  ;;  %3892 = vmatprep.subr.bf16.mxu0 %v4030_v56 }
 0x2d2   :  { %v4098_v28 = vpop.eup %4097  ;;  %4115 = vrcp.f32 %v1778_v62  ;;  %v1779_v50 = vadd.f32 1.0, %v4096_v61  ;;  %3826 = vmatprep.mubr.bf16.mxu1 %v2022_v12  ;;  %v3250_v55 = vmul.f32 -1.442695, %v1423_v40  ;;  %v5581_v23 = vmax.f32 %v4704_v8, 0.0 }
 0x2d3   :  { %v4100_v26 = vpop.eup %4099  ;;  %4117 = vrcp.f32 %v1781_v49  ;;  %3827 = vmatmul.mubr.bf16.gmra.mrb[72].mxu1 %v2023_v39  ;;  %v3248_v44 = vmul.f32 -1.442695, %v1415_v1  ;;  %v5582_v5 = vmax.f32 %v4707_v9, 0.0  ;;  %v5583_v63 = vmax.f32 %v4710_v11, 0.0 }
 0x2d4   :  { %v4102_v32 = vpop.eup %4101  ;;  %4119 = vrcp.f32 %v1779_v50  ;;  %v1968_v43 = vmul.f32 %v4098_v28, %v5581_v23  ;;  %3893 = vmatpush3.bf16.msra.mxu0 %v4030_v56  ;;  %v5584_v52 = vmax.f32 %v4701_v6, 0.0  ;;  %v5585_v23 = vmax.f32 %v4731_v24, 0.0 }
 0x2d5   :  { %v4104_v45 = vpop.eup %4103  ;;  %4121 = vpow2.f32 %v3249_v60  ;;  %v3768_v51 = vpop.f32.mrb[92].mxu0  ;;  %v1969_v36 = vmul.f32 %v4102_v32, %v5582_v5  ;;  %v5588_v24 = vmax.f32 %v4728_v22, 0.0 }
 0x2d6   :  { %v4106_v33 = vpop.eup %4105  ;;  %4123 = vpow2.f32 %v3247_v14  ;;  %v1436_v48 = vadd.f32 %v3768_v51, %v5033_v34  ;;  %v1427_v35 = vpop.f32.mrb[93].mxu0  ;;  %v1967_v41 = vmul.f32 %v4104_v45, %v5583_v63  ;;  %v1966_v12 = vmul.f32 %v4100_v26, %v5584_v52 }
 0x2d7   :  { %v4108_v30 = vpop.eup %4107  ;;  %v1784_v58 = vadd.f32 1.0, %v4106_v33  ;;  %4125 = vpow2.f32 %v3250_v55  ;;  %v1428_v47 = vadd.f32 %v5033_v34, %v1427_v35  ;;  %v3769_v39 = vpop.f32.mrb[94].mxu0  ;;  %v2025_v59 = vpack.c.bf16 %v1969_v36, %v1968_v43 }
 0x2d8   :  { %v4110_v8 = vpop.eup %4109  ;;  %v1782_v62 = vadd.f32 1.0, %v4108_v30  ;;  %4127 = vpow2.f32 %v3248_v44  ;;  %v1439_v9 = vadd.f32 %v3769_v39, %v5033_v34  ;;  %v1430_v40 = vpop.f32.mrb[95].mxu0  ;;  %v3253_v49 = vmul.f32 -1.442695, %v1436_v48 }
 0x2d9   :  { %v4112_v61 = vpop.eup %4111  ;;  %4129 = vrcp.f32 %v1784_v58  ;;  %v1785_v11 = vadd.f32 1.0, %v4110_v8  ;;  %v1431_v60 = vadd.f32 %v5033_v34, %v1430_v40  ;;  %v3251_v28 = vmul.f32 -1.442695, %v1428_v47 }
 0x2da   :  { %4131 = vrcp.f32 %v1782_v62  ;;  %v1783_v1 = vadd.f32 1.0, %v4112_v61  ;;  %v2024_v50 = vpack.c.bf16 %v1967_v41, %v1966_v12  ;;  %v3254_v14 = vmul.f32 -1.442695, %v1439_v9 }
 0x2db   :  { %v4114_v56 = vpop.eup %4113  ;;  %4133 = vrcp.f32 %v1785_v11  ;;  %v3252_v32 = vmul.f32 -1.442695, %v1431_v60  ;;  %v5586_v48 = vmax.f32 %v4725_v20, 0.0  ;;  %v5587_v63 = vmax.f32 %v4734_v27, 0.0 }
 0x2dc   :  { %v4116_v55 = vpop.eup %4115  ;;  %4135 = vrcp.f32 %v1783_v1  ;;  %3830 = vmatprep.mubr.bf16.mxu1 %v2024_v50 }
 0x2dd   :  { %v4118_v44 = vpop.eup %4117  ;;  %4137 = vpow2.f32 %v3253_v49  ;;  %3831 = vmatmul.mubr.bf16.gmra.mrb[76].mxu1 %v2025_v59  ;;  %v3772_v6 = vpop.f32.mrb[96].mxu0  ;;  %v1970_v35 = vmul.f32 %v4116_v55, %v5586_v48  ;;  %v1972_v59 = vmul.f32 %v4114_v56, %v5588_v24  ;;  %v5591_v48 = vmax.f32 %v4749_v46, 0.0 }
 0x2de   :  { %v4120_v26 = vpop.eup %4119  ;;  %4139 = vpow2.f32 %v3251_v28  ;;  %v1452_v45 = vadd.f32 %v3772_v6, %v5033_v34  ;;  %v1443_v51 = vpop.f32.mrb[97].mxu0  ;;  %v1973_v43 = vmul.f32 %v4118_v44, %v5585_v23 }
 0x2df   :  { %v4122_v5 = vpop.eup %4121  ;;  %4141 = vpow2.f32 %v3254_v14  ;;  %v1444_v36 = vadd.f32 %v5033_v34, %v1443_v51  ;;  %v3773_v33 = vpop.f32.mrb[98].mxu0  ;;  %v1971_v41 = vmul.f32 %v4120_v26, %v5587_v63  ;;  %v5589_v26 = vmax.f32 %v4758_v57, 0.0 }
 0x2e0   :  { %v4124_v30 = vpop.eup %4123  ;;  %v1788_v58 = vadd.f32 1.0, %v4122_v5  ;;  %4143 = vpow2.f32 %v3252_v32  ;;  %v1455_v47 = vadd.f32 %v3773_v33, %v5033_v34  ;;  %v1446_v39 = vpop.f32.mrb[99].mxu0  ;;  %v3257_v12 = vmul.f32 -1.442695, %v1452_v45 }
 0x2e1   :  { %v4126_v8 = vpop.eup %4125  ;;  %v1786_v62 = vadd.f32 1.0, %v4124_v30  ;;  %v1447_v9 = vadd.f32 %v5033_v34, %v1446_v39  ;;  %v2026_v40 = vpack.c.bf16 %v1971_v41, %v1970_v35  ;;  %v2027_v27 = vpack.c.bf16 %v1973_v43, %v1972_v59 }
 0x2e2   :  { %v4128_v52 = vpop.eup %4127  ;;  %4145 = vrcp.f32 %v1788_v58  ;;  %v1789_v20 = vadd.f32 1.0, %v4126_v8  ;;  %v3255_v49 = vmul.f32 -1.442695, %v1444_v36  ;;  %v3258_v1 = vmul.f32 -1.442695, %v1455_v47 }
 0x2e3   :  { %v4130_v61 = vpop.eup %4129  ;;  %4147 = vrcp.f32 %v1786_v62  ;;  %v1787_v11 = vadd.f32 1.0, %v4128_v52  ;;  %3834 = vmatprep.mubr.bf16.mxu1 %v2026_v40  ;;  %v3256_v28 = vmul.f32 -1.442695, %v1447_v9  ;;  %v5590_v51 = vmax.f32 %v4755_v54, 0.0 }
 0x2e4   :  { %v4132_v60 = vpop.eup %4131  ;;  %4149 = vrcp.f32 %v1789_v20  ;;  %v5592_v57 = vmax.f32 %v4752_v53, 0.0 }
 0x2e5   :  { %v4134_v22 = vpop.eup %4133  ;;  %4151 = vrcp.f32 %v1787_v11  ;;  %3835 = vmatmul.mubr.bf16.gmra.mrb[80].mxu1 %v2027_v27  ;;  %v3776_v50 = vpop.f32.mrb[100].mxu0  ;;  %v1974_v35 = vmul.f32 %v4132_v60, %v5591_v48  ;;  %v5593_v60 = vmax.f32 %v4773_v17, 0.0  ;;  %v5596_v17 = vmax.f32 %v4776_v19, 0.0 }
 0x2e6   :  { %v4136_v56 = vpop.eup %4135  ;;  %4153 = vpow2.f32 %v3257_v12  ;;  %v1468_v14 = vadd.f32 %v3776_v50, %v5033_v34  ;;  %v1459_v55 = vpop.f32.mrb[101].mxu0  ;;  %v1977_v23 = vmul.f32 %v4134_v22, %v5590_v51  ;;  %v1976_v58 = vmul.f32 %v4130_v61, %v5592_v57 }
 0x2e7   :  { %v4138_v32 = vpop.eup %4137  ;;  %4155 = vpow2.f32 %v3255_v49  ;;  %v1460_v44 = vadd.f32 %v5033_v34, %v1459_v55  ;;  %v3777_v6 = vpop.f32.mrb[102].mxu0  ;;  %v1975_v45 = vmul.f32 %v4136_v56, %v5589_v26  ;;  %v5594_v22 = vmax.f32 %v4779_v21, 0.0 }
 0x2e8   :  { %v4140_v43 = vpop.eup %4139  ;;  %v1792_v5 = vadd.f32 1.0, %v4138_v32  ;;  %4157 = vpow2.f32 %v3258_v1  ;;  %v1471_v36 = vadd.f32 %v3777_v6, %v5033_v34  ;;  %v1462_v33 = vpop.f32.mrb[103].mxu0  ;;  %v3261_v39 = vmul.f32 -1.442695, %v1468_v14 }
 0x2e9   :  { %v4142_v63 = vpop.eup %4141  ;;  %v1790_v41 = vadd.f32 1.0, %v4140_v43  ;;  %4159 = vpow2.f32 %v3256_v28  ;;  %v1463_v30 = vadd.f32 %v5033_v34, %v1462_v33  ;;  %v2028_v24 = vpack.c.bf16 %v1975_v45, %v1974_v35 }
 0x2ea   :  { %v4144_v47 = vpop.eup %4143  ;;  %4161 = vrcp.f32 %v1792_v5  ;;  %v1793_v54 = vadd.f32 1.0, %v4142_v63  ;;  %v3259_v8 = vmul.f32 -1.442695, %v1460_v44  ;;  %v2029_v62 = vpack.c.bf16 %v1977_v23, %v1976_v58 }
 0x2eb   :  { %4163 = vrcp.f32 %v1790_v41  ;;  %v1791_v59 = vadd.f32 1.0, %v4144_v47  ;;  %v3262_v46 = vmul.f32 -1.442695, %v1471_v36  ;;  %3838 = vmatprep.mubr.bf16.mxu1 %v2028_v24  ;;  %v3260_v52 = vmul.f32 -1.442695, %v1463_v30 }
 0x2ec   :  { %v4146_v9 = vpop.eup %4145  ;;  %4165 = vrcp.f32 %v1793_v54  ;;  %v5595_v32 = vmax.f32 %v4782_v38, 0.0  ;;  %v5597_v24 = vmax.f32 %v4797_v16, 0.0  ;;  %v5600_v16 = vmax.f32 %v4800_v25, 0.0 }
 0x2ed   :  { %v4148_v40 = vpop.eup %4147  ;;  %4167 = vrcp.f32 %v1791_v59  ;;  %3839 = vmatmul.mubr.bf16.gmra.mrb[84].mxu1 %v2029_v62  ;;  %v3780_v20 = vpop.f32.mrb[104].mxu0  ;;  %v1980_v51 = vmul.f32 %v4146_v9, %v5596_v17 }
 0x2ee   :  { %v4150_v53 = vpop.eup %4149  ;;  %4169 = vpow2.f32 %v3261_v39  ;;  %v1484_v12 = vadd.f32 %v3780_v20, %v5033_v34  ;;  %v1475_v27 = vpop.f32.mrb[105].mxu0  ;;  %v1978_v1 = vmul.f32 %v4148_v40, %v5593_v60  ;;  %v5599_v20 = vmax.f32 %v4806_v42, 0.0 }
 0x2ef   :  { %v4152_v61 = vpop.eup %4151  ;;  %4171 = vpow2.f32 %v3259_v8  ;;  %v1476_v11 = vadd.f32 %v5033_v34, %v1475_v27  ;;  %v3781_v49 = vpop.f32.mrb[106].mxu0  ;;  %v1981_v28 = vmul.f32 %v4150_v53, %v5594_v22  ;;  %v5598_v8 = vmax.f32 %v4803_v4, 0.0 }
 0x2f0   :  { %v4154_v50 = vpop.eup %4153  ;;  %4173 = vpow2.f32 %v3262_v46  ;;  %v3265_v56 = vmul.f32 -1.442695, %v1484_v12  ;;  %v1487_v14 = vadd.f32 %v3781_v49, %v5033_v34  ;;  %v1478_v55 = vpop.f32.mrb[107].mxu0  ;;  %v1979_v44 = vmul.f32 %v4152_v61, %v5595_v32 }
 0x2f1   :  { %v4156_v6 = vpop.eup %4155  ;;  %v1796_v26 = vadd.f32 1.0, %v4154_v50  ;;  %4175 = vpow2.f32 %v3260_v52  ;;  %v1479_v45 = vadd.f32 %v5033_v34, %v1478_v55  ;;  %v3263_v33 = vmul.f32 -1.442695, %v1476_v11 }
 0x2f2   :  { %v4158_v23 = vpop.eup %4157  ;;  %v1794_v21 = vadd.f32 1.0, %v4156_v6  ;;  %4177 = vpow2.f32 %v3265_v56  ;;  %v2030_v43 = vpack.c.bf16 %v1979_v44, %v1978_v1  ;;  %v2031_v48 = vpack.c.bf16 %v1981_v28, %v1980_v51 }
 0x2f3   :  { %v4160_v5 = vpop.eup %4159  ;;  %4179 = vrcp.f32 %v1796_v26  ;;  %v1797_v36 = vadd.f32 1.0, %v4158_v23  ;;  %v3266_v63 = vmul.f32 -1.442695, %v1487_v14  ;;  %v3264_v30 = vmul.f32 -1.442695, %v1479_v45 }
 0x2f4   :  { %v4162_v35 = vpop.eup %4161  ;;  %4181 = vrcp.f32 %v1794_v21  ;;  %v1795_v38 = vadd.f32 1.0, %v4160_v5  ;;  %3842 = vmatprep.mubr.bf16.mxu1 %v2030_v43  ;;  %v5601_v21 = vmax.f32 %v4824_v3, 0.0 }
 0x2f5   :  { %v4164_v41 = vpop.eup %4163  ;;  %4183 = vrcp.f32 %v1797_v36  ;;  %3843 = vmatmul.mubr.bf16.gmra.mrb[88].mxu1 %v2031_v48  ;;  %v3784_v19 = vpop.f32.mrb[108].mxu0  ;;  %v1984_v11 = vmul.f32 %v4162_v35, %v5600_v16  ;;  %v5602_v35 = vmax.f32 %v4827_v37, 0.0 }
 0x2f6   :  { %v4166_v57 = vpop.eup %4165  ;;  %4185 = vrcp.f32 %v1795_v38  ;;  %v1500_v58 = vadd.f32 %v3784_v19, %v5033_v34  ;;  %v1491_v47 = vpop.f32.mrb[109].mxu0  ;;  %v1982_v59 = vmul.f32 %v4164_v41, %v5597_v24 }
 0x2f7   :  { %v4168_v54 = vpop.eup %4167  ;;  %4187 = vpow2.f32 %v3263_v33  ;;  %v3785_v39 = vpop.f32.mrb[110].mxu0  ;;  %v1985_v62 = vmul.f32 %v4166_v57, %v5598_v8  ;;  %v1492_v40 = vadd.f32 %v5033_v34, %v1491_v47  ;;  %v5604_v57 = vmax.f32 %v4830_v10, 0.0 }
 0x2f8   :  { %v4170_v9 = vpop.eup %4169  ;;  %4189 = vpow2.f32 %v3266_v63  ;;  %v3269_v46 = vmul.f32 -1.442695, %v1500_v58  ;;  %v1494_v52 = vpop.f32.mrb[111].mxu0  ;;  %v1983_v53 = vmul.f32 %v4168_v54, %v5599_v20  ;;  %v1503_v61 = vadd.f32 %v3785_v39, %v5033_v34 }
 0x2f9   :  { %v4172_v12 = vpop.eup %4171  ;;  %v1800_v27 = vadd.f32 1.0, %v4170_v9  ;;  %4191 = vpow2.f32 %v3264_v30  ;;  %v1495_v60 = vadd.f32 %v5033_v34, %v1494_v52  ;;  %v2033_v50 = vpack.c.bf16 %v1985_v62, %v1984_v11 }
 0x2fa   :  { %v4174_v49 = vpop.eup %4173  ;;  %v1798_v4 = vadd.f32 1.0, %v4172_v12  ;;  %4193 = vpow2.f32 %v3269_v46  ;;  %v2032_v1 = vpack.c.bf16 %v1983_v53, %v1982_v59  ;;  %v3267_v14 = vmul.f32 -1.442695, %v1492_v40 }
 0x2fb   :  { %v4176_v22 = vpop.eup %4175  ;;  %4195 = vrcp.f32 %v1800_v27  ;;  %v1801_v28 = vadd.f32 1.0, %v4174_v49  ;;  %v3270_v25 = vmul.f32 -1.442695, %v1503_v61  ;;  %v3268_v26 = vmul.f32 -1.442695, %v1495_v60 }
 0x2fc   :  { %v4178_v42 = vpop.eup %4177  ;;  %4197 = vrcp.f32 %v1798_v4  ;;  %v1799_v56 = vadd.f32 1.0, %v4176_v22  ;;  %3846 = vmatprep.mubr.bf16.mxu1 %v2032_v1  ;;  %v5603_v30 = vmax.f32 %v4821_v18, 0.0  ;;  %v5605_v11 = vmax.f32 %v4848_v29, 0.0 }
 0x2fd   :  { %v4180_v55 = vpop.eup %4179  ;;  %4199 = vrcp.f32 %v1801_v28  ;;  %v1804_v32 = vadd.f32 1.0, %v4178_v42  ;;  %3847 = vmatmul.mubr.bf16.gmra.mrb[92].mxu1 %v2033_v50  ;;  %v3788_v44 = vpop.f32.mrb[112].mxu0  ;;  %v5606_v22 = vmax.f32 %v4845_v2, 0.0  ;;  %v5607_v50 = vmax.f32 %v4851_v13, 0.0 }
 0x2fe   :  { %v4182_v6 = vpop.eup %4181  ;;  %4201 = vrcp.f32 %v1799_v56  ;;  %v1516_v45 = vadd.f32 %v3788_v44, %v5033_v34  ;;  %v1507_v17 = vpop.f32.mrb[113].mxu0  ;;  %v1988_v43 = vmul.f32 %v4180_v55, %v5601_v21 }
 0x2ff   :  { %v4184_v51 = vpop.eup %4183  ;;  %4203 = vrcp.f32 %v1804_v32  ;;  %v3789_v23 = vpop.f32.mrb[114].mxu0  ;;  %v1508_v33 = vadd.f32 %v5033_v34, %v1507_v17  ;;  %v1986_v19 = vmul.f32 %v4182_v6, %v5603_v30  ;;  %v5608_v32 = vmax.f32 %v4854_v7, 0.0 }
 0x300   :  { %v4186_v5 = vpop.eup %4185  ;;  %4205 = vpow2.f32 %v3267_v14  ;;  %v3273_v36 = vmul.f32 -1.442695, %v1516_v45  ;;  %v1510_v48 = vpop.f32.mrb[115].mxu0  ;;  %v1989_v38 = vmul.f32 %v4184_v51, %v5602_v35  ;;  %v1519_v41 = vadd.f32 %v3789_v23, %v5033_v34 }
 0x301   :  { %v4188_v63 = vpop.eup %4187  ;;  %4207 = vpow2.f32 %v3270_v25  ;;  %v1987_v3 = vmul.f32 %v4186_v5, %v5604_v57  ;;  %v1511_v54 = vadd.f32 %v5033_v34, %v1510_v48  ;;  %v3271_v9 = vmul.f32 -1.442695, %v1508_v33 }
 0x302   :  { %v4190_v58 = vpop.eup %4189  ;;  %v1802_v47 = vadd.f32 1.0, %v4188_v63  ;;  %4209 = vpow2.f32 %v3268_v26  ;;  %v2035_v39 = vpack.c.bf16 %v1989_v38, %v1988_v43  ;;  %v3274_v40 = vmul.f32 -1.442695, %v1519_v41  ;;  %v4305_v38 = vld [vmem:[%s5461_s4 + $0x2] ss:$0 sm:$0xff] }
 0x303   :  { %v4192_v24 = vpop.eup %4191  ;;  %v1805_v59 = vadd.f32 1.0, %v4190_v58  ;;  %4211 = vpow2.f32 %v3273_v36  ;;  %v2034_v37 = vpack.c.bf16 %v1987_v3, %v1986_v19  ;;  %v3272_v20 = vmul.f32 -1.442695, %v1511_v54 }
 0x304   :  { %v4194_v8 = vpop.eup %4193  ;;  %4213 = vrcp.f32 %v1802_v47  ;;  %v1803_v62 = vadd.f32 1.0, %v4192_v24  ;;  %v5609_v3 = vmax.f32 %v4872_v15, 0.0  ;;  %v5610_v47 = vmax.f32 %v4875_v0, 0.0 }
 0x305   :  { %v4196_v46 = vpop.eup %4195  ;;  %4215 = vrcp.f32 %v1805_v59  ;;  %v1808_v18 = vadd.f32 1.0, %v4194_v8  ;;  %3850 = vmatprep.mubr.bf16.mxu1 %v2034_v37  ;;  %v3792_v10 = vpop.f32.mrb[116].mxu0  ;;  %v5611_v24 = vmax.f32 %v4869_v31, 0.0  ;;  %v5612_v37 = vld [vmem:[#allocation5_spill] sm:$0xff] }
 0x306   :  { %v4198_v52 = vpop.eup %4197  ;;  %4217 = vrcp.f32 %v1803_v62  ;;  %3851 = vmatmul.mubr.bf16.gmra.mrb[96].mxu1 %v2035_v39  ;;  %v1532_v53 = vadd.f32 %v3792_v10, %v5033_v34  ;;  %v1523_v12 = vpop.f32.mrb[117].mxu0  ;;  %v1992_v49 = vmul.f32 %v4196_v46, %v5605_v11  ;;  %v5613_v8 = vmax.f32 %v5612_v37, 0.0  ;;  %v5624_v37 = vld [vmem:[#allocation12_spill] sm:$0xff] }
 0x307   :  { %v4200_v27 = vpop.eup %4199  ;;  %4219 = vrcp.f32 %v1808_v18  ;;  %v1524_v61 = vadd.f32 %v5033_v34, %v1523_v12  ;;  %v3793_v16 = vpop.f32.mrb[118].mxu0  ;;  %v1990_v28 = vmul.f32 %v4198_v52, %v5606_v22 }
 0x308   :  { %v4202_v4 = vpop.eup %4201  ;;  %4221 = vpow2.f32 %v3271_v9  ;;  %v3277_v60 = vmul.f32 -1.442695, %v1532_v53  ;;  %v1526_v1 = vpop.f32.mrb[119].mxu0  ;;  %v1993_v42 = vmul.f32 %v4200_v27, %v5607_v50  ;;  %v1535_v55 = vadd.f32 %v3793_v16, %v5033_v34 }
 0x309   :  { %v4204_v56 = vpop.eup %4203  ;;  %4223 = vpow2.f32 %v3274_v40  ;;  %v3275_v14 = vmul.f32 -1.442695, %v1524_v61  ;;  %v1991_v25 = vmul.f32 %v4202_v4, %v5608_v32  ;;  %v1527_v44 = vadd.f32 %v5033_v34, %v1526_v1  ;;  %v5614_v32 = vld [vmem:[#allocation7_spill] sm:$0xff] }
 0x30a   :  { %v4206_v29 = vpop.eup %4205  ;;  %4225 = vpow2.f32 %v3272_v20  ;;  %v2037_v6 = vpack.c.bf16 %v1993_v42, %v1992_v49  ;;  %v3278_v21 = vmul.f32 -1.442695, %v1535_v55  ;;  %v1996_v58 = vmul.f32 %v4204_v56, %v5609_v3 }
 0x30b   :  { %v4208_v26 = vpop.eup %4207  ;;  %v1806_v45 = vadd.f32 1.0, %v4206_v29  ;;  %4227 = vpow2.f32 %v3277_v60  ;;  %v2036_v2 = vpack.c.bf16 %v1991_v25, %v1990_v28  ;;  %v3276_v36 = vmul.f32 -1.442695, %v1527_v44  ;;  %v5616_v44 = vld [vmem:[#allocation8_spill] sm:$0xff] }
 0x30c   :  { %v4210_v17 = vpop.eup %4209  ;;  %v1809_v13 = vadd.f32 1.0, %v4208_v26  ;;  %4229 = vpow2.f32 %v3275_v14  ;;  %v5615_v25 = vmax.f32 %v5614_v32, 0.0  ;;  %v5634_v32 = vld [vmem:[#allocation15_spill] sm:$0xff] }
 0x30d   :  { %v4212_v51 = vpop.eup %4211  ;;  %4231 = vrcp.f32 %v1806_v45  ;;  %v1807_v23 = vadd.f32 1.0, %v4210_v17  ;;  %3854 = vmatprep.mubr.bf16.mxu1 %v2036_v2  ;;  %v3796_v43 = vpop.f32.mrb[120].mxu0  ;;  %v5618_v17 = vld [vmem:[#allocation6_spill] sm:$0xff] }
 0x30e   :  { %v4214_v7 = vpop.eup %4213  ;;  %4233 = vrcp.f32 %v1809_v13  ;;  %v1812_v5 = vadd.f32 1.0, %v4212_v51  ;;  %3855 = vmatmul.mubr.bf16.gmra.mrb[100].mxu1 %v2037_v6  ;;  %v1548_v33 = vadd.f32 %v3796_v43, %v5033_v34  ;;  %v1539_v48 = vpop.f32.mrb[121].mxu0  ;;  %v5617_v6 = vmax.f32 %v5616_v44, 0.0  ;;  %v5636_v44 = vld [vmem:[#allocation17_spill] sm:$0xff] }
 0x30f   :  { %v4216_v35 = vpop.eup %4215  ;;  %4235 = vrcp.f32 %v1807_v23  ;;  %v1540_v63 = vadd.f32 %v4305_v38, %v1539_v48  ;;  %v3797_v41 = vpop.f32.mrb[122].mxu0  ;;  %v1994_v59 = vmul.f32 %v4214_v7, %v5611_v24  ;;  %v5619_v13 = vmax.f32 %v5618_v17, 0.0  ;;  %v5620_v23 = vld [vmem:[#allocation9_spill] sm:$0xff] }
 0x310   :  { %v4218_v30 = vpop.eup %4217  ;;  %4237 = vrcp.f32 %v1812_v5  ;;  %v3281_v19 = vmul.f32 -1.442695, %v1548_v33  ;;  %v1542_v57 = vpop.f32.mrb[123].mxu0  ;;  %v1997_v54 = vmul.f32 %v4216_v35, %v5610_v47  ;;  %v1551_v46 = vadd.f32 %v4305_v38, %v3797_v41 }
 0x311   :  { %v4220_v34 = vpop.eup %4219  ;;  %4239 = vpow2.f32 %v3278_v21  ;;  %v3279_v39 = vmul.f32 -1.442695, %v1540_v63  ;;  %v1995_v62 = vmul.f32 %v4218_v30, %v5613_v8  ;;  %v1543_v15 = vadd.f32 %v4305_v38, %v1542_v57  ;;  %v4031_v63 = vld [vmem:[%s5459_s2 + $0xf0] sm:$0xff]  }
 0x312   :  { %v4222_v9 = vpop.eup %4221  ;;  %4241 = vpow2.f32 %v3276_v36  ;;  %v2039_v18 = vpack.c.bf16 %v1997_v54, %v1996_v58  ;;  %v3282_v16 = vmul.f32 -1.442695, %v1551_v46  ;;  %v2000_v29 = vmul.f32 %v4220_v34, %v5615_v25  ;;  %3894 = vmatprep.subr.bf16.mxu0 %v4031_v63 }
 0x313   :  { %v4224_v40 = vpop.eup %4223  ;;  %v1810_v10 = vadd.f32 1.0, %v4222_v9  ;;  %4243 = vpow2.f32 %v3281_v19  ;;  %v2038_v52 = vpack.c.bf16 %v1995_v62, %v1994_v59  ;;  %v3280_v1 = vmul.f32 -1.442695, %v1543_v15  ;;  %v4032_v19 = vld [vmem:[%s5459_s2 + $0xf8] sm:$0xff]   ;;  %3895 = vmatpush3.bf16.msra.mxu0 %v4031_v63  ;;  %v5628_v15 = vld [vmem:[#allocation13_spill] sm:$0xff] }
 0x314   :  { %v4226_v0 = vpop.eup %4225  ;;  %v1813_v20 = vadd.f32 1.0, %v4224_v40  ;;  %4245 = vpow2.f32 %v3279_v39  ;;  %v5621_v21 = vmax.f32 %v5620_v23, 0.0  ;;  %3896 = vmatprep.subr.bf16.mxu0 %v4032_v19  ;;  %v5622_v39 = vld [vmem:[#allocation11_spill] sm:$0xff]  ;;  %v5625_v8 = vmax.f32 %v5624_v37, 0.0  ;;  %v5646_v37 = vld [vmem:[#allocation22_spill] sm:$0xff] }
 0x315   :  { %v4228_v53 = vpop.eup %4227  ;;  %4247 = vrcp.f32 %v1810_v10  ;;  %v1811_v12 = vadd.f32 1.0, %v4226_v0  ;;  %3858 = vmatprep.mubr.bf16.mxu1 %v2038_v52  ;;  %v3800_v31 = vpop.f32.mrb[124].mxu0  ;;  %v5623_v24 = vmax.f32 %v5622_v39, 0.0  ;;  %v5629_v52 = vmax.f32 %v5628_v15, 0.0 }
 0x316   :  { %v4230_v27 = vpop.eup %4229  ;;  %4249 = vrcp.f32 %v1813_v20  ;;  %v1816_v61 = vadd.f32 1.0, %v4228_v53  ;;  %3859 = vmatmul.mubr.bf16.gmra.mrb[104].mxu1 %v2039_v18  ;;  %v1564_v11 = vadd.f32 %v4305_v38, %v3800_v31  ;;  %v1555_v49 = vpop.f32.mrb[125].mxu0  ;;  %v5626_v18 = vld [vmem:[#allocation10_spill] sm:$0xff]  ;;  %v5635_v25 = vmax.f32 %v5634_v32, 0.0 }
 0x317   :  { %v4232_v4 = vpop.eup %4231  ;;  %4251 = vrcp.f32 %v1811_v12  ;;  %v1814_v60 = vadd.f32 1.0, %v4230_v27  ;;  %v1556_v22 = vadd.f32 %v4305_v38, %v1555_v49  ;;  %v3801_v28 = vpop.f32.mrb[126].mxu0  ;;  %v5627_v40 = vmax.f32 %v5626_v18, 0.0  ;;  %3897 = vmatpush3.bf16.msra.mxu0 %v4032_v19 }
 0x318   :  { %v4234_v50 = vpop.eup %4233  ;;  %4253 = vrcp.f32 %v1816_v61  ;;  %v3285_v42 = vmul.f32 -1.442695, %v1564_v11  ;;  %v1558_v56 = vpop.f32.mrb[127].mxu0  ;;  %v1567_v2 = vadd.f32 %v4305_v38, %v3801_v28  ;;  %v1998_v51 = vmul.f32 %v4232_v4, %v5619_v13 }
 0x319   :  { %v4236_v14 = vpop.eup %4235  ;;  %4255 = vrcp.f32 %v1814_v60  ;;  %v3283_v55 = vmul.f32 -1.442695, %v1556_v22  ;;  %v2001_v26 = vmul.f32 %v4234_v50, %v5617_v6  ;;  %v1559_v5 = vadd.f32 %v4305_v38, %v1558_v56  ;;  %v5630_v22 = vld [vmem:[#allocation14_spill] sm:$0xff] }
 0x31a   :  { %v4238_v45 = vpop.eup %4237  ;;  %4257 = vpow2.f32 %v3282_v16  ;;  %v1999_v43 = vmul.f32 %v4236_v14, %v5621_v21  ;;  %v3286_v3 = vmul.f32 -1.442695, %v1567_v2  ;;  %v5631_v28 = vmax.f32 %v5630_v22, 0.0 }
 0x31b   :  { %v4240_v7 = vpop.eup %4239  ;;  %4259 = vpow2.f32 %v3280_v1  ;;  %v2041_v36 = vpack.c.bf16 %v2001_v26, %v2000_v29  ;;  %v3284_v58 = vmul.f32 -1.442695, %v1559_v5  ;;  %v2004_v59 = vmul.f32 %v4238_v45, %v5623_v24 }
 0x31c   :  { %v4242_v33 = vpop.eup %4241  ;;  %v1817_v48 = vadd.f32 1.0, %v4240_v7  ;;  %4261 = vpow2.f32 %v3285_v42  ;;  %v2040_v35 = vpack.c.bf16 %v1999_v43, %v1998_v51  ;;  %v5632_v42 = vld [vmem:[#allocation16_spill] sm:$0xff]  ;;  %v5637_v6 = vmax.f32 %v5636_v44, 0.0 }
 0x31d   :  { %v4244_v41 = vpop.eup %4243  ;;  %v1815_v30 = vadd.f32 1.0, %v4242_v33  ;;  %4263 = vpow2.f32 %v3283_v55  ;;  %v5633_v56 = vmax.f32 %v5632_v42, 0.0 }
 0x31e   :  { %v4246_v57 = vpop.eup %4245  ;;  %4265 = vrcp.f32 %v1817_v48  ;;  %3862 = vmatprep.mubr.bf16.mxu1 %v2040_v35  ;;  %v1820_v34 = vadd.f32 1.0, %v4244_v41  ;;  %v5640_v35 = vld [vmem:[#allocation20_spill] sm:$0xff] }
 0x31f   :  { %v4248_v38 = vpop.eup %4247  ;;  %4267 = vrcp.f32 %v1815_v30  ;;  %3863 = vmatmul.mubr.bf16.gmra.mrb[108].mxu1 %v2041_v36  ;;  %v1818_v46 = vadd.f32 1.0, %v4246_v57  ;;  %v5638_v36 = vld [vmem:[#allocation18_spill] sm:$0xff]  ;;  %v5641_v63 = vmax.f32 %v5640_v35, 0.0  ;;  %v5642_v30 = vld [vmem:[#allocation19_spill] sm:$0xff] }
 0x320   :  { %v4250_v47 = vpop.eup %4249  ;;  %4269 = vpow2.f32 %v3286_v3  ;;  %v2002_v10 = vmul.f32 %v4248_v38, %v5627_v40  ;;  %v5639_v33 = vmax.f32 %v5638_v36, 0.0  ;;  %v5643_v19 = vmax.f32 %v5642_v30, 0.0  ;;  %v5644_v3 = vld [vmem:[#allocation21_spill] sm:$0xff]  ;;  %v5650_v40 = vld [vmem:[#allocation23_spill] sm:$0xff] }
 0x321   :  { %v4252_v54 = vpop.eup %4251  ;;  %v2005_v62 = vmul.f32 %v4250_v47, %v5625_v8  ;;  %4271 = vpow2.f32 %v3284_v58  ;;  %v5645_v38 = vmax.f32 %v5644_v3, 0.0  ;;  %v5647_v8 = vmax.f32 %v5646_v37, 0.0 }
 0x322   :  { %v4254_v9 = vpop.eup %4253  ;;  %v2003_v0 = vmul.f32 %v4252_v54, %v5629_v52  ;;  %4273 = vrcp.f32 %v1820_v34  ;;  %v5652_v52 = vld [vmem:[#allocation25_spill] sm:$0xff] }
 0x323   :  { %v4256_v20 = vpop.eup %4255  ;;  %v2043_v53 = vpack.c.bf16 %v2005_v62, %v2004_v59  ;;  %4275 = vrcp.f32 %v1818_v46  ;;  %v2008_v50 = vmul.f32 %v4254_v9, %v5631_v28  ;;  %v5648_v9 = vld [vmem:[#allocation24_spill] sm:$0xff] }
 0x324   :  { %v4258_v12 = vpop.eup %4257  ;;  %v2042_v31 = vpack.c.bf16 %v2003_v0, %v2002_v10  ;;  %v2006_v29 = vmul.f32 %v4256_v20, %v5635_v25  ;;  %v5649_v46 = vmax.f32 %v5648_v9, 0.0  ;;  %v5651_v10 = vmax.f32 %v5650_v40, 0.0 }
 0x325   :  { %v4260_v27 = vpop.eup %4259  ;;  %v1821_v61 = vadd.f32 1.0, %v4258_v12  ;;  %v5653_v0 = vmax.f32 %v5652_v52, 0.0 }
 0x326   :  { %v4262_v16 = vpop.eup %4261  ;;  %v1819_v11 = vadd.f32 1.0, %v4260_v27  ;;  %3866 = vmatprep.mubr.bf16.mxu1 %v2042_v31  ;;  %v5250_v31 = vld [vmem:[%s5461_s4 + $0x3] ss:$0 sm:$0xff] }
 0x327   :  { %v4264_v49 = vpop.eup %4263  ;;  %4277 = vrcp.f32 %v1821_v61  ;;  %3867 = vmatmul.mubr.bf16.gmra.mrb[112].mxu1 %v2043_v53  ;;  %v1824_v1 = vadd.f32 1.0, %v4262_v16 }
 0x328   :  { %v4266_v4 = vpop.eup %4265  ;;  %4279 = vrcp.f32 %v1819_v11  ;;  %v1822_v55 = vadd.f32 1.0, %v4264_v49 }
 0x329   :  { %v4268_v60 = vpop.eup %4267  ;;  %v2009_v14 = vmul.f32 %v4266_v4, %v5633_v56  ;;  %4281 = vrcp.f32 %v1824_v1 }
 0x32a   :  { %v2007_v26 = vmul.f32 %v4268_v60, %v5637_v6  ;;  %v4270_v2 = vpop.eup %4269  ;;  %4283 = vrcp.f32 %v1822_v55 }
 0x32b   :  { %v2045_v45 = vpack.c.bf16 %v2009_v14, %v2008_v50  ;;  %v4272_v13 = vpop.eup %4271  ;;  %v1825_v51 = vadd.f32 1.0, %v4270_v2 }
 0x32c   :  { %v2044_v17 = vpack.c.bf16 %v2007_v26, %v2006_v29  ;;  %v1823_v23 = vadd.f32 1.0, %v4272_v13  ;;  %v4274_v21 = vpop.eup %4273 }
 0x32d   :  { %4285 = vrcp.f32 %v1825_v51  ;;  %v4276_v43 = vpop.eup %4275  ;;  %v2012_v48 = vmul.f32 %v4274_v21, %v5639_v33 }
 0x32e   :  { %3870 = vmatprep.mubr.bf16.mxu1 %v2044_v17  ;;  %4287 = vrcp.f32 %v1823_v23  ;;  %v2010_v57 = vmul.f32 %v4276_v43, %v5643_v19 }
 0x32f   :  { %3871 = vmatmul.mubr.bf16.gmra.mrb[116].mxu1 %v2045_v45 }
 0x331   :  { %v4278_v7 = vpop.eup %4277 }
 0x332   :  { %v4280_v5 = vpop.eup %4279  ;;  %v2013_v41 = vmul.f32 %v4278_v7, %v5641_v63 }
 0x333   :  { %v2011_v58 = vmul.f32 %v4280_v5, %v5645_v38  ;;  %v4282_v34 = vpop.eup %4281 }
 0x334   :  { %v2047_v47 = vpack.c.bf16 %v2013_v41, %v2012_v48  ;;  %v4284_v39 = vpop.eup %4283  ;;  %v2016_v62 = vmul.f32 %v4282_v34, %v5647_v8 }
 0x335   :  { %v2046_v54 = vpack.c.bf16 %v2011_v58, %v2010_v57  ;;  %v2014_v15 = vmul.f32 %v4284_v39, %v5651_v10 }
 0x337   :  { %3874 = vmatprep.mubr.bf16.mxu1 %v2046_v54  ;;  %v4286_v24 = vpop.eup %4285 }
 0x338   :  { %3875 = vmatmul.mubr.bf16.gmra.mrb[120].mxu1 %v2047_v47  ;;  %v4288_v59 = vpop.eup %4287  ;;  %v2017_v18 = vmul.f32 %v4286_v24, %v5649_v46 }
 0x339   :  { %v2015_v20 = vmul.f32 %v4288_v59, %v5653_v0 }
 0x33a   :  { %v2049_v53 = vpack.c.bf16 %v2017_v18, %v2016_v62 }
 0x33b   :  { %v2048_v12 = vpack.c.bf16 %v2015_v20, %v2014_v15 }
 0x33d   :  { %3878 = vmatprep.mubr.bf16.mxu1 %v2048_v12 }
 0x340   :  { %3879 = vmatmul.mubr.bf16.gmra.mrb[124].mxu1 %v2049_v53 }
 0x395   :  { %v3820_v27 = vpop.f32.mrb[64].mxu1 }
 0x396   :  { %v2163_v61 = vadd.f32 %v3820_v27, %v5250_v31  ;;  %v2154_v16 = vpop.f32.mrb[65].mxu1 }
 0x397   :  { %v2155_v11 = vadd.f32 %v5250_v31, %v2154_v16  ;;  %v3821_v49 = vpop.f32.mrb[66].mxu1 }
 0x398   :  { %v2166_v4 = vadd.f32 %v3821_v49, %v5250_v31  ;;  %v2157_v60 = vpop.f32.mrb[67].mxu1  ;;  %v2411_v22 = vmax.f32 %v2163_v61, 0.0 }
 0x399   :  { %v2158_v1 = vadd.f32 %v5250_v31, %v2157_v60  ;;  %v2409_v50 = vmax.f32 %v2155_v11, 0.0 }
 0x39a   :  { %v2412_v28 = vmax.f32 %v2166_v4, 0.0 }
 0x39b   :  { %v2410_v42 = vmax.f32 %v2158_v1, 0.0 }
 0x39c   :  { %v2474_v56 = vpack.c.bf16 %v2412_v28, %v2411_v22 }
 0x39d   :  { %v2473_v14 = vpack.c.bf16 %v2410_v42, %v2409_v50  ;;  %v3824_v55 = vpop.f32.mrb[68].mxu1 }
 0x39e   :  { %v2179_v32 = vadd.f32 %v3824_v55, %v5250_v31  ;;  %v2170_v25 = vpop.f32.mrb[69].mxu1 }
 0x39f   :  { %v2171_v29 = vadd.f32 %v5250_v31, %v2170_v25  ;;  %v3825_v44 = vpop.f32.mrb[70].mxu1  ;;  %3898 = vmatprep.mubr.bf16.mxu0 %v2473_v14 }
 0x3a0   :  { %v2182_v6 = vadd.f32 %v3825_v44, %v5250_v31  ;;  %v2173_v26 = vpop.f32.mrb[71].mxu1  ;;  %3899 = vmatmul.mubr.bf16.vlgmr.msra.gmra.mrb[128].mxu0 %v2474_v56  ;;  %v2415_v2 = vmax.f32 %v2179_v32, 0.0 }
 0x3a1   :  { %v2174_v45 = vadd.f32 %v5250_v31, %v2173_v26  ;;  %v2413_v13 = vmax.f32 %v2171_v29, 0.0 }
 0x3a2   :  { %v2416_v17 = vmax.f32 %v2182_v6, 0.0 }
 0x3a3   :  { %v2414_v51 = vmax.f32 %v2174_v45, 0.0 }
 0x3a4   :  { %v2476_v23 = vpack.c.bf16 %v2416_v17, %v2415_v2 }
 0x3a5   :  { %v2475_v21 = vpack.c.bf16 %v2414_v51, %v2413_v13 }
 0x3a6   :  { %v3828_v43 = vpop.f32.mrb[72].mxu1 }
 0x3a7   :  { %v2195_v7 = vadd.f32 %v3828_v43, %v5250_v31  ;;  %v2186_v5 = vpop.f32.mrb[73].mxu1  ;;  %3902 = vmatprep.mubr.bf16.mxu0 %v2475_v21 }
 0x3a8   :  { %v2187_v36 = vadd.f32 %v5250_v31, %v2186_v5  ;;  %v3829_v33 = vpop.f32.mrb[74].mxu1  ;;  %3903 = vmatmul.mubr.bf16.gmra.mrb[132].mxu0 %v2476_v23 }
 0x3a9   :  { %v2198_v48 = vadd.f32 %v3829_v33, %v5250_v31  ;;  %v2189_v35 = vpop.f32.mrb[75].mxu1  ;;  %v2419_v41 = vmax.f32 %v2195_v7, 0.0 }
 0x3aa   :  { %v2190_v63 = vadd.f32 %v5250_v31, %v2189_v35  ;;  %v2417_v19 = vmax.f32 %v2187_v36, 0.0 }
 0x3ab   :  { %v2420_v30 = vmax.f32 %v2198_v48, 0.0 }
 0x3ac   :  { %v2418_v57 = vmax.f32 %v2190_v63, 0.0 }
 0x3ad   :  { %v2478_v3 = vpack.c.bf16 %v2420_v30, %v2419_v41 }
 0x3ae   :  { %v2477_v38 = vpack.c.bf16 %v2418_v57, %v2417_v19 }
 0x3b0   :  { %v3832_v58 = vpop.f32.mrb[76].mxu1  ;;  %3906 = vmatprep.mubr.bf16.mxu0 %v2477_v38 }
 0x3b1   :  { %v2211_v47 = vadd.f32 %v3832_v58, %v5250_v31  ;;  %v2202_v54 = vpop.f32.mrb[77].mxu1  ;;  %3907 = vmatmul.mubr.bf16.gmra.mrb[136].mxu0 %v2478_v3 }
 0x3b2   :  { %v2203_v34 = vadd.f32 %v5250_v31, %v2202_v54  ;;  %v3833_v39 = vpop.f32.mrb[78].mxu1 }
 0x3b3   :  { %v2214_v24 = vadd.f32 %v3833_v39, %v5250_v31  ;;  %v2205_v59 = vpop.f32.mrb[79].mxu1  ;;  %v2423_v8 = vmax.f32 %v2211_v47, 0.0 }
 0x3b4   :  { %v2206_v37 = vadd.f32 %v5250_v31, %v2205_v59  ;;  %v2421_v9 = vmax.f32 %v2203_v34, 0.0 }
 0x3b5   :  { %v2424_v62 = vmax.f32 %v2214_v24, 0.0 }
 0x3b6   :  { %v2422_v46 = vmax.f32 %v2206_v37, 0.0 }
 0x3b7   :  { %v2480_v18 = vpack.c.bf16 %v2424_v62, %v2423_v8 }
 0x3b8   :  { %v2479_v40 = vpack.c.bf16 %v2422_v46, %v2421_v9  ;;  %v3836_v10 = vpop.f32.mrb[80].mxu1 }
 0x3b9   :  { %v2227_v15 = vadd.f32 %v3836_v10, %v5250_v31  ;;  %v2218_v52 = vpop.f32.mrb[81].mxu1 }
 0x3ba   :  { %v2219_v0 = vadd.f32 %v5250_v31, %v2218_v52  ;;  %v3837_v20 = vpop.f32.mrb[82].mxu1  ;;  %3910 = vmatprep.mubr.bf16.mxu0 %v2479_v40 }
 0x3bb   :  { %v2230_v53 = vadd.f32 %v3837_v20, %v5250_v31  ;;  %v2221_v12 = vpop.f32.mrb[83].mxu1  ;;  %3911 = vmatmul.mubr.bf16.gmra.mrb[140].mxu0 %v2480_v18  ;;  %v2427_v61 = vmax.f32 %v2227_v15, 0.0 }
 0x3bc   :  { %v2222_v27 = vadd.f32 %v5250_v31, %v2221_v12  ;;  %v2425_v11 = vmax.f32 %v2219_v0, 0.0 }
 0x3bd   :  { %v2428_v16 = vmax.f32 %v2230_v53, 0.0 }
 0x3be   :  { %v2426_v49 = vmax.f32 %v2222_v27, 0.0 }
 0x3bf   :  { %v2482_v4 = vpack.c.bf16 %v2428_v16, %v2427_v61 }
 0x3c0   :  { %v2481_v60 = vpack.c.bf16 %v2426_v49, %v2425_v11  ;;  %v3840_v1 = vpop.f32.mrb[84].mxu1 }
 0x3c1   :  { %v2243_v22 = vadd.f32 %v3840_v1, %v5250_v31  ;;  %v2234_v28 = vpop.f32.mrb[85].mxu1 }
 0x3c2   :  { %v2235_v50 = vadd.f32 %v5250_v31, %v2234_v28  ;;  %v3841_v42 = vpop.f32.mrb[86].mxu1  ;;  %3914 = vmatprep.mubr.bf16.mxu0 %v2481_v60 }
 0x3c3   :  { %v2246_v56 = vadd.f32 %v3841_v42, %v5250_v31  ;;  %v2237_v14 = vpop.f32.mrb[87].mxu1  ;;  %3915 = vmatmul.mubr.bf16.gmra.mrb[144].mxu0 %v2482_v4  ;;  %v2431_v32 = vmax.f32 %v2243_v22, 0.0 }
 0x3c4   :  { %v2238_v55 = vadd.f32 %v5250_v31, %v2237_v14  ;;  %v2429_v29 = vmax.f32 %v2235_v50, 0.0 }
 0x3c5   :  { %v2432_v25 = vmax.f32 %v2246_v56, 0.0 }
 0x3c6   :  { %v2430_v44 = vmax.f32 %v2238_v55, 0.0 }
 0x3c7   :  { %v2484_v6 = vpack.c.bf16 %v2432_v25, %v2431_v32 }
 0x3c8   :  { %v2483_v26 = vpack.c.bf16 %v2430_v44, %v2429_v29  ;;  %v3844_v45 = vpop.f32.mrb[88].mxu1 }
 0x3c9   :  { %v2259_v2 = vadd.f32 %v3844_v45, %v5250_v31  ;;  %v2250_v17 = vpop.f32.mrb[89].mxu1 }
 0x3ca   :  { %v2251_v13 = vadd.f32 %v5250_v31, %v2250_v17  ;;  %v3845_v51 = vpop.f32.mrb[90].mxu1  ;;  %3918 = vmatprep.mubr.bf16.mxu0 %v2483_v26 }
 0x3cb   :  { %v2262_v23 = vadd.f32 %v3845_v51, %v5250_v31  ;;  %v2253_v21 = vpop.f32.mrb[91].mxu1  ;;  %3919 = vmatmul.mubr.bf16.gmra.mrb[148].mxu0 %v2484_v6  ;;  %v2435_v7 = vmax.f32 %v2259_v2, 0.0 }
 0x3cc   :  { %v2254_v43 = vadd.f32 %v5250_v31, %v2253_v21  ;;  %v2433_v36 = vmax.f32 %v2251_v13, 0.0 }
 0x3cd   :  { %v2436_v5 = vmax.f32 %v2262_v23, 0.0 }
 0x3ce   :  { %v2434_v33 = vmax.f32 %v2254_v43, 0.0 }
 0x3cf   :  { %v2486_v48 = vpack.c.bf16 %v2436_v5, %v2435_v7 }
 0x3d0   :  { %v2485_v35 = vpack.c.bf16 %v2434_v33, %v2433_v36  ;;  %v3848_v63 = vpop.f32.mrb[92].mxu1 }
 0x3d1   :  { %v2275_v41 = vadd.f32 %v3848_v63, %v5250_v31  ;;  %v2266_v30 = vpop.f32.mrb[93].mxu1 }
 0x3d2   :  { %v2267_v19 = vadd.f32 %v5250_v31, %v2266_v30  ;;  %v3849_v57 = vpop.f32.mrb[94].mxu1  ;;  %3922 = vmatprep.mubr.bf16.mxu0 %v2485_v35 }
 0x3d3   :  { %v2278_v3 = vadd.f32 %v3849_v57, %v5250_v31  ;;  %v2269_v38 = vpop.f32.mrb[95].mxu1  ;;  %3923 = vmatmul.mubr.bf16.gmra.mrb[152].mxu0 %v2486_v48  ;;  %v2439_v47 = vmax.f32 %v2275_v41, 0.0 }
 0x3d4   :  { %v2270_v58 = vadd.f32 %v5250_v31, %v2269_v38  ;;  %v2437_v34 = vmax.f32 %v2267_v19, 0.0 }
 0x3d5   :  { %v2440_v54 = vmax.f32 %v2278_v3, 0.0 }
 0x3d6   :  { %v2438_v39 = vmax.f32 %v2270_v58, 0.0 }
 0x3d7   :  { %v2488_v24 = vpack.c.bf16 %v2440_v54, %v2439_v47 }
 0x3d8   :  { %v2487_v59 = vpack.c.bf16 %v2438_v39, %v2437_v34 }
 0x3d9   :  { %v3852_v37 = vpop.f32.mrb[96].mxu1 }
 0x3da   :  { %v2291_v8 = vadd.f32 %v3852_v37, %v5250_v31  ;;  %v2282_v62 = vpop.f32.mrb[97].mxu1  ;;  %3926 = vmatprep.mubr.bf16.mxu0 %v2487_v59 }
 0x3db   :  { %v2283_v9 = vadd.f32 %v5250_v31, %v2282_v62  ;;  %v3853_v46 = vpop.f32.mrb[98].mxu1  ;;  %3927 = vmatmul.mubr.bf16.gmra.mrb[156].mxu0 %v2488_v24 }
 0x3dc   :  { %v2294_v18 = vadd.f32 %v3853_v46, %v5250_v31  ;;  %v2285_v40 = vpop.f32.mrb[99].mxu1  ;;  %v2443_v15 = vmax.f32 %v2291_v8, 0.0 }
 0x3dd   :  { %v2286_v10 = vadd.f32 %v5250_v31, %v2285_v40  ;;  %v2441_v0 = vmax.f32 %v2283_v9, 0.0 }
 0x3de   :  { %v2444_v52 = vmax.f32 %v2294_v18, 0.0 }
 0x3df   :  { %v2442_v20 = vmax.f32 %v2286_v10, 0.0 }
 0x3e0   :  { %v2490_v53 = vpack.c.bf16 %v2444_v52, %v2443_v15 }
 0x3e1   :  { %v2489_v12 = vpack.c.bf16 %v2442_v20, %v2441_v0  ;;  %v3856_v27 = vpop.f32.mrb[100].mxu1 }
 0x3e2   :  { %v2307_v61 = vadd.f32 %v3856_v27, %v5250_v31  ;;  %v2298_v16 = vpop.f32.mrb[101].mxu1 }
 0x3e3   :  { %v2299_v11 = vadd.f32 %v5250_v31, %v2298_v16  ;;  %v3857_v49 = vpop.f32.mrb[102].mxu1  ;;  %3930 = vmatprep.mubr.bf16.mxu0 %v2489_v12 }
 0x3e4   :  { %v2310_v4 = vadd.f32 %v3857_v49, %v5250_v31  ;;  %v2301_v60 = vpop.f32.mrb[103].mxu1  ;;  %3931 = vmatmul.mubr.bf16.gmra.mrb[160].mxu0 %v2490_v53  ;;  %v2447_v22 = vmax.f32 %v2307_v61, 0.0 }
 0x3e5   :  { %v2302_v1 = vadd.f32 %v5250_v31, %v2301_v60  ;;  %v2445_v50 = vmax.f32 %v2299_v11, 0.0 }
 0x3e6   :  { %v2448_v28 = vmax.f32 %v2310_v4, 0.0 }
 0x3e7   :  { %v2446_v42 = vmax.f32 %v2302_v1, 0.0 }
 0x3e8   :  { %v2492_v56 = vpack.c.bf16 %v2448_v28, %v2447_v22 }
 0x3e9   :  { %v2491_v14 = vpack.c.bf16 %v2446_v42, %v2445_v50  ;;  %v3860_v55 = vpop.f32.mrb[104].mxu1 }
 0x3ea   :  { %v2323_v32 = vadd.f32 %v3860_v55, %v5250_v31  ;;  %v2314_v25 = vpop.f32.mrb[105].mxu1 }
 0x3eb   :  { %v2315_v29 = vadd.f32 %v5250_v31, %v2314_v25  ;;  %v3861_v44 = vpop.f32.mrb[106].mxu1  ;;  %3934 = vmatprep.mubr.bf16.mxu0 %v2491_v14 }
 0x3ec   :  { %v2326_v6 = vadd.f32 %v3861_v44, %v5250_v31  ;;  %v2317_v26 = vpop.f32.mrb[107].mxu1  ;;  %3935 = vmatmul.mubr.bf16.gmra.mrb[164].mxu0 %v2492_v56  ;;  %v2451_v2 = vmax.f32 %v2323_v32, 0.0 }
 0x3ed   :  { %v2318_v45 = vadd.f32 %v5250_v31, %v2317_v26  ;;  %v2449_v13 = vmax.f32 %v2315_v29, 0.0 }
 0x3ee   :  { %v2452_v17 = vmax.f32 %v2326_v6, 0.0 }
 0x3ef   :  { %v2450_v51 = vmax.f32 %v2318_v45, 0.0 }
 0x3f0   :  { %v2494_v23 = vpack.c.bf16 %v2452_v17, %v2451_v2 }
 0x3f1   :  { %v2493_v21 = vpack.c.bf16 %v2450_v51, %v2449_v13 }
 0x3f2   :  { %v3864_v43 = vpop.f32.mrb[108].mxu1 }
 0x3f3   :  { %v2339_v7 = vadd.f32 %v3864_v43, %v5250_v31  ;;  %v2330_v5 = vpop.f32.mrb[109].mxu1  ;;  %3938 = vmatprep.mubr.bf16.mxu0 %v2493_v21 }
 0x3f4   :  { %v2331_v36 = vadd.f32 %v5250_v31, %v2330_v5  ;;  %v3865_v33 = vpop.f32.mrb[110].mxu1  ;;  %3939 = vmatmul.mubr.bf16.gmra.mrb[168].mxu0 %v2494_v23 }
 0x3f5   :  { %v2342_v48 = vadd.f32 %v3865_v33, %v5250_v31  ;;  %v2333_v35 = vpop.f32.mrb[111].mxu1  ;;  %v2455_v41 = vmax.f32 %v2339_v7, 0.0 }
 0x3f6   :  { %v2334_v63 = vadd.f32 %v5250_v31, %v2333_v35  ;;  %v2453_v19 = vmax.f32 %v2331_v36, 0.0 }
 0x3f7   :  { %v2456_v30 = vmax.f32 %v2342_v48, 0.0 }
 0x3f8   :  { %v2454_v57 = vmax.f32 %v2334_v63, 0.0  ;;  %v5319_v63 = vld [vmem:[%s5460_s3] sm:$0x1] }
 0x3f9   :  { %v2496_v3 = vpack.c.bf16 %v2456_v30, %v2455_v41  ;;  %3552 = vmatprep.mubr.bf16.mxu1 %v5319_v63  ;;  %v5325_v41 = vld [vmem:[%s5461_s4 + $0x4] ss:$0 sm:$0xff] }
 0x3fa   :  { %v2495_v38 = vpack.c.bf16 %v2454_v57, %v2453_v19  ;;  %v3868_v58 = vpop.f32.mrb[112].mxu1 }
 0x3fb   :  { %v2355_v47 = vadd.f32 %v3868_v58, %v5250_v31  ;;  %v2346_v54 = vpop.f32.mrb[113].mxu1 }
 0x3fc   :  { %v2347_v34 = vadd.f32 %v5250_v31, %v2346_v54  ;;  %v3869_v39 = vpop.f32.mrb[114].mxu1  ;;  %3942 = vmatprep.mubr.bf16.mxu0 %v2495_v38 }
 0x3fd   :  { %v2358_v24 = vadd.f32 %v3869_v39, %v5250_v31  ;;  %v2349_v59 = vpop.f32.mrb[115].mxu1  ;;  %3943 = vmatmul.mubr.bf16.gmra.mrb[172].mxu0 %v2496_v3  ;;  %v2459_v8 = vmax.f32 %v2355_v47, 0.0 }
 0x3fe   :  { %v2350_v37 = vadd.f32 %v5250_v31, %v2349_v59  ;;  %v2457_v9 = vmax.f32 %v2347_v34, 0.0 }
 0x3ff   :  { %v2460_v62 = vmax.f32 %v2358_v24, 0.0 }
 0x400   :  { %v2458_v46 = vmax.f32 %v2350_v37, 0.0 }
 0x401   :  { %v2498_v18 = vpack.c.bf16 %v2460_v62, %v2459_v8 }
 0x402   :  { %v2497_v40 = vpack.c.bf16 %v2458_v46, %v2457_v9  ;;  %v3872_v10 = vpop.f32.mrb[116].mxu1 }
 0x403   :  { %v2371_v15 = vadd.f32 %v3872_v10, %v5250_v31  ;;  %v2362_v52 = vpop.f32.mrb[117].mxu1 }
 0x404   :  { %v2363_v0 = vadd.f32 %v5250_v31, %v2362_v52  ;;  %v3873_v20 = vpop.f32.mrb[118].mxu1  ;;  %3946 = vmatprep.mubr.bf16.mxu0 %v2497_v40 }
 0x405   :  { %v2374_v53 = vadd.f32 %v3873_v20, %v5250_v31  ;;  %v2365_v12 = vpop.f32.mrb[119].mxu1  ;;  %3947 = vmatmul.mubr.bf16.gmra.mrb[176].mxu0 %v2498_v18  ;;  %v2463_v61 = vmax.f32 %v2371_v15, 0.0 }
 0x406   :  { %v2366_v27 = vadd.f32 %v5250_v31, %v2365_v12  ;;  %v2461_v11 = vmax.f32 %v2363_v0, 0.0 }
 0x407   :  { %v2464_v16 = vmax.f32 %v2374_v53, 0.0 }
 0x408   :  { %v2462_v49 = vmax.f32 %v2366_v27, 0.0 }
 0x409   :  { %v2500_v4 = vpack.c.bf16 %v2464_v16, %v2463_v61 }
 0x40a   :  { %v2499_v60 = vpack.c.bf16 %v2462_v49, %v2461_v11 }
 0x40b   :  { %v3876_v1 = vpop.f32.mrb[120].mxu1 }
 0x40c   :  { %v2387_v22 = vadd.f32 %v3876_v1, %v5250_v31  ;;  %v2378_v28 = vpop.f32.mrb[121].mxu1  ;;  %3950 = vmatprep.mubr.bf16.mxu0 %v2499_v60 }
 0x40d   :  { %v2379_v50 = vadd.f32 %v5250_v31, %v2378_v28  ;;  %v3877_v42 = vpop.f32.mrb[122].mxu1  ;;  %3951 = vmatmul.mubr.bf16.gmra.mrb[180].mxu0 %v2500_v4 }
 0x40e   :  { %v2390_v56 = vadd.f32 %v3877_v42, %v5250_v31  ;;  %v2381_v14 = vpop.f32.mrb[123].mxu1  ;;  %v2467_v32 = vmax.f32 %v2387_v22, 0.0 }
 0x40f   :  { %v2382_v55 = vadd.f32 %v5250_v31, %v2381_v14  ;;  %v2465_v29 = vmax.f32 %v2379_v50, 0.0 }
 0x410   :  { %v2468_v25 = vmax.f32 %v2390_v56, 0.0 }
 0x411   :  { %v2466_v44 = vmax.f32 %v2382_v55, 0.0 }
 0x412   :  { %v2502_v6 = vpack.c.bf16 %v2468_v25, %v2467_v32 }
 0x413   :  { %v2501_v26 = vpack.c.bf16 %v2466_v44, %v2465_v29  ;;  %v3880_v45 = vpop.f32.mrb[124].mxu1 }
 0x414   :  { %v2403_v2 = vadd.f32 %v3880_v45, %v5250_v31  ;;  %v2394_v17 = vpop.f32.mrb[125].mxu1 }
 0x415   :  { %v2395_v13 = vadd.f32 %v5250_v31, %v2394_v17  ;;  %v3881_v51 = vpop.f32.mrb[126].mxu1  ;;  %3954 = vmatprep.mubr.bf16.mxu0 %v2501_v26 }
 0x416   :  { %v2406_v23 = vadd.f32 %v3881_v51, %v5250_v31  ;;  %v2397_v21 = vpop.f32.mrb[127].mxu1  ;;  %3955 = vmatmul.mubr.bf16.gmra.mrb[184].mxu0 %v2502_v6  ;;  %v2471_v7 = vmax.f32 %v2403_v2, 0.0 }
 0x417   :  { %v2398_v43 = vadd.f32 %v5250_v31, %v2397_v21  ;;  %v2469_v36 = vmax.f32 %v2395_v13, 0.0 }
 0x418   :  { %v2472_v5 = vmax.f32 %v2406_v23, 0.0 }
 0x419   :  { %v2470_v33 = vmax.f32 %v2398_v43, 0.0 }
 0x41a   :  { %v2504_v48 = vpack.c.bf16 %v2472_v5, %v2471_v7 }
 0x41b   :  { %v2503_v35 = vpack.c.bf16 %v2470_v33, %v2469_v36 }
 0x41d   :  { %3958 = vmatprep.mubr.bf16.mxu0 %v2503_v35 }
 0x41e   :  { %3959 = vmatmul.mubr.bf16.gmra.mrb[188].mxu0 %v2504_v48 }
 0x473   :  { %v3900_v31 = vpop.f32.mrb[128].mxu0 }
 0x474   :  { %v2618_v30 = vadd.f32 %v3900_v31, %v5325_v41  ;;  %v2609_v19 = vpop.f32.mrb[129].mxu0 }
 0x475   :  { %v2610_v57 = vadd.f32 %v5325_v41, %v2609_v19  ;;  %v3901_v3 = vpop.f32.mrb[130].mxu0 }
 0x476   :  { %v2621_v38 = vadd.f32 %v3901_v3, %v5325_v41  ;;  %v2612_v58 = vpop.f32.mrb[131].mxu0  ;;  %v2866_v54 = vmax.f32 %v2618_v30, 0.0 }
 0x477   :  { %v2613_v47 = vadd.f32 %v5325_v41, %v2612_v58  ;;  %v2864_v39 = vmax.f32 %v2610_v57, 0.0 }
 0x478   :  { %v2867_v34 = vmax.f32 %v2621_v38, 0.0 }
 0x479   :  { %v2865_v24 = vmax.f32 %v2613_v47, 0.0 }
 0x47a   :  { %v5331_v59 = vpack.c.bf16 %v2867_v34, %v2866_v54 }
 0x47b   :  { %v5333_v37 = vpack.c.bf16 %v2865_v24, %v2864_v39  ;;  %v3904_v8 = vpop.f32.mrb[132].mxu0 }
 0x47c   :  { %v2634_v62 = vadd.f32 %v3904_v8, %v5325_v41  ;;  %v2625_v9 = vpop.f32.mrb[133].mxu0 }
 0x47d   :  { %v2626_v46 = vadd.f32 %v5325_v41, %v2625_v9  ;;  %v3905_v18 = vpop.f32.mrb[134].mxu0 }
 0x47e   :  { %v2637_v40 = vadd.f32 %v3905_v18, %v5325_v41  ;;  %v2628_v10 = vpop.f32.mrb[135].mxu0  ;;  %v2870_v52 = vmax.f32 %v2634_v62, 0.0  ;;  %v2961_v18 = vld [vmem:[%s5461_s4 + $0x5] sm:$0x1]  ;;  %s4332_s4 = smov [#allocation2]  }
 0x47f   :  { %v2629_v15 = vadd.f32 %v5325_v41, %v2628_v10  ;;  %v2868_v20 = vmax.f32 %v2626_v46, 0.0  ;;  %s3113_s7 = sshll.u32 %s4332_s4, 4  ;;  %s3114_s7 = int_to_ptr.vmem [resolvable:$true] %s3113_s7 }
 0x480   :  { %v2871_v0 = vmax.f32 %v2637_v40, 0.0  ;;  %s4306_s8 = scalar_lea.vmem %s3114_s7, 64  ;;  %p4311_p1 = scmp.lt.s32.totalorder %s3114_s7, %s3114_s7 }
 0x481   :  { %v2869_v53 = vmax.f32 %v2629_v15, 0.0  ;;  %v4330_v15 = vmov 0   ;;  %p4307_p0 = scmp.ne.s32.totalorder %s3114_s7, %s4306_s8  ;;  %p4312_p2 = scmp.lt.s32.totalorder %s4306_s8, %s4306_s8 }
 0x482   :  { %v5339_v12 = vpack.c.bf16 %v2871_v0, %v2870_v52  ;;  %3965 = vset.pattern.permute.xlu0 %v4330_v15 }
 0x483   :  { %v5341_v27 = vpack.c.bf16 %v2869_v53, %v2868_v20  ;;  %2964 = vperm.xlu0 %3965, %v2961_v18   ;;  %p4313_p3 = por %p4312_p2, %p4311_p1 }
 0x484   :  { %v3908_v61 = vpop.f32.mrb[136].mxu0 }
 0x485   :  { %v2650_v16 = vadd.f32 %v3908_v61, %v5325_v41  ;;  %v2641_v11 = vpop.f32.mrb[137].mxu0  ;;  %p4314_p4 = pnand %p4313_p3, %p4307_p0 }
 0x486   :  { %v2642_v49 = vadd.f32 %v5325_v41, %v2641_v11  ;;  %v3909_v4 = vpop.f32.mrb[138].mxu0 }
 0x487   :  { %v2653_v60 = vadd.f32 %v3909_v4, %v5325_v41  ;;  %v2644_v1 = vpop.f32.mrb[139].mxu0  ;;  %v2874_v28 = vmax.f32 %v2650_v16, 0.0 }
 0x488   :  { %v2645_v22 = vadd.f32 %v5325_v41, %v2644_v1  ;;  %v2872_v42 = vmax.f32 %v2642_v49, 0.0 }
 0x489   :  { %v2875_v50 = vmax.f32 %v2653_v60, 0.0 }
 0x48a   :  { %v2873_v56 = vmax.f32 %v2645_v22, 0.0 }
 0x48b   :  { %v5347_v14 = vpack.c.bf16 %v2875_v50, %v2874_v28 }
 0x48c   :  { %v5349_v55 = vpack.c.bf16 %v2873_v56, %v2872_v42 }
 0x48e   :  { %v3912_v32 = vpop.f32.mrb[140].mxu0 }
 0x48f   :  { %v2666_v25 = vadd.f32 %v3912_v32, %v5325_v41  ;;  %v2657_v29 = vpop.f32.mrb[141].mxu0 }
 0x490   :  { %v2658_v44 = vadd.f32 %v5325_v41, %v2657_v29  ;;  %v3913_v6 = vpop.f32.mrb[142].mxu0 }
 0x491   :  { %v2669_v26 = vadd.f32 %v3913_v6, %v5325_v41  ;;  %v2660_v45 = vpop.f32.mrb[143].mxu0  ;;  %v2878_v17 = vmax.f32 %v2666_v25, 0.0 }
 0x492   :  { %v2661_v2 = vadd.f32 %v5325_v41, %v2660_v45  ;;  %v2876_v51 = vmax.f32 %v2658_v44, 0.0 }
 0x493   :  { %v2879_v13 = vmax.f32 %v2669_v26, 0.0 }
 0x494   :  { %v2877_v23 = vmax.f32 %v2661_v2, 0.0 }
 0x495   :  { %v5355_v21 = vpack.c.bf16 %v2879_v13, %v2878_v17 }
 0x496   :  { %v5357_v43 = vpack.c.bf16 %v2877_v23, %v2876_v51  ;;  %v3916_v7 = vpop.f32.mrb[144].mxu0 }
 0x497   :  { %v2682_v5 = vadd.f32 %v3916_v7, %v5325_v41  ;;  %v2673_v36 = vpop.f32.mrb[145].mxu0 }
 0x498   :  { %v2674_v33 = vadd.f32 %v5325_v41, %v2673_v36  ;;  %v3917_v48 = vpop.f32.mrb[146].mxu0 }
 0x499   :  { %v2685_v35 = vadd.f32 %v3917_v48, %v5325_v41  ;;  %v2676_v31 = vpop.f32.mrb[147].mxu0  ;;  %v2882_v19 = vmax.f32 %v2682_v5, 0.0 }
 0x49a   :  { %v2677_v30 = vadd.f32 %v5325_v41, %v2676_v31  ;;  %v2880_v3 = vmax.f32 %v2674_v33, 0.0 }
 0x49b   :  { %v2883_v57 = vmax.f32 %v2685_v35, 0.0 }
 0x49c   :  { %v2881_v38 = vmax.f32 %v2677_v30, 0.0 }
 0x49d   :  { %v2938_v58 = vpack.c.bf16 %v2883_v57, %v2882_v19 }
 0x49e   :  { %v2937_v47 = vpack.c.bf16 %v2881_v38, %v2880_v3  ;;  %v3920_v54 = vpop.f32.mrb[148].mxu0 }
 0x49f   :  { %v2698_v34 = vadd.f32 %v3920_v54, %v5325_v41  ;;  %v2689_v39 = vpop.f32.mrb[149].mxu0 }
 0x4a0   :  { %v2690_v24 = vadd.f32 %v5325_v41, %v2689_v39  ;;  %v3921_v8 = vpop.f32.mrb[150].mxu0  ;;  %3536 = vmatprep.subr.bf16.mxu1 %v2937_v47 }
 0x4a1   :  { %v2701_v62 = vadd.f32 %v3921_v8, %v5325_v41  ;;  %v2692_v9 = vpop.f32.mrb[151].mxu0  ;;  %3537 = vmatpush3.bf16.xpose.msra.mxu1 %v5333_v37  ;;  %v2886_v40 = vmax.f32 %v2698_v34, 0.0 }
 0x4a2   :  { %v2693_v46 = vadd.f32 %v5325_v41, %v2692_v9  ;;  %3538 = vmatprep.subr.bf16.mxu1 %v2938_v58  ;;  %v2884_v52 = vmax.f32 %v2690_v24, 0.0 }
 0x4a3   :  { %v2887_v10 = vmax.f32 %v2701_v62, 0.0 }
 0x4a4   :  { %v2885_v0 = vmax.f32 %v2693_v46, 0.0 }
 0x4a5   :  { %v2940_v20 = vpack.c.bf16 %v2887_v10, %v2886_v40 }
 0x4a6   :  { %v2939_v53 = vpack.c.bf16 %v2885_v0, %v2884_v52  ;;  %v3924_v61 = vpop.f32.mrb[152].mxu0 }
 0x4a7   :  { %v2714_v16 = vadd.f32 %v3924_v61, %v5325_v41  ;;  %v2705_v37 = vpop.f32.mrb[153].mxu0 }
 0x4a8   :  { %v2706_v11 = vadd.f32 %v5325_v41, %v2705_v37  ;;  %v3925_v49 = vpop.f32.mrb[154].mxu0 }
 0x4a9   :  { %v2717_v4 = vadd.f32 %v3925_v49, %v5325_v41  ;;  %v2708_v60 = vpop.f32.mrb[155].mxu0  ;;  %3539 = vmatpush3.bf16.xpose.msra.mxu1 %v5331_v59  ;;  %v2890_v22 = vmax.f32 %v2714_v16, 0.0 }
 0x4aa   :  { %v2709_v1 = vadd.f32 %v5325_v41, %v2708_v60  ;;  %3540 = vmatprep.subr.bf16.mxu1 %v2939_v53  ;;  %v2888_v50 = vmax.f32 %v2706_v11, 0.0 }
 0x4ab   :  { %v2891_v28 = vmax.f32 %v2717_v4, 0.0 }
 0x4ac   :  { %v2889_v42 = vmax.f32 %v2709_v1, 0.0 }
 0x4ad   :  { %v2942_v56 = vpack.c.bf16 %v2891_v28, %v2890_v22 }
 0x4ae   :  { %v2941_v32 = vpack.c.bf16 %v2889_v42, %v2888_v50  ;;  %v3928_v25 = vpop.f32.mrb[156].mxu0 }
 0x4af   :  { %v2730_v29 = vadd.f32 %v3928_v25, %v5325_v41  ;;  %v2721_v44 = vpop.f32.mrb[157].mxu0 }
 0x4b0   :  { %v2722_v6 = vadd.f32 %v5325_v41, %v2721_v44  ;;  %v3929_v26 = vpop.f32.mrb[158].mxu0 }
 0x4b1   :  { %v2733_v45 = vadd.f32 %v3929_v26, %v5325_v41  ;;  %v2724_v2 = vpop.f32.mrb[159].mxu0  ;;  %3541 = vmatpush3.bf16.xpose.msra.mxu1 %v5341_v27  ;;  %v2894_v17 = vmax.f32 %v2730_v29, 0.0 }
 0x4b2   :  { %v2725_v59 = vadd.f32 %v5325_v41, %v2724_v2  ;;  %3542 = vmatprep.subr.bf16.mxu1 %v2940_v20  ;;  %v2892_v51 = vmax.f32 %v2722_v6, 0.0 }
 0x4b3   :  { %v2895_v13 = vmax.f32 %v2733_v45, 0.0 }
 0x4b4   :  { %v2893_v23 = vmax.f32 %v2725_v59, 0.0 }
 0x4b5   :  { %v2944_v7 = vpack.c.bf16 %v2895_v13, %v2894_v17 }
 0x4b6   :  { %v2943_v5 = vpack.c.bf16 %v2893_v23, %v2892_v51 }
 0x4b7   :  { %v3932_v36 = vpop.f32.mrb[160].mxu0 }
 0x4b8   :  { %v2746_v33 = vadd.f32 %v3932_v36, %v5325_v41  ;;  %v2737_v48 = vpop.f32.mrb[161].mxu0 }
 0x4b9   :  { %v2738_v35 = vadd.f32 %v5325_v41, %v2737_v48  ;;  %v3933_v31 = vpop.f32.mrb[162].mxu0  ;;  %3543 = vmatpush3.bf16.xpose.msra.mxu1 %v5339_v12 }
 0x4ba   :  { %v2749_v27 = vadd.f32 %v3933_v31, %v5325_v41  ;;  %v2740_v30 = vpop.f32.mrb[163].mxu0  ;;  %3544 = vmatprep.subr.bf16.mxu1 %v2941_v32  ;;  %v2898_v57 = vmax.f32 %v2746_v33, 0.0 }
 0x4bb   :  { %v2741_v19 = vadd.f32 %v5325_v41, %v2740_v30  ;;  %v2896_v38 = vmax.f32 %v2738_v35, 0.0 }
 0x4bc   :  { %v2899_v3 = vmax.f32 %v2749_v27, 0.0 }
 0x4bd   :  { %v2897_v58 = vmax.f32 %v2741_v19, 0.0 }
 0x4be   :  { %v5386_v47 = vpack.c.bf16 %v2899_v3, %v2898_v57 }
 0x4bf   :  { %v5388_v54 = vpack.c.bf16 %v2897_v58, %v2896_v38  ;;  %v3936_v34 = vpop.f32.mrb[164].mxu0 }
 0x4c0   :  { %v2762_v39 = vadd.f32 %v3936_v34, %v5325_v41  ;;  %v2753_v24 = vpop.f32.mrb[165].mxu0 }
 0x4c1   :  { %v2754_v12 = vadd.f32 %v5325_v41, %v2753_v24  ;;  %v3937_v8 = vpop.f32.mrb[166].mxu0  ;;  %3545 = vmatpush3.bf16.xpose.msra.mxu1 %v5349_v55 }
 0x4c2   :  { %v2765_v62 = vadd.f32 %v3937_v8, %v5325_v41  ;;  %v2756_v9 = vpop.f32.mrb[167].mxu0  ;;  %3546 = vmatprep.subr.bf16.mxu1 %v2942_v56  ;;  %v2902_v18 = vmax.f32 %v2762_v39, 0.0 }
 0x4c3   :  { %v2757_v46 = vadd.f32 %v5325_v41, %v2756_v9  ;;  %v2900_v10 = vmax.f32 %v2754_v12, 0.0 }
 0x4c4   :  { %v2903_v40 = vmax.f32 %v2765_v62, 0.0 }
 0x4c5   :  { %v2901_v15 = vmax.f32 %v2757_v46, 0.0 }
 0x4c6   :  { %v5395_v52 = vpack.c.bf16 %v2903_v40, %v2902_v18 }
 0x4c7   :  { %v5397_v0 = vpack.c.bf16 %v2901_v15, %v2900_v10  ;;  %v3940_v20 = vpop.f32.mrb[168].mxu0 }
 0x4c8   :  { %v2778_v53 = vadd.f32 %v3940_v20, %v5325_v41  ;;  %v2769_v61 = vpop.f32.mrb[169].mxu0 }
 0x4c9   :  { %v2770_v55 = vadd.f32 %v5325_v41, %v2769_v61  ;;  %v3941_v16 = vpop.f32.mrb[170].mxu0  ;;  %3547 = vmatpush3.bf16.xpose.msra.mxu1 %v5347_v14 }
 0x4ca   :  { %v2781_v37 = vadd.f32 %v3941_v16, %v5325_v41  ;;  %v2772_v11 = vpop.f32.mrb[171].mxu0  ;;  %3548 = vmatprep.subr.bf16.mxu1 %v2943_v5  ;;  %v2906_v4 = vmax.f32 %v2778_v53, 0.0 }
 0x4cb   :  { %v2773_v49 = vadd.f32 %v5325_v41, %v2772_v11  ;;  %v2904_v1 = vmax.f32 %v2770_v55, 0.0 }
 0x4cc   :  { %v2907_v60 = vmax.f32 %v2781_v37, 0.0 }
 0x4cd   :  { %v2905_v22 = vmax.f32 %v2773_v49, 0.0 }
 0x4ce   :  { %v5404_v28 = vpack.c.bf16 %v2907_v60, %v2906_v4 }
 0x4cf   :  { %v5406_v50 = vpack.c.bf16 %v2905_v22, %v2904_v1 }
 0x4d0   :  { %v3944_v42 = vpop.f32.mrb[172].mxu0 }
 0x4d1   :  { %v2794_v56 = vadd.f32 %v3944_v42, %v5325_v41  ;;  %v2785_v32 = vpop.f32.mrb[173].mxu0  ;;  %3549 = vmatpush3.bf16.xpose.msra.mxu1 %v5357_v43 }
 0x4d2   :  { %v2786_v14 = vadd.f32 %v5325_v41, %v2785_v32  ;;  %v3945_v25 = vpop.f32.mrb[174].mxu0  ;;  %3550 = vmatprep.subr.bf16.mxu1 %v2944_v7 }
 0x4d3   :  { %v2797_v29 = vadd.f32 %v3945_v25, %v5325_v41  ;;  %v2788_v44 = vpop.f32.mrb[175].mxu0  ;;  %v2910_v26 = vmax.f32 %v2794_v56, 0.0 }
 0x4d4   :  { %v2789_v6 = vadd.f32 %v5325_v41, %v2788_v44  ;;  %v2908_v2 = vmax.f32 %v2786_v14, 0.0 }
 0x4d5   :  { %v2911_v45 = vmax.f32 %v2797_v29, 0.0 }
 0x4d6   :  { %v2909_v59 = vmax.f32 %v2789_v6, 0.0 }
 0x4d7   :  { %v5413_v17 = vpack.c.bf16 %v2911_v45, %v2910_v26 }
 0x4d8   :  { %v5415_v13 = vpack.c.bf16 %v2909_v59, %v2908_v2  ;;  %v3948_v51 = vpop.f32.mrb[176].mxu0 }
 0x4d9   :  { %v2810_v43 = vadd.f32 %v3948_v51, %v5325_v41  ;;  %v2801_v23 = vpop.f32.mrb[177].mxu0  ;;  %3551 = vmatpush3.bf16.xpose.msra.mxu1 %v5355_v21 }
 0x4da   :  { %v2802_v7 = vadd.f32 %v5325_v41, %v2801_v23  ;;  %v3949_v5 = vpop.f32.mrb[178].mxu0 }
 0x4db   :  { %v2813_v36 = vadd.f32 %v3949_v5, %v5325_v41  ;;  %v2804_v33 = vpop.f32.mrb[179].mxu0  ;;  %v2914_v35 = vmax.f32 %v2810_v43, 0.0 }
 0x4dc   :  { %v2805_v48 = vadd.f32 %v5325_v41, %v2804_v33  ;;  %v2912_v27 = vmax.f32 %v2802_v7, 0.0 }
 0x4dd   :  { %v2915_v31 = vmax.f32 %v2813_v36, 0.0 }
 0x4de   :  { %v2913_v30 = vmax.f32 %v2805_v48, 0.0 }
 0x4df   :  { %v2954_v19 = vpack.c.bf16 %v2915_v31, %v2914_v35 }
 0x4e0   :  { %v2953_v57 = vpack.c.bf16 %v2913_v30, %v2912_v27  ;;  %v3952_v3 = vpop.f32.mrb[180].mxu0  ;;  %3553 = vmatmul.mubr.bf16.vlgmr.msra.gmra.mrb[128].mxu1 %v5319_v63 }
 0x4e1   :  { %v2826_v38 = vadd.f32 %v3952_v3, %v5325_v41  ;;  %v2817_v21 = vpop.f32.mrb[181].mxu0  ;;  %3570 = vmatprep.mubr.bf16.mxu1 %v5319_v63 }
 0x4e2   :  { %v2818_v58 = vadd.f32 %v5325_v41, %v2817_v21  ;;  %v3953_v34 = vpop.f32.mrb[182].mxu0  ;;  %3554 = vmatprep.subr.bf16.mxu1 %v2953_v57 }
 0x4e3   :  { %v2829_v39 = vadd.f32 %v3953_v34, %v5325_v41  ;;  %v2820_v24 = vpop.f32.mrb[183].mxu0  ;;  %3555 = vmatpush3.bf16.xpose.msra.mxu1 %v5388_v54  ;;  %v2918_v8 = vmax.f32 %v2826_v38, 0.0 }
 0x4e4   :  { %v2821_v12 = vadd.f32 %v5325_v41, %v2820_v24  ;;  %3556 = vmatprep.subr.bf16.mxu1 %v2954_v19  ;;  %v2916_v9 = vmax.f32 %v2818_v58, 0.0  ;;  %v4331_v24 = vmov 1966171168  }
 0x4e5   :  { %v2919_v62 = vmax.f32 %v2829_v39, 0.0 }
 0x4e6   :  { %v2917_v46 = vmax.f32 %v2821_v12, 0.0  ;;  %v3080_v12 = vunpack.c.l.s4 %v4331_v24 }
 0x4e7   :  { %v2956_v18 = vpack.c.bf16 %v2919_v62, %v2918_v8  ;;  %v3082_v8 = vlaneseq }
 0x4e8   :  { %v2955_v40 = vpack.c.bf16 %v2917_v46, %v2916_v9  ;;  %v3081_v62 = vunpack.c.0.s8 %v3080_v12 }
 0x4e9   :  { %v3956_v10 = vpop.f32.mrb[184].mxu0  ;;  %v3083_v9 = vshrl.u32 %v3082_v8, 7  ;;  %vm3104_vm1 = vcmp.lt.s32.totalorder %v3082_v8, 512 }
 0x4ea   :  { %v2842_v15 = vadd.f32 %v3956_v10, %v5325_v41  ;;  %v2833_v20 = vpop.f32.mrb[185].mxu0 }
 0x4eb   :  { %v2834_v53 = vadd.f32 %v5325_v41, %v2833_v20  ;;  %v3957_v61 = vpop.f32.mrb[186].mxu0  ;;  %3557 = vmatpush3.bf16.xpose.msra.mxu1 %v5386_v47 }
 0x4ec   :  { %v2845_v54 = vadd.f32 %v3957_v61, %v5325_v41  ;;  %v2836_v55 = vpop.f32.mrb[187].mxu0  ;;  %3558 = vmatprep.subr.bf16.mxu1 %v2955_v40  ;;  %v2922_v37 = vmax.f32 %v2842_v15, 0.0 }
 0x4ed   :  { %v2837_v16 = vadd.f32 %v5325_v41, %v2836_v55  ;;  %v2920_v49 = vmax.f32 %v2834_v53, 0.0 }
 0x4ee   :  { %v2923_v11 = vmax.f32 %v2845_v54, 0.0 }
 0x4ef   :  { %v2921_v4 = vmax.f32 %v2837_v16, 0.0 }
 0x4f0   :  { %v2958_v60 = vpack.c.bf16 %v2923_v11, %v2922_v37 }
 0x4f1   :  { %v2957_v1 = vpack.c.bf16 %v2921_v4, %v2920_v49  ;;  %v3960_v22 = vpop.f32.mrb[188].mxu0 }
 0x4f2   :  { %v2858_v42 = vadd.f32 %v3960_v22, %v5325_v41  ;;  %v2849_v56 = vpop.f32.mrb[189].mxu0 }
 0x4f3   :  { %v2850_v32 = vadd.f32 %v5325_v41, %v2849_v56  ;;  %v3961_v14 = vpop.f32.mrb[190].mxu0  ;;  %3559 = vmatpush3.bf16.xpose.msra.mxu1 %v5397_v0 }
 0x4f4   :  { %v2861_v47 = vadd.f32 %v3961_v14, %v5325_v41  ;;  %v2852_v25 = vpop.f32.mrb[191].mxu0  ;;  %3560 = vmatprep.subr.bf16.mxu1 %v2956_v18  ;;  %v2926_v44 = vmax.f32 %v2858_v42, 0.0  ;;  %v3084_v18 = vsub.s32 %v3081_v62, %v3083_v9 }
 0x4f5   :  { %v2853_v29 = vadd.f32 %v5325_v41, %v2852_v25  ;;  %v2924_v26 = vmax.f32 %v2850_v32, 0.0 }
 0x4f6   :  { %v2927_v6 = vmax.f32 %v2861_v47, 0.0 }
 0x4f7   :  { %v2925_v45 = vmax.f32 %v2853_v29, 0.0 }
 0x4f8   :  { %v2960_v2 = vpack.c.bf16 %v2927_v6, %v2926_v44 }
 0x4f9   :  { %v2959_v59 = vpack.c.bf16 %v2925_v45, %v2924_v26 }
 0x4fb   :  { %3561 = vmatpush3.bf16.xpose.msra.mxu1 %v5395_v52 }
 0x4fc   :  { %3562 = vmatprep.subr.bf16.mxu1 %v2957_v1 }
 0x502   :  { %v2965_v41 = vpop.permute.xlu0 %2964 }
 0x503   :  { %3563 = vmatpush3.bf16.xpose.msra.mxu1 %v5406_v50 }
 0x504   :  { %3564 = vmatprep.subr.bf16.mxu1 %v2958_v60 }
 0x50b   :  { %3565 = vmatpush3.bf16.xpose.msra.mxu1 %v5404_v28 }
 0x50c   :  { %3566 = vmatprep.subr.bf16.mxu1 %v2959_v59 }
 0x513   :  { %3567 = vmatpush3.bf16.xpose.msra.mxu1 %v5415_v13 }
 0x514   :  { %3568 = vmatprep.subr.bf16.mxu1 %v2960_v2 }
 0x51b   :  { %3569 = vmatpush3.bf16.xpose.msra.mxu1 %v5413_v17 }
 0x522   :  { %3571 = vmatmul.mubr.bf16.vlgmr.msra.gmra.mrb[132].mxu1 %v5319_v63 }
 0x5b3   :  { %v3001_v0 = vpop.f32.mrb[128].mxu1 }
 0x5b4   :  { %v3003_v51 = vpop.f32.mrb[129].mxu1  ;;  %v3002_v43 = vadd.f32 %v3001_v0, %v2965_v41 }
 0x5b5   :  { %v3005_v23 = vpop.f32.mrb[130].mxu1  ;;  %v3004_v52 = vadd.f32 %v3003_v51, %v2965_v41 }
 0x5b6   :  { %v3006_v7 = vpop.f32.mrb[131].mxu1  ;;  %v3337_v5 = vmul.f32 -1.442695, %v3002_v43 }
 0x5b7   :  { %v3338_v50 = vmul.f32 -1.442695, %v3004_v52 }
 0x5b8   :  { %4289 = vpow2.f32 %v3337_v5 }
 0x5b9   :  { %4291 = vpow2.f32 %v3338_v50 }
 0x5c2   :  { %v4290_v28 = vpop.eup %4289 }
 0x5c3   :  { %v4292_v36 = vpop.eup %4291  ;;  %v3061_v33 = vadd.f32 1.0, %v4290_v28 }
 0x5c4   :  { %v3062_v13 = vadd.f32 1.0, %v4292_v36 }
 0x5c5   :  { %4293 = vrcp.f32 %v3061_v33 }
 0x5c6   :  { %4295 = vrcp.f32 %v3062_v13 }
 0x5cf   :  { %v4294_v17 = vpop.eup %4293 }
 0x5d0   :  { %v4296_v48 = vpop.eup %4295 }
 0x5d1   :  { %v3077_v63 = vcombine.low %v4294_v17, %v4296_v48 }
 0x5d3   :  { %v3085_v15 = vrot.slane %v3077_v63, %v3084_v18 }
 0x5f5   :  { %v3042_v35 = vpop.f32.mrb[132].mxu1 }
 0x5f6   :  { %v3043_v31 = vadd.f32 %v3042_v35, %v2965_v41  ;;  %v3044_v27 = vpop.f32.mrb[133].mxu1 }
 0x5f7   :  { %v3045_v30 = vadd.f32 %v3044_v27, %v2965_v41  ;;  %v3046_v19 = vpop.f32.mrb[134].mxu1 }
 0x5f8   :  { %v3339_v57 = vmul.f32 -1.442695, %v3043_v31  ;;  %v3047_v3 = vpop.f32.mrb[135].mxu1 }
 0x5f9   :  { %v3340_v38 = vmul.f32 -1.442695, %v3045_v30 }
 0x5fa   :  { %4297 = vpow2.f32 %v3339_v57 }
 0x5fb   :  { %4299 = vpow2.f32 %v3340_v38 }
 0x604   :  { %v4298_v21 = vpop.eup %4297 }
 0x605   :  { %v4300_v58 = vpop.eup %4299  ;;  %v3063_v34 = vadd.f32 1.0, %v4298_v21 }
 0x606   :  { %v3064_v39 = vadd.f32 1.0, %v4300_v58 }
 0x607   :  { %4301 = vrcp.f32 %v3063_v34 }
 0x608   :  { %4303 = vrcp.f32 %v3064_v39 }
 0x611   :  { %v4302_v46 = vpop.eup %4301 }
 0x612   :  { %v4304_v40 = vpop.eup %4303 }
 0x613   :  { %v3078_v10 = vcombine.low %v4302_v46, %v4304_v40 }
 0x615   :  { %v3092_v20 = vrot.slane %v3078_v10, %v3084_v18 }
 0x617   :  { %v3093_v53 = vcombine.low %v3085_v15, %v3092_v20 }
 0x619   :  { %v3100_v61 = vrot.slane %v3093_v53, %v3084_v18 }
 0x61b   :  { %3106 = vst.msk [vmem:[#allocation2] sm:$0xf] %vm3104_vm1, %v3100_v61 }
 0x61c   :  { %4317 = shalt.err (!%p4314_p4)
}
 0x61d   :  { %s4318_s11 = scalar_lea.hbm %s5462_s5, 64 }
 0x61e   :  { %p4319_p5 = scmp.ne.s32.totalorder %s5462_s5, %s4318_s11  ;;  %p4322_p6 = scmp.lt.u32.totalorder %s4318_s11, %s5462_s5 }
 0x620   :  { %p4324_p7 = pnand %p4322_p6, %p4319_p5 }
 0x622   :  { %4327 = shalt.err (!%p4324_p7)
}
 0x623   :  { %3116 = dma.vmem_to_hbm [thread:$0]  %s3114_s7, 64, %s5462_s5, [#allocation3]  }
 0x624   :  { %4328 = dma.done.wait [#allocation3], 64  }
 0x625   :  { %4329 = vsyncadd [#allocation3], 4294967232 }
 0x626   :  { %3120 = vsyncpa [#allocation3], 1 }

</bundles_post_ra>
